<compile_context>
chip_gen: v7x
topology: tpu7x:2x2x1
jax: 0.10.0
libtpu: 0.0.40
codegen_flags: <defaults>
</compile_context>

<pallas_src>
import numpy as np
import jax
import jax.numpy as jnp
from jax.experimental import pallas as pl
from jax.experimental.pallas import tpu as pltpu

# ---------------------------------------------------------------------------
# G(3,0,1) algebra tables (host-side glue, built once in numpy).
# bit 0 = e0 (null, e0^2 = 0); bits 1..3 = e1,e2,e3 (square to +1).
# ---------------------------------------------------------------------------
_BLADES = [0b0000, 0b0001, 0b0010, 0b0100, 0b1000,
           0b0011, 0b0101, 0b1001, 0b0110, 0b1010, 0b1100,
           0b0111, 0b1011, 0b1101, 0b1110, 0b1111]
_IDX = {m: i for i, m in enumerate(_BLADES)}
NB = 16  # blades per multivector


def _reorder_sign(a, b):
    a >>= 1
    swaps = 0
    while a:
        swaps += bin(a & b).count("1")
        a >>= 1
    return -1.0 if swaps & 1 else 1.0


def _gp_tensor():
    """G[k,i,j]: e_i e_j = sum_k G[k,i,j] e_k (geometric product)."""
    G = np.zeros((NB, NB, NB), np.float32)
    for i, a in enumerate(_BLADES):
        for j, b in enumerate(_BLADES):
            if a & b & 0b0001:  # e0 * e0 = 0
                continue
            G[_IDX[a ^ b], i, j] += _reorder_sign(a, b)
    return G


def _wedge_tensor():
    W = np.zeros((NB, NB, NB), np.float32)
    for i, a in enumerate(_BLADES):
        for j, b in enumerate(_BLADES):
            if a & b:
                continue
            W[_IDX[a | b], i, j] += _reorder_sign(a, b)
    return W


def _dual_matrix():
    """D[k,i]: dual(e_i) = sum_k D[k,i] e_k with e_i ^ dual(e_i) = e0123."""
    D = np.zeros((NB, NB), np.float32)
    for i, a in enumerate(_BLADES):
        c = (~a) & 0b1111
        D[_IDX[c], i] = _reorder_sign(a, c)
    return D


def _join_tensor():
    """J[k,i,j]: join(e_i,e_j) = undual(dual(e_i) ^ dual(e_j))."""
    W = _wedge_tensor()
    D = _dual_matrix()
    Dinv = D.T  # signed permutation -> orthogonal
    return np.einsum("kl,lab,ai,bj->kij", Dinv, W, D, D).astype(np.float32)


def _equi_linear_basis():
    """(9,16,16) basis of Pin(3,0,1)-equivariant linear maps:
    5 grade projections + 4 'multiply by e0' maps on the e0-free blades."""
    Bas = np.zeros((9, NB, NB), np.float32)
    for i, m in enumerate(_BLADES):
        Bas[bin(m).count("1"), i, i] = 1.0
    for i, m in enumerate(_BLADES):
        if m & 0b0001:
            continue
        g = bin(m).count("1")
        Bas[5 + g, _IDX[m | 0b0001], i] = 1.0  # e0 ^ e_m (sign +1, e0 lowest)
    return Bas


# ---------------------------------------------------------------------------
# Module hyper-parameters (consistent with GeometricBilinear).
# ---------------------------------------------------------------------------
CIN, COUT, HID = 4, 8, 8        # in / out / hidden multivector channels
SIN, SOUT = 6, 10               # in / out scalar channels
CH = HID // 2                   # channels per bilinear branch (gp / join)

DIN_PAD = 128                   # padded input width: [x(64)|s(6)|1|pseudo|0...]
DOUT_PAD = 256                  # padded output width: [out_mv(128)|out_s(10)|0...]
PSEUDO_COL = CIN * NB + SIN + 1  # lane holding ref e0123 coefficient (= 71)
D_HALF = 2 * CH * NB            # 128: left-operand slab width of h

BATCH, BT = 256, 128            # batch rows, batch tile (full MXU rows / tile)


def _init_params(key):
    def nrm(k, shape, scale):
        return np.asarray(scale * jax.random.normal(k, shape, dtype=jnp.float32))
    keys = iter(jax.random.split(key, 32))
    p = {}
    for name in ("left", "right", "jleft", "jright"):
        p[f"w_{name}"] = nrm(next(keys), (CH, CIN, 9), 1.0 / np.sqrt(3.0 * CIN))
        p[f"s2mv_w_{name}"] = nrm(next(keys), (CH, SIN), 1.0 / np.sqrt(SIN))
        p[f"s2mv_b_{name}"] = nrm(next(keys), (CH,), 0.1)
    p["w_out"] = nrm(next(keys), (COUT, HID, 9), 1.0 / np.sqrt(3.0 * HID))
    p["s2mv_w_out"] = nrm(next(keys), (COUT, SIN), 1.0 / np.sqrt(SIN))
    p["s2mv_b_out"] = nrm(next(keys), (COUT,), 0.1)
    p["mvs2s_w"] = nrm(next(keys), (SOUT, HID), 1.0 / np.sqrt(HID))
    p["s2s_w"] = nrm(next(keys), (SOUT, SIN), 1.0 / np.sqrt(SIN))
    p["s2s_b"] = nrm(next(keys), (SOUT,), 0.1)
    return p


def _fold_equi(W, basis):
    """Fold (O,I,9) equi-linear weights with the (9,16,16) basis into a
    (I*16, O*16) matrix acting on flattened multivectors (channel-major)."""
    O, I, _ = W.shape
    return np.einsum("oia,akj->ijok", W, basis).reshape(I * NB, O * NB).astype(np.float32)


def _build_folded(p, basis, Gk, Jk):
    """Fold all EquiLinears, the GP/join structure constants and the skip
    (scalar/bias) path into four lane-dense matrices:
      A_hid  (128, 256):  u_pad -> [L_0..3 | JL_0..3 | R_0..3 | JR_0..3]
      REP_L  (128, 2048): 0/1 left-operand replication for per-channel outer
      REP_R  (128, 2048): 0/1 right-operand replication
      W_big  (2048, 256): blockdiag(G2 x4, J2 x4) @ [A_mv_out | A_s_out | 0pad]
      W_skip (128, 256):  scalars + bias -> outputs (blade-0 of MVs, scalars)
    """
    nb2 = NB * NB
    G2 = np.transpose(Gk, (1, 2, 0)).reshape(nb2, NB)   # [(i*16+j), k]
    J2 = np.transpose(Jk, (1, 2, 0)).reshape(nb2, NB)

    # Hidden branches: columns ordered [left | join_left | right | join_right].
    A_hid = np.zeros((DIN_PAD, 4 * CH * NB), np.float32)
    for b_idx, name in enumerate(("left", "jleft", "right", "jright")):
        col0 = b_idx * CH * NB
        A_hid[:CIN * NB, col0:col0 + CH * NB] = _fold_equi(p[f"w_{name}"], basis)
        for c in range(CH):  # scalars + bias feed the MV scalar component (blade 0)
            A_hid[CIN * NB:CIN * NB + SIN, col0 + c * NB] = p[f"s2mv_w_{name}"][c]
            A_hid[CIN * NB + SIN, col0 + c * NB] = p[f"s2mv_b_{name}"][c]

    # 0/1 replication matrices: outer[b, g*256+i*16+j] = lf[b,g*16+i]*rf[b,g*16+j].
    REP_L = np.zeros((HID * NB, HID * nb2), np.float32)
    REP_R = np.zeros((HID * NB, HID * nb2), np.float32)
    for g in range(HID):
        for i in range(NB):
            for j in range(NB):
                REP_L[g * NB + i, g * nb2 + i * NB + j] = 1.0
                REP_R[g * NB + j, g * nb2 + i * NB + j] = 1.0

    # Output EquiLinear (MV head + MV->scalar head), hidden channels ordered
    # [gp_0..gp_3, join_0..join_3] to match torch.cat((gp, join), dim=-2).
    A_out = np.zeros((HID * NB, DOUT_PAD), np.float32)
    A_out[:, :COUT * NB] = _fold_equi(p["w_out"], basis)
    for c in range(HID):
        A_out[c * NB, COUT * NB:COUT * NB + SOUT] = p["mvs2s_w"][:, c]

    # Fold structure constants (G for gp channels, J for join channels) into it.
    W_big = np.zeros((HID * nb2, DOUT_PAD), np.float32)
    for g in range(HID):
        tbl = G2 if g < CH else J2
        W_big[g * nb2:(g + 1) * nb2, :] = tbl @ A_out[g * NB:(g + 1) * NB, :]

    # Skip path: input scalars + bias of linear_out -> outputs.
    W_skip = np.zeros((DIN_PAD, DOUT_PAD), np.float32)
    for o in range(COUT):
        W_skip[CIN * NB:CIN * NB + SIN, o * NB] = p["s2mv_w_out"][o]
        W_skip[CIN * NB + SIN, o * NB] = p["s2mv_b_out"][o]
    W_skip[CIN * NB:CIN * NB + SIN, COUT * NB:COUT * NB + SOUT] = p["s2s_w"].T
    W_skip[CIN * NB + SIN, COUT * NB:COUT * NB + SOUT] = p["s2s_b"]

    return A_hid, REP_L, REP_R, W_big, W_skip


# ---------------------------------------------------------------------------
# Pallas kernel: matmul -> (scale, two replication matmuls, vmul) -> matmul.
# All dot operands are cast to bf16 (f32 accumulate); elementwise math is f32.
# ---------------------------------------------------------------------------
def _geometric_bilinear_kernel(u_ref, a_hid_ref, rep_l_ref, rep_r_ref,
                               w_big_ref, w_skip_ref, out_ref):
    u = u_ref[...]                                       # (BT, 128) f32
    u_b = u.astype(jnp.bfloat16)

    # All four hidden EquiLinear branches in one lane-dense MXU matmul.
    h = jnp.dot(u_b, a_hid_ref[...],
                preferred_element_type=jnp.float32)      # (BT, 256)

    lf = h[:, :D_HALF]                                   # (BT, 128)  [L | JL]
    rf = h[:, D_HALF:]                                   # (BT, 128)  [R | JR]

    # The equivariant join is scaled by the e0123 component of the reference
    # MV; apply it once to the JL half of the left slab (commutes with the
    # tables folded into w_big).
    pseudo = u[:, PSEUDO_COL:PSEUDO_COL + 1]             # (BT, 1)
    lane = jax.lax.broadcasted_iota(jnp.int32, lf.shape, 1)
    lf = lf * jnp.where(lane >= CH * NB, pseudo, 1.0)

    # Per-channel outer products via two 0/1 replication matmuls + one vmul:
    #   outer[b, g*256 + i*16 + j] = lf[b, g*16+i] * rf[b, g*16+j]
    lrep = jnp.dot(lf.astype(jnp.bfloat16), rep_l_ref[...],
                   preferred_element_type=jnp.float32)   # (BT, 2048)
    rtile = jnp.dot(rf.astype(jnp.bfloat16), rep_r_ref[...],
                    preferred_element_type=jnp.float32)  # (BT, 2048)
    outer = lrep * rtile                                 # (BT, 2048) f32

    # Folded (structure constants @ output EquiLinear) + scalar/bias skip path.
    out = jnp.dot(outer.astype(jnp.bfloat16), w_big_ref[...],
                  preferred_element_type=jnp.float32)    # (BT, 256)
    out = out + jnp.dot(u_b, w_skip_ref[...],
                        preferred_element_type=jnp.float32)
    out_ref[...] = out                                   # single lane-dense store


def geometric_bilinear(mv, ref_mv, scalars, A_hid, REP_L, REP_R, W_big, W_skip):
    B = mv.shape[0]
    assert B % BT == 0
    x_flat = mv.reshape(B, CIN * NB)
    ones = jnp.ones((B, 1), jnp.float32)
    pseudo = ref_mv[:, NB - 1:NB]                        # e0123 coefficient
    pad = jnp.zeros((B, DIN_PAD - (CIN * NB + SIN + 2)), jnp.float32)
    # Lane-aligned, 128-wide input slab (no in-kernel concatenation).
    u = jnp.concatenate([x_flat, scalars, ones, pseudo, pad], axis=-1)

    # Constant operands: constant index_map -> DMA'd once, revisited per step.
    const = lambda arr: pl.BlockSpec(arr.shape, lambda i: (0, 0))

    out_pad = pl.pallas_call(
        _geometric_bilinear_kernel,
        out_shape=jax.ShapeDtypeStruct((B, DOUT_PAD), jnp.float32),
        grid_spec=pltpu.PrefetchScalarGridSpec(
            num_scalar_prefetch=0,
            grid=(B // BT,),
            in_specs=[
                pl.BlockSpec((BT, DIN_PAD), lambda i: (i, 0)),
                const(A_hid), const(REP_L), const(REP_R),
                const(W_big), const(W_skip),
            ],
            out_specs=pl.BlockSpec((BT, DOUT_PAD), lambda i: (i, 0)),
        ),
        compiler_params=pltpu.CompilerParams(
            dimension_semantics=("parallel",)),   # batch axis -> both v7x TCs
    )(u, A_hid, REP_L, REP_R, W_big, W_skip)

    out_mv = out_pad[:, :COUT * NB].reshape(B, COUT, NB)
    out_s = out_pad[:, COUT * NB:COUT * NB + SOUT]
    return out_mv, out_s


# ---------------------------------------------------------------------------
# Pure-JAX reference (unfolded, high-precision) for validation.
# ---------------------------------------------------------------------------
def _reference(mv, ref_mv, sc, p, basis, Gk, Jk):
    hi = jax.lax.Precision.HIGHEST
    basis = jnp.asarray(basis)
    Gk, Jk = jnp.asarray(Gk), jnp.asarray(Jk)

    def equi(x, w, s2w, s2b):
        out = jnp.einsum("oia,akj,bij->bok", jnp.asarray(w), basis, x, precision=hi)
        return out.at[..., 0].add(sc @ jnp.asarray(s2w).T + jnp.asarray(s2b))

    left = equi(mv, p["w_left"], p["s2mv_w_left"], p["s2mv_b_left"])
    right = equi(mv, p["w_right"], p["s2mv_w_right"], p["s2mv_b_right"])
    jl = equi(mv, p["w_jleft"], p["s2mv_w_jleft"], p["s2mv_b_jleft"])
    jr = equi(mv, p["w_jright"], p["s2mv_w_jright"], p["s2mv_b_jright"])
    gp = jnp.einsum("kij,bci,bcj->bck", Gk, left, right, precision=hi)
    jn = jnp.einsum("kij,bci,bcj->bck", Jk, jl, jr,
                    precision=hi) * ref_mv[:, 15][:, None, None]
    hidden = jnp.concatenate([gp, jn], axis=1)
    out_mv = equi(hidden, p["w_out"], p["s2mv_w_out"], p["s2mv_b_out"])
    out_s = (hidden[..., 0] @ jnp.asarray(p["mvs2s_w"]).T
             + sc @ jnp.asarray(p["s2s_w"]).T + jnp.asarray(p["s2s_b"]))
    return out_mv, out_s


if __name__ == "__main__":
    key = jax.random.PRNGKey(0)
    kp, kx, kr, ks = jax.random.split(key, 4)

    params = _init_params(kp)
    basis = _equi_linear_basis()
    Gk, Jk = _gp_tensor(), _join_tensor()
    A_hid, REP_L, REP_R, W_big, W_skip = _build_folded(params, basis, Gk, Jk)

    mv = jax.random.normal(kx, (BATCH, CIN, NB), jnp.float32)
    ref_mv = jax.random.normal(kr, (BATCH, NB), jnp.float32)
    scalars = jax.random.normal(ks, (BATCH, SIN), jnp.float32)

    # Constant matrices in bf16 (replication tables are exact 0/1 in bf16).
    to_bf16 = lambda a: jnp.asarray(a, dtype=jnp.bfloat16)
    out_mv, out_s = geometric_bilinear(
        mv, ref_mv, scalars,
        to_bf16(A_hid), to_bf16(REP_L), to_bf16(REP_R),
        to_bf16(W_big), to_bf16(W_skip))
    out_mv, out_s = jax.block_until_ready((out_mv, out_s))

    ref_out_mv, ref_out_s = _reference(mv, ref_mv, scalars, params, basis, Gk, Jk)
    err_mv = float(jnp.max(jnp.abs(out_mv - ref_out_mv)))
    err_s = float(jnp.max(jnp.abs(out_s - ref_out_s)))
    scale = 1.0 + float(jnp.max(jnp.abs(ref_out_mv))) + float(jnp.max(jnp.abs(ref_out_s)))
    # Tolerance absorbs bf16 MXU operands (f32 accumulation) in the kernel.
    assert err_mv < 5e-2 * scale and err_s < 5e-2 * scale, (err_mv, err_s, scale)
    assert out_mv.shape == (BATCH, COUT, NB) and out_s.shape == (BATCH, SOUT)
    print("KERNEL_OK")
</pallas_src>

<mosaic_0001>
module attributes {stable_mosaic.version = 11 : i64} {
  func.func @_geometric_bilinear_kernel(%arg0: i32, %arg1: memref<128x128xf32, #tpu.memory_space<vmem>>, %arg2: memref<128x256xbf16, #tpu.memory_space<vmem>>, %arg3: memref<128x2048xbf16, #tpu.memory_space<vmem>>, %arg4: memref<128x2048xbf16, #tpu.memory_space<vmem>>, %arg5: memref<2048x256xbf16, #tpu.memory_space<vmem>>, %arg6: memref<128x256xbf16, #tpu.memory_space<vmem>>, %arg7: memref<128x256xf32, #tpu.memory_space<vmem>>) attributes {dimension_semantics = [#tpu.dimension_semantics<parallel>], iteration_bounds = array<i64: 2>, scalar_prefetch = 0 : i64, scratch_operands = 0 : i64, tpu.core_type = #tpu.core_type<tc>, window_params = [{transform_indices = @transform_0, window_bounds = array<i64: 128, 128>}, {pipeline_mode = #tpu.pipeline_mode<synchronous>, transform_indices = @transform_1, window_bounds = array<i64: 128, 256>}, {pipeline_mode = #tpu.pipeline_mode<synchronous>, transform_indices = @transform_2, window_bounds = array<i64: 128, 2048>}, {pipeline_mode = #tpu.pipeline_mode<synchronous>, transform_indices = @transform_3, window_bounds = array<i64: 128, 2048>}, {pipeline_mode = #tpu.pipeline_mode<synchronous>, transform_indices = @transform_4, window_bounds = array<i64: 2048, 256>}, {pipeline_mode = #tpu.pipeline_mode<synchronous>, transform_indices = @transform_5, window_bounds = array<i64: 128, 256>}, {transform_indices = @transform_6, window_bounds = array<i64: 128, 256>}]} {
    %c0 = arith.constant 0 : index
    %c0_0 = arith.constant 0 : index
    %0 = vector.load %arg1[%c0, %c0_0] : memref<128x128xf32, #tpu.memory_space<vmem>>, vector<128x128xf32>
    %1 = arith.truncf %0 : vector<128x128xf32> to vector<128x128xbf16>
    %c0_1 = arith.constant 0 : index
    %c0_2 = arith.constant 0 : index
    %2 = vector.load %arg2[%c0_1, %c0_2] : memref<128x256xbf16, #tpu.memory_space<vmem>>, vector<128x256xbf16>
    %cst = arith.constant dense<0.000000e+00> : vector<128x256xf32>
    %3 = tpu.matmul %1, %2, %cst {dimension_numbers = #tpu.dot_dimension_numbers<[1], [0], [0], [1], [0, 0, 1, 1], [], []>} : vector<128x128xbf16>, vector<128x256xbf16>, vector<128x256xf32> -> vector<128x256xf32>
    %4 = vector.extract_strided_slice %3 {offsets = [0, 0], sizes = [128, 128], strides = [1, 1]} : vector<128x256xf32> to vector<128x128xf32>
    %5 = vector.extract_strided_slice %3 {offsets = [0, 128], sizes = [128, 128], strides = [1, 1]} : vector<128x256xf32> to vector<128x128xf32>
    %6 = vector.extract_strided_slice %0 {offsets = [0, 71], sizes = [128, 1], strides = [1, 1]} : vector<128x128xf32> to vector<128x1xf32>
    %7 = tpu.iota {dimensions = array<i32: 1>} : vector<128x128xi32>
    %c64_i32 = arith.constant 64 : i32
    %8 = vector.broadcast %c64_i32 : i32 to vector<128x128xi32>
    %9 = arith.cmpi sge, %7, %8 : vector<128x128xi32>
    %cst_3 = arith.constant 1.000000e+00 : f32
    %10 = vector.shape_cast %6 : vector<128x1xf32> to vector<128x1xf32>
    %11 = vector.broadcast %10 : vector<128x1xf32> to vector<128x128xf32>
    %12 = vector.broadcast %cst_3 : f32 to vector<128x128xf32>
    %13 = arith.select %9, %11, %12 : vector<128x128xi1>, vector<128x128xf32>
    %14 = arith.mulf %4, %13 : vector<128x128xf32>
    %15 = arith.truncf %14 : vector<128x128xf32> to vector<128x128xbf16>
    %c0_4 = arith.constant 0 : index
    %c0_5 = arith.constant 0 : index
    %16 = vector.load %arg3[%c0_4, %c0_5] : memref<128x2048xbf16, #tpu.memory_space<vmem>>, vector<128x2048xbf16>
    %cst_6 = arith.constant dense<0.000000e+00> : vector<128x2048xf32>
    %17 = tpu.matmul %15, %16, %cst_6 {dimension_numbers = #tpu.dot_dimension_numbers<[1], [0], [0], [1], [0, 0, 1, 1], [], []>} : vector<128x128xbf16>, vector<128x2048xbf16>, vector<128x2048xf32> -> vector<128x2048xf32>
    %18 = arith.truncf %5 : vector<128x128xf32> to vector<128x128xbf16>
    %c0_7 = arith.constant 0 : index
    %c0_8 = arith.constant 0 : index
    %19 = vector.load %arg4[%c0_7, %c0_8] : memref<128x2048xbf16, #tpu.memory_space<vmem>>, vector<128x2048xbf16>
    %cst_9 = arith.constant dense<0.000000e+00> : vector<128x2048xf32>
    %20 = tpu.matmul %18, %19, %cst_9 {dimension_numbers = #tpu.dot_dimension_numbers<[1], [0], [0], [1], [0, 0, 1, 1], [], []>} : vector<128x128xbf16>, vector<128x2048xbf16>, vector<128x2048xf32> -> vector<128x2048xf32>
    %21 = arith.mulf %17, %20 : vector<128x2048xf32>
    %22 = arith.truncf %21 : vector<128x2048xf32> to vector<128x2048xbf16>
    %c0_10 = arith.constant 0 : index
    %c0_11 = arith.constant 0 : index
    %23 = vector.load %arg5[%c0_10, %c0_11] : memref<2048x256xbf16, #tpu.memory_space<vmem>>, vector<2048x256xbf16>
    %cst_12 = arith.constant dense<0.000000e+00> : vector<128x256xf32>
    %24 = tpu.matmul %22, %23, %cst_12 {dimension_numbers = #tpu.dot_dimension_numbers<[1], [0], [0], [1], [0, 0, 1, 1], [], []>} : vector<128x2048xbf16>, vector<2048x256xbf16>, vector<128x256xf32> -> vector<128x256xf32>
    %c0_13 = arith.constant 0 : index
    %c0_14 = arith.constant 0 : index
    %25 = vector.load %arg6[%c0_13, %c0_14] : memref<128x256xbf16, #tpu.memory_space<vmem>>, vector<128x256xbf16>
    %cst_15 = arith.constant dense<0.000000e+00> : vector<128x256xf32>
    %26 = tpu.matmul %1, %25, %cst_15 {dimension_numbers = #tpu.dot_dimension_numbers<[1], [0], [0], [1], [0, 0, 1, 1], [], []>} : vector<128x128xbf16>, vector<128x256xbf16>, vector<128x256xf32> -> vector<128x256xf32>
    %27 = arith.addf %24, %26 : vector<128x256xf32>
    %c0_16 = arith.constant 0 : index
    %c0_17 = arith.constant 0 : index
    %28 = vector.load %arg7[%c0_16, %c0_17] : memref<128x256xf32, #tpu.memory_space<vmem>>, vector<128x256xf32>
    tpu.vector_store %arg7[%c0_16, %c0_17], %27 {strides = array<i32>} : memref<128x256xf32, #tpu.memory_space<vmem>>, vector<128x256xf32>,
    return
  }
  func.func @transform_0(%arg0: i32) -> (i32, i32) {
    %c0_i32 = arith.constant 0 : i32
    %c0_i32_0 = arith.constant 0 : i32
    return %arg0, %c0_i32 : i32, i32
  }
  func.func @transform_1(%arg0: i32) -> (i32, i32) {
    %c0_i32 = arith.constant 0 : i32
    %c0_i32_0 = arith.constant 0 : i32
    %c0_i32_1 = arith.constant 0 : i32
    return %c0_i32, %c0_i32_0 : i32, i32
  }
  func.func @transform_2(%arg0: i32) -> (i32, i32) {
    %c0_i32 = arith.constant 0 : i32
    %c0_i32_0 = arith.constant 0 : i32
    %c0_i32_1 = arith.constant 0 : i32
    return %c0_i32, %c0_i32_0 : i32, i32
  }
  func.func @transform_3(%arg0: i32) -> (i32, i32) {
    %c0_i32 = arith.constant 0 : i32
    %c0_i32_0 = arith.constant 0 : i32
    %c0_i32_1 = arith.constant 0 : i32
    return %c0_i32, %c0_i32_0 : i32, i32
  }
  func.func @transform_4(%arg0: i32) -> (i32, i32) {
    %c0_i32 = arith.constant 0 : i32
    %c0_i32_0 = arith.constant 0 : i32
    %c0_i32_1 = arith.constant 0 : i32
    return %c0_i32, %c0_i32_0 : i32, i32
  }
  func.func @transform_5(%arg0: i32) -> (i32, i32) {
    %c0_i32 = arith.constant 0 : i32
    %c0_i32_0 = arith.constant 0 : i32
    %c0_i32_1 = arith.constant 0 : i32
    return %c0_i32, %c0_i32_0 : i32, i32
  }
  func.func @transform_6(%arg0: i32) -> (i32, i32) {
    %c0_i32 = arith.constant 0 : i32
    %c0_i32_0 = arith.constant 0 : i32
    return %arg0, %c0_i32 : i32, i32
  }
}

</mosaic_0001>

<bundles_post_ra>
// kernel: tpu_custom_call.1
= control target key start
LH: loop header
LB: loop body
LE: loop exit
PB: predicated region body
PF: predicated region fallthrough
CT: control target
= control target key end

     0   :  { %11 = vsyncpa [#allocation3], 0  ;;  %s11464_s0 = inlined_call_operand.hbm [shape: f32[256,128], index: 0, kind: input, shape index: {}]   ;;  %s11465_s1 = inlined_call_operand.hbm [shape: bf16[128,256], index: 1, kind: input, shape index: {}]   ;;  %s11466_s2 = inlined_call_operand.hbm [shape: bf16[128,2048], index: 2, kind: input, shape index: {}]   ;;  %s11467_s3 = inlined_call_operand.hbm [shape: bf16[128,2048], index: 3, kind: input, shape index: {}]   ;;  %s11468_s4 = inlined_call_operand.hbm [shape: bf16[2048,256], index: 4, kind: input, shape index: {}]   ;;  %s11469_s5 = inlined_call_operand.hbm [shape: bf16[128,256], index: 5, kind: input, shape index: {}]   ;;  %s11470_s6 = inlined_call_operand.hbm [shape: f32[256,256], index: 6, kind: output, shape index: {}]  }
   0x1   :  { %13 = vsyncpa [#allocation3 + $0x1], 0 }
   0x2   :  { %14 = vsyncpa [#allocation6], 0 }
   0x3   :  { %15 = vsyncpa [#allocation9], 0 }
   0x4   :  { %16 = vsyncpa [#allocation12], 0 }
   0x5   :  { %17 = vsyncpa [#allocation4], 0 }
   0x6   :  { %19 = vsyncpa [#allocation4 + $0x1], 0  ;;  %s8922_s21 = smov 0   ;;  %s8924_s22 = smov 0  }
   0x7   :  { %s8926_s23 = smov 0   ;;  %s8928_s24 = smov 0  }
   0x8 LB: > { %s8872_s25 = smov [#allocation5]   ;;  %s8943_s27 = sadd.s32 4294967295, %s8870_s24   ;;  %s8870_s24 = sphi %s8928_s24, %s12295_s24   ;;  %s8866_s23 = sphi %s8926_s23, %s12294_s23   ;;  %s8862_s22 = sphi %s8924_s22, %s12293_s22   ;;  %s8858_s21 = sphi %s8922_s21, %s12292_s21  }
   0x9   : > { %s199_s26 = sshll.u32 %s8872_s25, 4  ;;  %p7256_p0 = scmp.ge.s32.totalorder %s8870_s24, 1  ;;  %s8948_s26 = int_to_ptr.vmem [resolvable:$true] %s199_s26 }
   0xa   : > { %p11471_p1 = scmp.eq.s32.totalorder %s8943_s27, 0  ;;  %p187_p2 = scmp.lt.s32.totalorder %s8870_s24, 3 }
   0xb   : > { %s8873_s30 = smov [#allocation8]   ;;  %s8874_s8 = smov [#allocation7]  }
   0xc   : > { %p8950_p3 = pnand %p7256_p0, %p187_p2  ;;  %s225_s7 = sshll.u32 %s8873_s30, 4  ;;  %s8963_s7 = int_to_ptr.vmem [resolvable:$true] %s225_s7 }
   0xd   : > { %s8965_s9 = sshll.u32 %s8874_s8, 4  ;;  %s8622_s12 = scalar_lea.hbm %s11465_s1, 2048  ;;  %s213_s9 = int_to_ptr.vmem [resolvable:$true] %s8965_s9 }
   0xe   : > { %s11626_s28 = scalar_select %p8950_p3, 1, 0 }
   0xf   : > { %p8107_p5 = pneg %p8950_p3  ;;  %p8623_p7 = scmp.ne.s32.totalorder %s11465_s1, %s8622_s12 }
  0x10   : > { %p8629_p11 = scmp.lt.u32.totalorder %s8622_s12, %s11465_s1 }
  0x11   : > { %p8959_p6 = pnand %p8107_p5, %p11471_p1 }
  0x13   : > { %p8975_p8 = pneg %p8959_p6 }
  0x15   : > { %p8625_p9 = pnand %p8975_p8, %p8623_p7 }
  0x17   : > { %p8626_p10 = pneg %p8625_p9 }
  0x19   : > { %p8631_p12 = pnand %p8629_p11, %p8626_p10 }
  0x1b   : > { %8634 = shalt.err (!%p8631_p12)
}
  0x1c   : > { %s8635_s18 = scalar_lea.vmem %s8948_s26, 2048  ;;  %p8643_p5 = scmp.lt.s32.totalorder %s8948_s26, %s8948_s26 }
  0x1d   : > { %p8636_p13 = scmp.ne.s32.totalorder %s8948_s26, %s8635_s18  ;;  %p8644_p4 = scmp.lt.s32.totalorder %s8635_s18, %s8635_s18 }
  0x1f   : > { %p8638_p0 = pnand %p8636_p13, %p8975_p8  ;;  %p8645_p7 = por %p8644_p4, %p8643_p5 }
  0x21   : > { %p8639_p2 = pneg %p8638_p0 }
  0x23   : > { %p8646_p9 = pnand %p8645_p7, %p8639_p2 }
  0x25   : > { %8649 = shalt.err (!%p8646_p9)
}
  0x26   : > { %s11473_s19 = smov 128   ;;  %s8876_s20 = smov 8  }
  0x27   : > { %8110 = dma.hbm_to_vmem [thread:$0]  (!%p8959_p6), %s11465_s1, 2048, %s8948_s26, [#allocation6], %s11473_s19, %s11473_s19, %s8876_s20  }
  0x28   : > { %s8650_s11 = scalar_lea.hbm %s11467_s3, 16384 }
  0x29   : > { %p8651_p4 = scmp.ne.s32.totalorder %s11467_s3, %s8650_s11  ;;  %p8657_p12 = scmp.lt.u32.totalorder %s8650_s11, %s11467_s3 }
  0x2b   : > { %p8653_p10 = pnand %p8651_p4, %p8975_p8 }
  0x2d   : > { %p8654_p11 = pneg %p8653_p10 }
  0x2f   : > { %p8659_p13 = pnand %p8657_p12, %p8654_p11 }
  0x31   : > { %8662 = shalt.err (!%p8659_p13)
}
  0x32   : > { %s8663_s26 = scalar_lea.vmem %s8963_s7, 16384  ;;  %p8671_p7 = scmp.lt.s32.totalorder %s8963_s7, %s8963_s7 }
  0x33   : > { %p8664_p0 = scmp.ne.s32.totalorder %s8963_s7, %s8663_s26  ;;  %p8672_p9 = scmp.lt.s32.totalorder %s8663_s26, %s8663_s26 }
  0x35   : > { %p8666_p2 = pnand %p8664_p0, %p8975_p8  ;;  %p8673_p4 = por %p8672_p9, %p8671_p7 }
  0x37   : > { %p8667_p5 = pneg %p8666_p2 }
  0x39   : > { %p8674_p10 = pnand %p8673_p4, %p8667_p5 }
  0x3b   : > { %8677 = shalt.err (!%p8674_p10)
}
  0x3c   : > { %s8877_s17 = smov 1024   ;;  %s8878_s18 = smov 64  }
  0x3d   : > { %8116 = dma.hbm_to_vmem [thread:$0]  (!%p8959_p6), %s11467_s3, 16384, %s8963_s7, [#allocation9], %s8877_s17, %s8877_s17, %s8878_s18  }
  0x3e   : > { %s8678_s11 = scalar_lea.hbm %s11466_s2, 16384 }
  0x3f   : > { %p8679_p11 = scmp.ne.s32.totalorder %s11466_s2, %s8678_s11  ;;  %p8685_p0 = scmp.lt.u32.totalorder %s8678_s11, %s11466_s2 }
  0x41   : > { %p8681_p12 = pnand %p8679_p11, %p8975_p8 }
  0x43   : > { %p8682_p13 = pneg %p8681_p12 }
  0x45   : > { %p8687_p2 = pnand %p8685_p0, %p8682_p13 }
  0x47   : > { %8690 = shalt.err (!%p8687_p2)
}
  0x48   : > { %s8691_s26 = scalar_lea.vmem %s213_s9, 16384  ;;  %p8699_p4 = scmp.lt.s32.totalorder %s213_s9, %s213_s9 }
  0x49   : > { %p8692_p5 = scmp.ne.s32.totalorder %s213_s9, %s8691_s26  ;;  %p8700_p10 = scmp.lt.s32.totalorder %s8691_s26, %s8691_s26 }
  0x4b   : > { %p8694_p7 = pnand %p8692_p5, %p8975_p8  ;;  %p8701_p1 = por %p8700_p10, %p8699_p4 }
  0x4d   : > { %p8695_p9 = pneg %p8694_p7 }
  0x4f   : > { %p8702_p3 = pnand %p8701_p1, %p8695_p9 }
  0x51   : > { %8705 = shalt.err (!%p8702_p3)
}
  0x52   : > { %8113 = dma.hbm_to_vmem [thread:$0]  (!%p8959_p6), %s11466_s2, 16384, %s213_s9, [#allocation6], %s8877_s17, %s8877_s17, %s8878_s18  }
  0x53   : > { %s8879_s30 = smov [#allocation10]   ;;  %s8880_s10 = smov [#allocation11]  }
  0x54   : > { %s238_s8 = sshll.u32 %s8879_s30, 4  ;;  %s251_s11 = sshll.u32 %s8880_s10, 4  ;;  %s239_s8 = int_to_ptr.vmem [resolvable:$true] %s238_s8  ;;  %s252_s11 = int_to_ptr.vmem [resolvable:$true] %s251_s11 }
  0x55   : > { %s8706_s14 = scalar_lea.hbm %s11468_s4, 32768 }
  0x56   : > { %p8707_p1 = scmp.ne.s32.totalorder %s11468_s4, %s8706_s14  ;;  %p8713_p12 = scmp.lt.u32.totalorder %s8706_s14, %s11468_s4 }
  0x58   : > { %p8709_p3 = pnand %p8707_p1, %p8975_p8 }
  0x5a   : > { %p8710_p11 = pneg %p8709_p3 }
  0x5c   : > { %p8715_p13 = pnand %p8713_p12, %p8710_p11 }
  0x5e   : > { %8718 = shalt.err (!%p8715_p13)
}
  0x5f   : > { %s8719_s9 = scalar_lea.vmem %s239_s8, 32768  ;;  %p8727_p7 = scmp.lt.s32.totalorder %s239_s8, %s239_s8 }
  0x60   : > { %p8720_p0 = scmp.ne.s32.totalorder %s239_s8, %s8719_s9  ;;  %p8728_p9 = scmp.lt.s32.totalorder %s8719_s9, %s8719_s9 }
  0x62   : > { %p8722_p2 = pnand %p8720_p0, %p8975_p8  ;;  %p8729_p4 = por %p8728_p9, %p8727_p7 }
  0x64   : > { %p8723_p5 = pneg %p8722_p2 }
  0x66   : > { %p8730_p10 = pnand %p8729_p4, %p8723_p5 }
  0x68   : > { %8733 = shalt.err (!%p8730_p10)
}
  0x69   : > { %s11629_s17 = smov 128   ;;  %s8734_s10 = scalar_lea.hbm %s11469_s5, 2048 }
  0x6a   : > { %8119 = dma.hbm_to_vmem [thread:$0]  (!%p8959_p6), %s11468_s4, 32768, %s239_s8, [#allocation9], %s11629_s17, %s11629_s17, %s8876_s20  }
  0x6b   : > { %p8735_p1 = scmp.ne.s32.totalorder %s11469_s5, %s8734_s10  ;;  %p8741_p12 = scmp.lt.u32.totalorder %s8734_s10, %s11469_s5 }
  0x6d   : > { %p8737_p3 = pnand %p8735_p1, %p8975_p8 }
  0x6f   : > { %p8738_p11 = pneg %p8737_p3 }
  0x71   : > { %p8743_p13 = pnand %p8741_p12, %p8738_p11 }
  0x73   : > { %8746 = shalt.err (!%p8743_p13)
}
  0x74   : > { %s8747_s26 = scalar_lea.vmem %s252_s11, 2048  ;;  %p8755_p7 = scmp.lt.s32.totalorder %s252_s11, %s252_s11 }
  0x75   : > { %p8748_p0 = scmp.ne.s32.totalorder %s252_s11, %s8747_s26  ;;  %p8756_p9 = scmp.lt.s32.totalorder %s8747_s26, %s8747_s26 }
  0x77   : > { %p8750_p2 = pnand %p8748_p0, %p8975_p8  ;;  %p8757_p4 = por %p8756_p9, %p8755_p7 }
  0x79   : > { %p8751_p5 = pneg %p8750_p2 }
  0x7b   : > { %p8758_p10 = pnand %p8757_p4, %p8751_p5 }
  0x7d   : > { %8761 = shalt.err (!%p8758_p10)
}
  0x7e   : > { %8122 = dma.hbm_to_vmem [thread:$0]  (!%p8959_p6), %s11469_s5, 2048, %s252_s11, [#allocation12], %s11629_s17, %s11629_s17, %s8876_s20  }
  0x7f   : > { %s7255_s29 = sadd.s32 4294967294, %s8870_s24   ;;  %s9085_s15 = sadd.s32 1, %s8870_s24  }
  0x80   : > { %s32_s9 = sadd.s32 1, %s8866_s23  ;;  %s29_s19 = ssub.s32 %s8870_s24, %s9085_s15 }
  0x81   : > { %p39_p8 = scmp.ne.s32.totalorder %s8866_s23, %s8862_s22  ;;  %p30_p1 = scmp.eq.s32.totalorder %s29_s19, 0 }
  0x82   : > { %p40_p3 = scmp.eq.s32.totalorder %s8870_s24, 0  ;;  %p45_p11 = scmp.ne.s32.totalorder %s8862_s22, %s8858_s21 }
  0x83   : > { %p174_p12 = scmp.eq.s32.totalorder %s8943_s27, 1  ;;  %p11630_p0 = scmp.eq.s32.totalorder %s8943_s27, 0 }
  0x84   : > { %s9097_s18 = scalar_select %p30_p1, %s8866_s23, %s32_s9  }
  0x85   : > { %p41_p13 = por %p40_p3, %p39_p8  ;;  %p9101_p2 = por %p11630_p0, %p45_p11 }
  0x86   : > { %p9105_p6 = por %p174_p12, %p39_p8  ;;  %p180_p5 = scmp.eq.s32.totalorder %s7255_s29, 1 }
  0x87   : > { %p8136_p7 = scmp.lt.s32.totalorder %s8870_s24, 2  ;;  %s265_s30 = sand.u32 1, %s8866_s23  }
  0x88   : > { %s11632_s11 = scalar_select %p9105_p6, 1, 0 }
  0x89   : > { %p9111_p9 = por %p180_p5, %p45_p11  ;;  %s7263_s12 = sshll.u32 %s265_s30, 7 }
  0x8a   : > { %s7824_s13 = sshll.u32 %s8870_s24, 11  ;;  %s269_s8 = scalar_lea.vmem [#allocation2], %s7263_s12 }
  0x8b   : > { %s11633_s10 = scalar_select %p9111_p9, 1, 0 }
  0x8c   : > { %s9119_s26 = scalar_lea.hbm %s11464_s0, %s7824_s13  ;;  %s276_s7 = sshll.u32 %s269_s8, 4  ;;  %s9125_s7 = int_to_ptr.vmem [resolvable:$true] %s276_s7 }
  0x8d   : > { %p9121_p4 = pnand %p8136_p7, %p41_p13  ;;  %s9127_s9 = scalar_lea.sflag [#allocation3], %s265_s30 }
  0x8e   : > { %s8762_s19 = scalar_lea.hbm %s9119_s26, 2048  ;;  %s8767_s14 = scalar_lea.hbm %s11464_s0, 4096 }
  0x8f   : > { %p8763_p10 = scmp.ne.s32.totalorder %s9119_s26, %s8762_s19  ;;  %p8764_p8 = pneg %p9121_p4 }
  0x90   : > { %p8768_p11 = scmp.lt.u32.totalorder %s9119_s26, %s11464_s0  ;;  %p8769_p12 = scmp.lt.u32.totalorder %s8767_s14, %s8762_s19 }
  0x91   : > { %p8765_p1 = pnand %p8764_p8, %p8763_p10  ;;  %p8771_p0 = scmp.lt.u32.totalorder %s8762_s19, %s9119_s26 }
  0x92   : > { %p8770_p13 = por %p8769_p12, %p8768_p11 }
  0x93   : > { %p8766_p3 = pneg %p8765_p1 }
  0x94   : > { %p8772_p5 = por %p8771_p0, %p8770_p13 }
  0x96   : > { %p8773_p7 = pnand %p8772_p5, %p8766_p3 }
  0x98   : > { %8776 = shalt.err (!%p8773_p7)
}
  0x99   : > { %s8777_s30 = scalar_lea.vmem %s9125_s7, 2048  ;;  %s8881_s12 = smov [#allocation2]  }
  0x9a   : > { %p8778_p10 = scmp.ne.s32.totalorder %s9125_s7, %s8777_s30  ;;  %s8782_s13 = sshll.u32 %s8881_s12, 4  ;;  %s8783_s13 = int_to_ptr.vmem [resolvable:$false] %s8782_s13 }
  0x9b   : > { %s8784_s16 = scalar_lea.vmem %s8783_s13, 4096  ;;  %p8785_p6 = scmp.lt.s32.totalorder %s9125_s7, %s8783_s13 }
  0x9c   : > { %p8780_p1 = pnand %p8778_p10, %p8764_p8  ;;  %p8786_p11 = scmp.lt.s32.totalorder %s8784_s16, %s8777_s30 }
  0x9e   : > { %p8781_p9 = pneg %p8780_p1  ;;  %p8787_p12 = por %p8786_p11, %p8785_p6 }
  0xa0   : > { %p8788_p13 = pnand %p8787_p12, %p8781_p9 }
  0xa2   : > { %8791 = shalt.err (!%p8788_p13)
}
  0xa3   : > { %8126 = dma.hbm_to_vmem [thread:$0]  (!%p9121_p4), %s9119_s26, 2048, %s9125_s7, %s9127_s9, %s11629_s17, %s11629_s17, %s8876_s20  }
  0xa4   : > { %p11635_p8 = scmp.ne.s32.totalorder %s11626_s28, 0 }
  0xa6   : > { %288 = sbr.rel (%p11635_p8) target bundleno = 1842 (0x732), region = 44 }
  0xad   : > { %s9161_s19 = sand.u32 1, %s8862_s22  }
  0xae   : > { %s7267_s14 = sshll.u32 %s9161_s19, 7  ;;  %s291_s8 = scalar_lea.sflag [#allocation3], %s9161_s19 }
  0xaf   : > { %s9165_s30 = scalar_lea.vmem [#allocation2], %s7267_s14 }
  0xb0   : > { %8837 = dma.done.wait (%p9101_p2), %s291_s8, 2048  }
  0xb1   : > { %8839 = vsyncadd (%p9101_p2), %s291_s8, 4294965248  ;;  %p11636_p6 = scmp.eq.s32.totalorder %s8943_s27, 0 }
  0xb3   : > { %8841 = dma.done.wait (%p11636_p6), [#allocation6], 18432   ;;  %p11637_p9 = pmov %p11636_p6 }
  0xb4   : > { %p11638_p4 = pmov %p11636_p6 }
  0xb5   : > { %8843 = vsyncadd (%p11637_p9), [#allocation6], 4294948864 }
  0xb6   : > { %8845 = dma.done.wait (%p11638_p4), [#allocation9], 49152   ;;  %p11639_p3 = pmov %p11638_p4 }
  0xb8   : > { %8847 = vsyncadd (%p11639_p3), [#allocation9], 4294918144  ;;  %p11640_p0 = pmov %p11639_p3 }
  0xba   : > { %8849 = dma.done.wait (%p11640_p0), [#allocation12], 2048   ;;  %p11641_p5 = pmov %p11640_p0 }
  0xbb   : > { %v11476_v0 = vmov 0   ;;  %v8883_v1 = vmov 71   ;;  %v8190_v2 = vld [vmem:[#allocation5 + $0x4] ss:$8 sps:$4 sm:$0xff]   ;;  %v8192_v3 = vld [vmem:[#allocation5] ss:$8 sps:$4 sm:$0xff]  }
  0xbc   : > { %8851 = vsyncadd (%p11641_p5), [#allocation12], 4294965248  ;;  %498 = vmatprep.mubr.bf16.mxu0 %v11476_v0  ;;  %8188 = vset.pattern.permute.xlu0 %v8883_v1  ;;  %v8193_v4 = vld [vmem:[#allocation5 + $0x14] ss:$8 sps:$4 sm:$0xff]   ;;  %v8195_v5 = vld [vmem:[#allocation5 + $0x10] ss:$8 sps:$4 sm:$0xff]  }
  0xbd   : > { %8189 = vset.pattern.permute.xlu1 %v8883_v1  ;;  %3182 = vmatprep.mubr.bf16.mxu1 %v11476_v0  ;;  %v8196_v6 = vld [vmem:[#allocation5 + $0x24] ss:$8 sps:$4 sm:$0xff]   ;;  %v8198_v7 = vld [vmem:[#allocation5 + $0x20] ss:$8 sps:$4 sm:$0xff]   ;;  %v8199_v8 = vld [vmem:[#allocation5 + $0x34] ss:$8 sps:$4 sm:$0xff]  }
  0xbe   : > { %466 = vmatprep.subr.bf16.mxu0 %v8190_v2  ;;  %v9186_v9 = vld [vmem:[%s9165_s30] sm:$0xff]  ;;  %v8201_v10 = vld [vmem:[#allocation5 + $0x30] ss:$8 sps:$4 sm:$0xff]   ;;  %v347_v13 = vld [vmem:[%s9165_s30 + $0x8] sm:$0xff]  ;;  %s7273_s28 = sshll.u32 %s9161_s19, 8  ;;  %s7826_s17 = sshll.u32 %s8943_s27, 12 }
  0xbf   : > { %467 = vmatpush1.bf16.msra.mxu0 %v8192_v3  ;;  %v9189_v11 = vld [vmem:[%s9165_s30 + $0x10] sm:$0xff]  ;;  %584 = vperm.xlu0 %8188, %v9186_v9   ;;  %v8202_v12 = vld [vmem:[#allocation5 + $0x44] ss:$8 sps:$4 sm:$0xff]   ;;  %v8204_v14 = vld [vmem:[#allocation5 + $0x40] ss:$8 sps:$4 sm:$0xff]   ;;  %v9226_v48 = vpack.c.bf16 %v347_v13, %v9186_v9  ;;  %s11379_s20 = scalar_lea.vmem [#allocation13], %s7273_s28  ;;  %s11415_s29 = scalar_lea.hbm %s11470_s6, %s7826_s17 }
  0xc0   : > { %468 = vmatprep.subr.bf16.mxu0 %v8193_v4  ;;  %594 = vperm.xlu1 %8189, %v9189_v11   ;;  %v9195_v15 = vld [vmem:[%s9165_s30 + $0x18] sm:$0xff]  ;;  %v8208_v18 = vld [vmem:[#allocation5 + $0x64] ss:$8 sps:$4 sm:$0xff]   ;;  %v9206_v23 = vld [vmem:[%s9165_s30 + $0x30] sm:$0xff]  ;;  %s7134_s25 = sshll.u32 %s11379_s20, 4  ;;  %s7120_s27 = scalar_lea.sflag [#allocation4], %s9161_s19  ;;  %s11417_s25 = int_to_ptr.vmem [resolvable:$true] %s7134_s25 }
  0xc1   : > { %v8205_v16 = vld [vmem:[#allocation5 + $0x54] ss:$8 sps:$4 sm:$0xff]   ;;  %v8207_v17 = vld [vmem:[#allocation5 + $0x50] ss:$8 sps:$4 sm:$0xff]   ;;  %v9199_v19 = vld [vmem:[%s9165_s30 + $0x20] sm:$0xff]  ;;  %s8792_s9 = scalar_lea.vmem %s11417_s25, 4096 }
  0xc2   : > { %v9202_v20 = vld [vmem:[%s9165_s30 + $0x28] sm:$0xff]  ;;  %v2382_v21 = vld [vmem:[#allocation8] sm:$0xff]  ;;  %v9210_v28 = vld [vmem:[%s9165_s30 + $0x38] sm:$0xff]  ;;  %p8793_p2 = scmp.ne.s32.totalorder %s11417_s25, %s8792_s9  ;;  %p12289_p7 = scmp.ne.s32.totalorder %s11632_s11, 0 }
  0xc3   : > { %469 = vmatpush1.bf16.msra.mxu0 %v8195_v5  ;;  %589 = vperm.xlu0 %8188, %v347_v13   ;;  %v2390_v22 = vld [vmem:[#allocation8 + $0x40] sm:$0xff]  ;;  %v8211_v30 = vld [vmem:[#allocation5 + $0x74] ss:$8 sps:$4 sm:$0xff]   ;;  %v8213_v37 = vld [vmem:[#allocation5 + $0x70] ss:$8 sps:$4 sm:$0xff]   ;;  %s8884_s12 = smov [#allocation13]  }
  0xc4   : > { %470 = vmatprep.subr.bf16.mxu0 %v8196_v6  ;;  %599 = vperm.xlu1 %8189, %v9195_v15   ;;  %v7419_v24 = vcombine.high %v2382_v21, %v2390_v22  ;;  %v2398_v25 = vld [vmem:[#allocation8 + $0x80] sm:$0xff]  ;;  %v7418_v29 = vcombine.low %v2382_v21, %v2390_v22  ;;  %v9218_v38 = vld [vmem:[%s9165_s30 + $0x48] sm:$0xff]  ;;  %v9222_v43 = vld [vmem:[%s9165_s30 + $0x50] sm:$0xff]  ;;  %v9248_v6 = vpack.c.bf16 %v9195_v15, %v9189_v11  ;;  %p8794_p10 = pnand %p8793_p2, %p12289_p7  ;;  %s8796_s13 = sshll.u32 %s8884_s12, 4  ;;  %s8797_s13 = int_to_ptr.vmem [resolvable:$false] %s8796_s13 }
  0xc5   : > { %v2406_v26 = vld [vmem:[#allocation8 + $0xc0] sm:$0xff]  ;;  %v9229_v50 = vld [vmem:[%s9165_s30 + $0x58] sm:$0xff]  ;;  %v9237_v57 = vld [vmem:[%s9165_s30 + $0x68] sm:$0xff]  ;;  %s8798_s16 = scalar_lea.vmem %s8797_s13, 8192  ;;  %p8799_p11 = scmp.lt.s32.totalorder %s11417_s25, %s8797_s13 }
  0xc6   : > { %v8210_v27 = vld [vmem:[#allocation5 + $0x60] ss:$8 sps:$4 sm:$0xff]   ;;  %3150 = vmatprep.subr.bf16.mxu1 %v7419_v24  ;;  %v7435_v31 = vcombine.high %v2398_v25, %v2406_v26  ;;  %v7434_v39 = vcombine.low %v2398_v25, %v2406_v26  ;;  %v9243_v63 = vld [vmem:[%s9165_s30 + $0x70] sm:$0xff]  ;;  %v9256_v25 = vpack.c.bf16 %v9202_v20, %v9199_v19  ;;  %p8795_p1 = pneg %p8794_p10  ;;  %p8800_p12 = scmp.lt.s32.totalorder %s8798_s16, %s8792_s9 }
  0xc7   : > { %471 = vmatpush1.bf16.msra.mxu0 %v8198_v7  ;;  %604 = vperm.xlu0 %8188, %v9199_v19   ;;  %v702_v32 = vld [vmem:[#allocation7] sm:$0xff]  ;;  %v9262_v19 = vpack.c.bf16 %v9210_v28, %v9206_v23 }
  0xc8   : > { %472 = vmatprep.subr.bf16.mxu0 %v8199_v8  ;;  %609 = vperm.xlu1 %8189, %v9202_v20   ;;  %v710_v33 = vld [vmem:[#allocation7 + $0x40] sm:$0xff]  ;;  %v361_v8 = vld [vmem:[%s9165_s30 + $0x78] sm:$0xff]  ;;  %p8801_p13 = por %p8800_p12, %p8799_p11 }
  0xc9   : > { %v2414_v34 = vld [vmem:[#allocation8 + $0x100] sm:$0xff]  ;;  %3151 = vmatpush1.bf16.msra.mxu1 %v7418_v29  ;;  %v7291_v44 = vcombine.high %v702_v32, %v710_v33  ;;  %v7290_v53 = vcombine.low %v702_v32, %v710_v33 }
  0xca   : > { %v9214_v35 = vld [vmem:[%s9165_s30 + $0x40] sm:$0xff]  ;;  %3152 = vmatprep.subr.bf16.mxu1 %v7435_v31  ;;  %p8802_p8 = pnand %p8801_p13, %p8795_p1 }
  0xcb   : > { %473 = vmatpush1.bf16.msra.mxu0 %v8201_v10  ;;  %614 = vperm.xlu0 %8188, %v9206_v23   ;;  %v2422_v36 = vld [vmem:[#allocation8 + $0x140] sm:$0xff]  ;;  %v9274_v23 = vpack.c.bf16 %v9229_v50, %v9222_v43 }
  0xcc   : > { %474 = vmatprep.subr.bf16.mxu0 %v8202_v12  ;;  %619 = vperm.xlu1 %8189, %v9210_v28   ;;  %v7451_v40 = vcombine.high %v2414_v34, %v2422_v36  ;;  %v2430_v41 = vld [vmem:[#allocation8 + $0x180] sm:$0xff]  ;;  %v7450_v47 = vcombine.low %v2414_v34, %v2422_v36 }
  0xcd   : > { %v2438_v42 = vld [vmem:[#allocation8 + $0x1c0] sm:$0xff]  ;;  %3153 = vmatpush1.bf16.msra.mxu1 %v7434_v39  ;;  %v9268_v39 = vpack.c.bf16 %v9218_v38, %v9214_v35 }
  0xce   : > { %v718_v45 = vld [vmem:[#allocation7 + $0x80] sm:$0xff]  ;;  %3154 = vmatprep.subr.bf16.mxu1 %v7451_v40  ;;  %v7467_v49 = vcombine.high %v2430_v41, %v2438_v42  ;;  %v7466_v59 = vcombine.low %v2430_v41, %v2438_v42 }
  0xcf   : > { %475 = vmatpush1.bf16.msra.mxu0 %v8204_v14  ;;  %624 = vperm.xlu0 %8188, %v9214_v35   ;;  %v726_v46 = vld [vmem:[#allocation7 + $0xc0] sm:$0xff]  ;;  %v9285_v35 = vpack.c.bf16 %v361_v8, %v9243_v63 }
  0xd0   : > { %476 = vmatprep.subr.bf16.mxu0 %v8205_v16  ;;  %629 = vperm.xlu1 %8189, %v9218_v38   ;;  %v2446_v51 = vld [vmem:[#allocation8 + $0x200] sm:$0xff]  ;;  %v7307_v58 = vcombine.high %v718_v45, %v726_v46  ;;  %v7306_v1 = vcombine.low %v718_v45, %v726_v46 }
  0xd1   : > { %v9233_v52 = vld [vmem:[%s9165_s30 + $0x60] sm:$0xff]  ;;  %3155 = vmatpush1.bf16.msra.mxu1 %v7450_v47  ;;  %v2384_v47 = vld [vmem:[#allocation8 + $0x10] sm:$0xff] }
  0xd2   : > { %v734_v54 = vld [vmem:[#allocation7 + $0x100] sm:$0xff]  ;;  %3156 = vmatprep.subr.bf16.mxu1 %v7467_v49  ;;  %v9280_v28 = vpack.c.bf16 %v9237_v57, %v9233_v52  ;;  %v2392_v49 = vld [vmem:[#allocation8 + $0x50] sm:$0xff] }
  0xd3   : > { %477 = vmatpush1.bf16.msra.mxu0 %v8207_v17  ;;  %634 = vperm.xlu0 %8188, %v9222_v43   ;;  %v742_v55 = vld [vmem:[#allocation7 + $0x140] sm:$0xff]  ;;  %v703_v43 = vld [vmem:[#allocation7 + $0x8] sm:$0xff] }
  0xd4   : > { %478 = vmatprep.subr.bf16.mxu0 %v8208_v18  ;;  %639 = vperm.xlu1 %8189, %v9229_v50   ;;  %v2454_v56 = vld [vmem:[#allocation8 + $0x240] sm:$0xff]  ;;  %v7323_v4 = vcombine.high %v734_v54, %v742_v55  ;;  %v7322_v10 = vcombine.low %v734_v54, %v742_v55  ;;  %v7423_v50 = vcombine.high %v2384_v47, %v2392_v49 }
  0xd5   : > { %v7483_v60 = vcombine.high %v2446_v51, %v2454_v56  ;;  %v2462_v61 = vld [vmem:[#allocation8 + $0x280] sm:$0xff]  ;;  %3157 = vmatpush1.bf16.msra.mxu1 %v7466_v59  ;;  %v7482_v5 = vcombine.low %v2446_v51, %v2454_v56  ;;  %v7422_v51 = vcombine.low %v2384_v47, %v2392_v49  ;;  %v2456_v47 = vld [vmem:[#allocation8 + $0x250] sm:$0xff] }
  0xd6   : > { %v2470_v62 = vld [vmem:[#allocation8 + $0x2c0] sm:$0xff] }
  0xd7   : > { %479 = vmatpush1.bf16.msra.mxu0 %v8210_v27  ;;  %644 = vperm.xlu0 %8188, %v9233_v52   ;;  %v750_v2 = vld [vmem:[#allocation7 + $0x180] sm:$0xff]  ;;  %v7499_v7 = vcombine.high %v2462_v61, %v2470_v62  ;;  %v7498_v17 = vcombine.low %v2462_v61, %v2470_v62  ;;  %v579_v52 = vlaneseq  ;;  %v719_v61 = vld [vmem:[#allocation7 + $0x88] sm:$0xff] }
  0xd8   : > { %480 = vmatprep.subr.bf16.mxu0 %v8211_v30  ;;  %649 = vperm.xlu1 %8189, %v9237_v57   ;;  %v758_v3 = vld [vmem:[#allocation7 + $0x1c0] sm:$0xff]  ;;  %v727_v62 = vld [vmem:[#allocation7 + $0xc8] sm:$0xff] }
  0xd9   : > { %3158 = vmatprep.subr.bf16.mxu1 %v7483_v60  ;;  %v2478_v9 = vld [vmem:[#allocation8 + $0x300] sm:$0xff]  ;;  %v7339_v16 = vcombine.high %v750_v2, %v758_v3  ;;  %v7338_v15 = vcombine.low %v750_v2, %v758_v3 }
  0xda   : > { %v766_v12 = vld [vmem:[#allocation7 + $0x200] sm:$0xff]  ;;  %3159 = vmatpush1.bf16.msra.mxu1 %v7482_v5  ;;  %v2408_v5 = vld [vmem:[#allocation8 + $0xd0] sm:$0xff] }
  0xdb   : > { %481 = vmatpush1.bf16.msra.mxu0 %v8213_v37  ;;  %654 = vperm.xlu0 %8188, %v9243_v63   ;;  %v774_v13 = vld [vmem:[#allocation7 + $0x240] sm:$0xff] }
  0xdc   : > { %1470 = vmatprep.subr.bf16.mxu0 %v7291_v44  ;;  %659 = vperm.xlu1 %8189, %v361_v8   ;;  %v2486_v14 = vld [vmem:[#allocation8 + $0x340] sm:$0xff]  ;;  %v7355_v22 = vcombine.high %v766_v12, %v774_v13  ;;  %v7354_v26 = vcombine.low %v766_v12, %v774_v13  ;;  %v711_v44 = vld [vmem:[#allocation7 + $0x48] sm:$0xff] }
  0xdd   : > { %3160 = vmatprep.subr.bf16.mxu1 %v7499_v7  ;;  %v7515_v11 = vcombine.high %v2478_v9, %v2486_v14  ;;  %v782_v18 = vld [vmem:[#allocation7 + $0x280] sm:$0xff]  ;;  %v7514_v24 = vcombine.low %v2478_v9, %v2486_v14  ;;  %v7292_v45 = vcombine.low %v703_v43, %v711_v44  ;;  %v7293_v46 = vcombine.high %v703_v43, %v711_v44  ;;  %v743_v12 = vld [vmem:[#allocation7 + $0x148] sm:$0xff]  ;;  %v2416_v14 = vld [vmem:[#allocation8 + $0x110] sm:$0xff] }
  0xde   : > { %499 = vmatmul.mubr.bf16.vlgmr.msra.gmra.mrb[0].mxu0 %v9226_v48  ;;  %v790_v21 = vld [vmem:[#allocation7 + $0x2c0] sm:$0xff]  ;;  %3161 = vmatpush1.bf16.msra.mxu1 %v7498_v17  ;;  %v7309_v9 = vcombine.high %v719_v61, %v727_v62  ;;  %v767_v43 = vld [vmem:[#allocation7 + $0x208] sm:$0xff] }
  0xdf   : > { %508 = vmatprep.mubr.bf16.mxu0 %v11476_v0  ;;  %1471 = vmatpush1.bf16.msra.mxu0 %v7290_v53  ;;  %v798_v27 = vld [vmem:[#allocation7 + $0x300] sm:$0xff]  ;;  %v7371_v30 = vcombine.high %v782_v18, %v790_v21  ;;  %v7370_v31 = vcombine.low %v782_v18, %v790_v21  ;;  %v9289_v53 = vand.u32 127, %v579_v52  ;;  %v775_v44 = vld [vmem:[#allocation7 + $0x248] sm:$0xff] }
  0xe0   : > { %1472 = vmatprep.subr.bf16.mxu0 %v7307_v58  ;;  %3162 = vmatprep.subr.bf16.mxu1 %v7515_v11  ;;  %v806_v29 = vld [vmem:[#allocation7 + $0x340] sm:$0xff]  ;;  %v7308_v11 = vcombine.low %v719_v61, %v727_v62  ;;  %v791_v61 = vld [vmem:[#allocation7 + $0x2c8] sm:$0xff] }
  0xe1   : > { %v814_v32 = vld [vmem:[#allocation7 + $0x380] sm:$0xff]  ;;  %v7387_v34 = vcombine.high %v798_v27, %v806_v29  ;;  %v7386_v20 = vcombine.low %v798_v27, %v806_v29  ;;  %vm581_vm0 = vcmp.ge.s32.totalorder %v9289_v53, 64  ;;  %v751_v29 = vld [vmem:[#allocation7 + $0x188] sm:$0xff] }
  0xe2   : > { %3163 = vmatpush1.bf16.msra.mxu1 %v7514_v24  ;;  %v822_v33 = vld [vmem:[#allocation7 + $0x3c0] sm:$0xff] }
  0xe3   : > { %1473 = vmatpush1.bf16.msra.mxu0 %v7306_v1  ;;  %v7403_v36 = vcombine.high %v814_v32, %v822_v33  ;;  %v7402_v37 = vcombine.low %v814_v32, %v822_v33  ;;  %v2494_v38 = vld [vmem:[#allocation8 + $0x380] sm:$0xff] }
  0xe4   : > { %1474 = vmatprep.subr.bf16.mxu0 %v7323_v4  ;;  %v2502_v40 = vld [vmem:[#allocation8 + $0x3c0] sm:$0xff]  ;;  %v2400_v4 = vld [vmem:[#allocation8 + $0x90] sm:$0xff] }
  0xe5   : > { %v7531_v41 = vcombine.high %v2494_v38, %v2502_v40  ;;  %v7530_v42 = vcombine.low %v2494_v38, %v2502_v40  ;;  %v7439_v13 = vcombine.high %v2400_v4, %v2408_v5  ;;  %v2402_v53 = vld [vmem:[#allocation8 + $0xa0] sm:$0xff] }
  0xe6   : > { %509 = vmatmul.mubr.bf16.gmra.mrb[4].mxu0 %v9248_v6 }
  0xe7   : > { %518 = vmatprep.mubr.bf16.mxu0 %v11476_v0  ;;  %1475 = vmatpush1.bf16.msra.mxu0 %v7322_v10  ;;  %v735_v10 = vld [vmem:[#allocation7 + $0x108] sm:$0xff] }
  0xe8   : > { %1476 = vmatprep.subr.bf16.mxu0 %v7339_v16  ;;  %3164 = vmatprep.subr.bf16.mxu1 %v7531_v41  ;;  %v2424_v16 = vld [vmem:[#allocation8 + $0x150] sm:$0xff]  ;;  %v7325_v21 = vcombine.high %v735_v10, %v743_v12  ;;  %v7324_v38 = vcombine.low %v735_v10, %v743_v12 }
  0xe9   : > { %3165 = vmatpush1.bf16.msra.mxu1 %v7530_v42  ;;  %v7454_v42 = vcombine.low %v2416_v14, %v2424_v16 }
  0xea   : > { %3376 = vmatprep.subr.bf16.mxu1 %v7423_v50 }
  0xeb   : > { %1477 = vmatpush1.bf16.msra.mxu0 %v7338_v15 }
  0xec   : > { %1478 = vmatprep.subr.bf16.mxu0 %v7355_v22  ;;  %v7438_v22 = vcombine.low %v2400_v4, %v2408_v5  ;;  %v2472_v4 = vld [vmem:[#allocation8 + $0x2d0] sm:$0xff] }
  0xee   : > { %519 = vmatmul.mubr.bf16.gmra.mrb[8].mxu0 %v9256_v25 }
  0xef   : > { %528 = vmatprep.mubr.bf16.mxu0 %v11476_v0  ;;  %1479 = vmatpush1.bf16.msra.mxu0 %v7354_v26 }
  0xf0   : > { %1480 = vmatprep.subr.bf16.mxu0 %v7371_v30  ;;  %v759_v30 = vld [vmem:[#allocation7 + $0x1c8] sm:$0xff] }
  0xf1   : > { %v7341_v41 = vcombine.high %v751_v29, %v759_v30 }
  0xf3   : > { %1481 = vmatpush1.bf16.msra.mxu0 %v7370_v31  ;;  %v7455_v31 = vcombine.high %v2416_v14, %v2424_v16  ;;  %v799_v14 = vld [vmem:[#allocation7 + $0x308] sm:$0xff] }
  0xf4   : > { %1482 = vmatprep.subr.bf16.mxu0 %v7387_v34  ;;  %v807_v16 = vld [vmem:[#allocation7 + $0x348] sm:$0xff] }
  0xf6   : > { %529 = vmatmul.mubr.bf16.gmra.mrb[12].mxu0 %v9262_v19 }
  0xf7   : > { %538 = vmatprep.mubr.bf16.mxu0 %v11476_v0  ;;  %1483 = vmatpush1.bf16.msra.mxu0 %v7386_v20  ;;  %v2432_v20 = vld [vmem:[#allocation8 + $0x190] sm:$0xff] }
  0xf8   : > { %1484 = vmatprep.subr.bf16.mxu0 %v7403_v36  ;;  %v2440_v36 = vld [vmem:[#allocation8 + $0x1d0] sm:$0xff] }
  0xfb   : > { %1485 = vmatpush1.bf16.msra.mxu0 %v7402_v37 }
  0xfc   : > { %1583 = vmatprep.subr.bf16.mxu0 %v7293_v46  ;;  %v2448_v46 = vld [vmem:[#allocation8 + $0x210] sm:$0xff] }
  0xfd   : > { %v7487_v62 = vcombine.high %v2448_v46, %v2456_v47 }
  0xfe   : > { %539 = vmatmul.mubr.bf16.gmra.mrb[16].mxu0 %v9268_v39 }
  0xff   : > { %548 = vmatprep.mubr.bf16.mxu0 %v11476_v0 }
 0x106   : > { %549 = vmatmul.mubr.bf16.gmra.mrb[20].mxu0 %v9274_v23 }
 0x107   : > { %558 = vmatprep.mubr.bf16.mxu0 %v11476_v0 }
 0x10e   : > { %559 = vmatmul.mubr.bf16.gmra.mrb[24].mxu0 %v9280_v28 }
 0x10f   : > { %568 = vmatprep.mubr.bf16.mxu0 %v11476_v0 }
 0x116   : > { %569 = vmatmul.mubr.bf16.gmra.mrb[28].mxu0 %v9285_v35 }
 0x117   : > { %1502 = vmatprep.mubr.bf16.mxu0 %v11476_v0 }
 0x13e   : > { %v585_v54 = vpop.permute.xlu0 %584 }
 0x13f   : > { %v662_v58 = vsel %vm581_vm0, %v585_v54, 1.0  ;;  %v595_v63 = vpop.permute.xlu1 %594 }
 0x140   : > { %v664_v24 = vsel %vm581_vm0, %v595_v63, 1.0 }
 0x142   : > { %v590_v56 = vpop.permute.xlu0 %589 }
 0x143   : > { %v663_v59 = vsel %vm581_vm0, %v590_v56, 1.0  ;;  %v600_v15 = vpop.permute.xlu1 %599  ;;  %v7470_v56 = vcombine.low %v2432_v20, %v2440_v36 }
 0x144   : > { %v665_v26 = vsel %vm581_vm0, %v600_v15, 1.0  ;;  %v2488_v15 = vld [vmem:[#allocation8 + $0x350] sm:$0xff] }
 0x146   : > { %v605_v49 = vpop.permute.xlu0 %604 }
 0x147   : > { %v610_v52 = vpop.permute.xlu1 %609 }
 0x1b1   : > { %v500_v55 = vpop.f32.mrb[0].mxu0 }
 0x1b2   : > { %v502_v57 = vpop.f32.mrb[1].mxu0  ;;  %v678_v1 = vmul.f32 %v662_v58, %v500_v55  ;;  %v7357_v55 = vcombine.high %v767_v43, %v775_v44  ;;  %v667_v58 = vsel %vm581_vm0, %v610_v52, 1.0  ;;  %v9339_v52 = vld [vmem:[#allocation7 + $0x50] sm:$0xff] }
 0x1b3   : > { %v504_v60 = vpop.f32.mrb[2].mxu0 }
 0x1b4   : > { %v679_v2 = vmul.f32 %v663_v59, %v504_v60  ;;  %v506_v3 = vpop.f32.mrb[3].mxu0  ;;  %v783_v60 = vld [vmem:[#allocation7 + $0x288] sm:$0xff] }
 0x1b5   : > { %v9296_v7 = vpack.c.bf16 %v506_v3, %v502_v57  ;;  %v666_v57 = vsel %vm581_vm0, %v605_v49, 1.0  ;;  %v2464_v3 = vld [vmem:[#allocation8 + $0x290] sm:$0xff]  ;;  %v7373_v12 = vcombine.high %v783_v60, %v791_v61 }
 0x1b6   : > { %v9298_v8 = vpack.c.bf16 %v679_v2, %v678_v1 }
 0x1b7   : > { %11642 = vst [vmem:[#allocation19_spill] sm:$0xff] %v9296_v7  ;;  %3183 = vmatmul.mubr.bf16.vlgmr.msra.gmra.mrb[0].mxu1 %v9296_v7 }
 0x1b8   : > { %11643 = vst [vmem:[#allocation20_spill] sm:$0xff] %v9298_v8  ;;  %1503 = vmatmul.mubr.bf16.vlgmr.msra.gmra.mrb[32].mxu0 %v9298_v8  ;;  %3192 = vmatprep.mubr.bf16.mxu1 %v11476_v0 }
 0x1b9   : > { %1584 = vmatpush1.bf16.msra.mxu0 %v7292_v45  ;;  %v510_v17 = vpop.f32.mrb[4].mxu0  ;;  %1512 = vmatprep.mubr.bf16.mxu0 %v11476_v0  ;;  %v7471_v45 = vcombine.high %v2432_v20, %v2440_v36 }
 0x1ba   : > { %v512_v18 = vpop.f32.mrb[5].mxu0  ;;  %1585 = vmatprep.subr.bf16.mxu0 %v7309_v9  ;;  %3377 = vmatpush1.bf16.msra.mxu1 %v7422_v51  ;;  %v680_v32 = vmul.f32 %v664_v24, %v510_v17  ;;  %v7340_v51 = vcombine.low %v751_v29, %v759_v30  ;;  %v7356_v9 = vcombine.low %v767_v43, %v775_v44  ;;  %v620_v24 = vpop.permute.xlu1 %619  ;;  %v2504_v43 = vld [vmem:[#allocation8 + $0x3d0] sm:$0xff] }
 0x1bb   : > { %v514_v27 = vpop.f32.mrb[6].mxu0  ;;  %3378 = vmatprep.subr.bf16.mxu1 %v7439_v13  ;;  %v7486_v13 = vcombine.low %v2448_v46, %v2456_v47  ;;  %v7503_v17 = vcombine.high %v2464_v3, %v2472_v4  ;;  %v7502_v29 = vcombine.low %v2464_v3, %v2472_v4 }
 0x1bc   : > { %v681_v33 = vmul.f32 %v665_v26, %v514_v27  ;;  %v516_v34 = vpop.f32.mrb[7].mxu0  ;;  %v7389_v27 = vcombine.high %v799_v14, %v807_v16 }
 0x1bd   : > { %v9308_v37 = vpack.c.bf16 %v516_v34, %v512_v18  ;;  %1586 = vmatpush1.bf16.msra.mxu0 %v7308_v11  ;;  %v2480_v11 = vld [vmem:[#allocation8 + $0x310] sm:$0xff]  ;;  %v615_v18 = vpop.permute.xlu0 %614  ;;  %v823_v34 = vld [vmem:[#allocation7 + $0x3c8] sm:$0xff] }
 0x1be   : > { %v9310_v40 = vpack.c.bf16 %v681_v33, %v680_v32  ;;  %1587 = vmatprep.subr.bf16.mxu0 %v7325_v21  ;;  %3379 = vmatpush1.bf16.msra.mxu1 %v7438_v22  ;;  %v7372_v22 = vcombine.low %v783_v60, %v791_v61  ;;  %v668_v30 = vsel %vm581_vm0, %v615_v18, 1.0  ;;  %v815_v33 = vld [vmem:[#allocation7 + $0x388] sm:$0xff]  ;;  %v7519_v20 = vcombine.high %v2480_v11, %v2488_v15 }
 0x1bf   : > { %11644 = vst [vmem:[#allocation21_spill] sm:$0xff] %v9308_v37  ;;  %3193 = vmatmul.mubr.bf16.gmra.mrb[4].mxu1 %v9308_v37  ;;  %3380 = vmatprep.subr.bf16.mxu1 %v7455_v31  ;;  %v669_v31 = vsel %vm581_vm0, %v620_v24, 1.0  ;;  %v7405_v47 = vcombine.high %v815_v33, %v823_v34  ;;  %v7518_v49 = vcombine.low %v2480_v11, %v2488_v15 }
 0x1c0   : > { %1513 = vmatmul.mubr.bf16.gmra.mrb[36].mxu0 %v9310_v40  ;;  %3202 = vmatprep.mubr.bf16.mxu1 %v11476_v0 }
 0x1c1   : > { %v520_v50 = vpop.f32.mrb[8].mxu0  ;;  %1522 = vmatprep.mubr.bf16.mxu0 %v11476_v0  ;;  %1588 = vmatpush1.bf16.msra.mxu0 %v7324_v38 }
 0x1c2   : > { %v522_v54 = vpop.f32.mrb[9].mxu0  ;;  %1589 = vmatprep.subr.bf16.mxu0 %v7341_v41  ;;  %3381 = vmatpush1.bf16.msra.mxu1 %v7454_v42  ;;  %v682_v63 = vmul.f32 %v666_v57, %v520_v50  ;;  %v2496_v42 = vld [vmem:[#allocation8 + $0x390] sm:$0xff] }
 0x1c3   : > { %v524_v59 = vpop.f32.mrb[10].mxu0  ;;  %3382 = vmatprep.subr.bf16.mxu1 %v7471_v45  ;;  %v7388_v45 = vcombine.low %v799_v14, %v807_v16  ;;  %v7535_v50 = vcombine.high %v2496_v42, %v2504_v43  ;;  %v7534_v61 = vcombine.low %v2496_v42, %v2504_v43 }
 0x1c4   : > { %v683_v1 = vmul.f32 %v667_v58, %v524_v59  ;;  %v526_v2 = vpop.f32.mrb[11].mxu0  ;;  %v7404_v58 = vcombine.low %v815_v33, %v823_v34  ;;  %v630_v59 = vpop.permute.xlu1 %629 }
 0x1c5   : > { %v9320_v5 = vpack.c.bf16 %v526_v2, %v522_v54  ;;  %1590 = vmatpush1.bf16.msra.mxu0 %v7340_v51  ;;  %v9337_v51 = vld [vmem:[#allocation7 + $0x10] sm:$0xff]  ;;  %v9343_v54 = vld [vmem:[#allocation8 + $0x20] sm:$0xff] }
 0x1c6   : > { %v9322_v10 = vpack.c.bf16 %v683_v1, %v682_v63  ;;  %1591 = vmatprep.subr.bf16.mxu0 %v7357_v55  ;;  %3383 = vmatpush1.bf16.msra.mxu1 %v7470_v56  ;;  %v9345_v55 = vld [vmem:[#allocation8 + $0x60] sm:$0xff]  ;;  %v625_v56 = vpop.permute.xlu0 %624  ;;  %v671_v1 = vsel %vm581_vm0, %v630_v59, 1.0 }
 0x1c7   : > { %11645 = vst [vmem:[#allocation22_spill] sm:$0xff] %v9320_v5  ;;  %3203 = vmatmul.mubr.bf16.gmra.mrb[8].mxu1 %v9320_v5  ;;  %3384 = vmatprep.subr.bf16.mxu1 %v7487_v62  ;;  %v7295_v62 = vcombine.high %v9337_v51, %v9339_v52  ;;  %v670_v63 = vsel %vm581_vm0, %v625_v56, 1.0  ;;  %v7427_v3 = vcombine.high %v9343_v54, %v9345_v55 }
 0x1c8   : > { %11646 = vst [vmem:[#allocation23_spill] sm:$0xff] %v9322_v10  ;;  %1523 = vmatmul.mubr.bf16.gmra.mrb[40].mxu0 %v9322_v10  ;;  %3212 = vmatprep.mubr.bf16.mxu1 %v11476_v0  ;;  %v640_v11 = vpop.permute.xlu1 %639 }
 0x1c9   : > { %v530_v21 = vpop.f32.mrb[12].mxu0  ;;  %1532 = vmatprep.mubr.bf16.mxu0 %v11476_v0  ;;  %1592 = vmatpush1.bf16.msra.mxu0 %v7356_v9 }
 0x1ca   : > { %v532_v26 = vpop.f32.mrb[13].mxu0  ;;  %1593 = vmatprep.subr.bf16.mxu0 %v7373_v12  ;;  %3385 = vmatpush1.bf16.msra.mxu1 %v7486_v13  ;;  %v684_v36 = vmul.f32 %v668_v30, %v530_v21  ;;  %v635_v16 = vpop.permute.xlu0 %634  ;;  %v673_v21 = vsel %vm581_vm0, %v640_v11, 1.0  ;;  %v736_v11 = vld [vmem:[#allocation7 + $0x110] sm:$0xff] }
 0x1cb   : > { %v534_v32 = vpop.f32.mrb[14].mxu0  ;;  %3386 = vmatprep.subr.bf16.mxu1 %v7503_v17  ;;  %v672_v18 = vsel %vm581_vm0, %v635_v16, 1.0 }
 0x1cc   : > { %v685_v38 = vmul.f32 %v669_v31, %v534_v32  ;;  %v536_v41 = vpop.f32.mrb[15].mxu0  ;;  %v650_v33 = vpop.permute.xlu1 %649 }
 0x1cd   : > { %v9332_v44 = vpack.c.bf16 %v536_v41, %v532_v26  ;;  %1594 = vmatpush1.bf16.msra.mxu0 %v7372_v22 }
 0x1ce   : > { %v9334_v46 = vpack.c.bf16 %v685_v38, %v684_v36  ;;  %1595 = vmatprep.subr.bf16.mxu0 %v7389_v27  ;;  %3387 = vmatpush1.bf16.msra.mxu1 %v7502_v29  ;;  %v645_v31 = vpop.permute.xlu0 %644  ;;  %v675_v36 = vsel %vm581_vm0, %v650_v33, 1.0 }
 0x1cf   : > { %11647 = vst [vmem:[#allocation24_spill] sm:$0xff] %v9332_v44  ;;  %3213 = vmatmul.mubr.bf16.gmra.mrb[12].mxu1 %v9332_v44  ;;  %3388 = vmatprep.subr.bf16.mxu1 %v7519_v20  ;;  %v674_v20 = vsel %vm581_vm0, %v645_v31, 1.0  ;;  %v2442_v31 = vld [vmem:[#allocation8 + $0x1e0] sm:$0xff] }
 0x1d0   : > { %1533 = vmatmul.mubr.bf16.gmra.mrb[44].mxu0 %v9334_v46  ;;  %3222 = vmatprep.mubr.bf16.mxu1 %v11476_v0 }
 0x1d1   : > { %v540_v57 = vpop.f32.mrb[16].mxu0  ;;  %1542 = vmatprep.mubr.bf16.mxu0 %v11476_v0  ;;  %1596 = vmatpush1.bf16.msra.mxu0 %v7388_v45 }
 0x1d2   : > { %v542_v60 = vpop.f32.mrb[17].mxu0  ;;  %1597 = vmatprep.subr.bf16.mxu0 %v7405_v47  ;;  %3389 = vmatpush1.bf16.msra.mxu1 %v7518_v49  ;;  %v686_v4 = vmul.f32 %v670_v63, %v540_v57  ;;  %v655_v49 = vpop.permute.xlu0 %654 }
 0x1d3   : > { %v544_v2 = vpop.f32.mrb[18].mxu0  ;;  %3390 = vmatprep.subr.bf16.mxu1 %v7535_v50  ;;  %v660_v50 = vpop.permute.xlu1 %659 }
 0x1d4   : > { %v687_v9 = vmul.f32 %v671_v1, %v544_v2  ;;  %v546_v12 = vpop.f32.mrb[19].mxu0  ;;  %v677_v59 = vsel %vm581_vm0, %v660_v50, 1.0 }
 0x1d5   : > { %v9356_v13 = vpack.c.bf16 %v546_v12, %v542_v60  ;;  %1598 = vmatpush1.bf16.msra.mxu0 %v7404_v58  ;;  %v676_v58 = vsel %vm581_vm0, %v655_v49, 1.0  ;;  %v7294_v12 = vcombine.low %v9337_v51, %v9339_v52 }
 0x1d6   : > { %v9358_v14 = vpack.c.bf16 %v687_v9, %v686_v4  ;;  %3391 = vmatpush1.bf16.msra.mxu1 %v7534_v61  ;;  %1696 = vmatprep.subr.bf16.mxu0 %v7295_v62  ;;  %v728_v4 = vld [vmem:[#allocation7 + $0xd0] sm:$0xff]  ;;  %v2410_v9 = vld [vmem:[#allocation8 + $0xe0] sm:$0xff] }
 0x1d7   : > { %11648 = vst [vmem:[#allocation25_spill] sm:$0xff] %v9356_v13  ;;  %3223 = vmatmul.mubr.bf16.gmra.mrb[16].mxu1 %v9356_v13  ;;  %3602 = vmatprep.subr.bf16.mxu1 %v7427_v3  ;;  %v720_v3 = vld [vmem:[#allocation7 + $0x90] sm:$0xff]  ;;  %v7442_v52 = vcombine.low %v2402_v53, %v2410_v9 }
 0x1d8   : > { %1543 = vmatmul.mubr.bf16.gmra.mrb[48].mxu0 %v9358_v14  ;;  %3232 = vmatprep.mubr.bf16.mxu1 %v11476_v0  ;;  %v7311_v16 = vcombine.high %v720_v3, %v728_v4 }
 0x1d9   : > { %v550_v17 = vpop.f32.mrb[20].mxu0  ;;  %1552 = vmatprep.mubr.bf16.mxu0 %v11476_v0 }
 0x1da   : > { %v552_v15 = vpop.f32.mrb[21].mxu0  ;;  %v688_v24 = vmul.f32 %v672_v18, %v550_v17  ;;  %v7426_v17 = vcombine.low %v9343_v54, %v9345_v55  ;;  %v7443_v18 = vcombine.high %v2402_v53, %v2410_v9  ;;  %v752_v54 = vld [vmem:[#allocation7 + $0x190] sm:$0xff]  ;;  %v2482_v9 = vld [vmem:[#allocation8 + $0x320] sm:$0xff] }
 0x1db   : > { %v554_v22 = vpop.f32.mrb[22].mxu0  ;;  %v760_v55 = vld [vmem:[#allocation7 + $0x1d0] sm:$0xff] }
 0x1dc   : > { %v689_v26 = vmul.f32 %v673_v21, %v554_v22  ;;  %v556_v27 = vpop.f32.mrb[23].mxu0  ;;  %v2418_v21 = vld [vmem:[#allocation8 + $0x120] sm:$0xff]  ;;  %v7343_v33 = vcombine.high %v752_v54, %v760_v55 }
 0x1dd   : > { %v9368_v29 = vpack.c.bf16 %v556_v27, %v552_v15  ;;  %v744_v15 = vld [vmem:[#allocation7 + $0x150] sm:$0xff]  ;;  %v2426_v22 = vld [vmem:[#allocation8 + $0x160] sm:$0xff] }
 0x1de   : > { %v9370_v30 = vpack.c.bf16 %v689_v26, %v688_v24  ;;  %v7310_v24 = vcombine.low %v720_v3, %v728_v4  ;;  %v7327_v51 = vcombine.high %v736_v11, %v744_v15  ;;  %v7459_v26 = vcombine.high %v2418_v21, %v2426_v22  ;;  %v2434_v27 = vld [vmem:[#allocation8 + $0x1a0] sm:$0xff]  ;;  %v800_v3 = vld [vmem:[#allocation7 + $0x310] sm:$0xff] }
 0x1df   : > { %11649 = vst [vmem:[#allocation26_spill] sm:$0xff] %v9368_v29  ;;  %3233 = vmatmul.mubr.bf16.gmra.mrb[20].mxu1 %v9368_v29  ;;  %v7474_v50 = vcombine.low %v2434_v27, %v2442_v31  ;;  %v808_v4 = vld [vmem:[#allocation7 + $0x350] sm:$0xff] }
 0x1e0   : > { %1553 = vmatmul.mubr.bf16.gmra.mrb[52].mxu0 %v9370_v30  ;;  %3242 = vmatprep.mubr.bf16.mxu1 %v11476_v0 }
 0x1e1   : > { %v560_v32 = vpop.f32.mrb[24].mxu0  ;;  %1562 = vmatprep.mubr.bf16.mxu0 %v11476_v0 }
 0x1e2   : > { %v562_v34 = vpop.f32.mrb[25].mxu0  ;;  %v690_v41 = vmul.f32 %v674_v20, %v560_v32  ;;  %v7326_v32 = vcombine.low %v736_v11, %v744_v15  ;;  %v768_v20 = vld [vmem:[#allocation7 + $0x210] sm:$0xff] }
 0x1e3   : > { %v564_v38 = vpop.f32.mrb[26].mxu0  ;;  %v816_v15 = vld [vmem:[#allocation7 + $0x390] sm:$0xff] }
 0x1e4   : > { %v691_v42 = vmul.f32 %v675_v36, %v564_v38  ;;  %v566_v43 = vpop.f32.mrb[27].mxu0  ;;  %v776_v36 = vld [vmem:[#allocation7 + $0x250] sm:$0xff]  ;;  %v7475_v38 = vcombine.high %v2434_v27, %v2442_v31  ;;  %v713_v27 = vld [vmem:[#allocation7 + $0x58] sm:$0xff] }
 0x1e5   : > { %v9380_v45 = vpack.c.bf16 %v566_v43, %v562_v34  ;;  %v7458_v34 = vcombine.low %v2418_v21, %v2426_v22  ;;  %v7342_v43 = vcombine.low %v752_v54, %v760_v55  ;;  %v7359_v49 = vcombine.high %v768_v20, %v776_v36  ;;  %v2498_v22 = vld [vmem:[#allocation8 + $0x3a0] sm:$0xff]  ;;  %v2388_v31 = vld [vmem:[#allocation8 + $0x30] sm:$0xff] }
 0x1e6   : > { %v9382_v47 = vpack.c.bf16 %v691_v42, %v690_v41  ;;  %v2450_v41 = vld [vmem:[#allocation8 + $0x220] sm:$0xff] }
 0x1e7   : > { %11650 = vst [vmem:[#allocation27_spill] sm:$0xff] %v9380_v45  ;;  %3243 = vmatmul.mubr.bf16.gmra.mrb[24].mxu1 %v9380_v45  ;;  %v2458_v42 = vld [vmem:[#allocation8 + $0x260] sm:$0xff] }
 0x1e8   : > { %11651 = vst [vmem:[#allocation28_spill] sm:$0xff] %v9382_v47  ;;  %1563 = vmatmul.mubr.bf16.gmra.mrb[56].mxu0 %v9382_v47  ;;  %3252 = vmatprep.mubr.bf16.mxu1 %v11476_v0 }
 0x1e9   : > { %v570_v56 = vpop.f32.mrb[28].mxu0  ;;  %1572 = vmatprep.mubr.bf16.mxu0 %v11476_v0 }
 0x1ea   : > { %v572_v57 = vpop.f32.mrb[29].mxu0  ;;  %v692_v61 = vmul.f32 %v676_v58, %v570_v56  ;;  %v784_v56 = vld [vmem:[#allocation7 + $0x290] sm:$0xff]  ;;  %v7491_v58 = vcombine.high %v2450_v41, %v2458_v42 }
 0x1eb   : > { %v574_v60 = vpop.f32.mrb[30].mxu0 }
 0x1ec   : > { %v693_v62 = vmul.f32 %v677_v59, %v574_v60  ;;  %v576_v63 = vpop.f32.mrb[31].mxu0  ;;  %v2466_v59 = vld [vmem:[#allocation8 + $0x2a0] sm:$0xff] }
 0x1ed   : > { %v9392_v1 = vpack.c.bf16 %v576_v63, %v572_v57  ;;  %v792_v57 = vld [vmem:[#allocation7 + $0x2d0] sm:$0xff]  ;;  %v2474_v60 = vld [vmem:[#allocation8 + $0x2e0] sm:$0xff]  ;;  %v7490_v63 = vcombine.low %v2450_v41, %v2458_v42  ;;  %v729_v41 = vld [vmem:[#allocation7 + $0xd8] sm:$0xff] }
 0x1ee   : > { %v9394_v2 = vpack.c.bf16 %v693_v62, %v692_v61  ;;  %v7358_v61 = vcombine.low %v768_v20, %v776_v36  ;;  %v7375_v62 = vcombine.high %v784_v56, %v792_v57  ;;  %v7507_v53 = vcombine.high %v2466_v59, %v2474_v60  ;;  %v2404_v42 = vld [vmem:[#allocation8 + $0xb0] sm:$0xff] }
 0x1ef   : > { %11652 = vst [vmem:[#allocation29_spill] sm:$0xff] %v9392_v1  ;;  %3253 = vmatmul.mubr.bf16.gmra.mrb[28].mxu1 %v9392_v1  ;;  %v7506_v11 = vcombine.low %v2466_v59, %v2474_v60  ;;  %v2420_v60 = vld [vmem:[#allocation8 + $0x130] sm:$0xff] }
 0x1f0   : > { %11653 = vst [vmem:[#allocation30_spill] sm:$0xff] %v9394_v2  ;;  %1573 = vmatmul.mubr.bf16.gmra.mrb[60].mxu0 %v9394_v2  ;;  %3408 = vmatprep.mubr.bf16.mxu1 %v11476_v0 }
 0x1f1   : > { %1615 = vmatprep.mubr.bf16.mxu0 %v11476_v0 }
 0x1f7   : > { %3409 = vmatmul.mubr.bf16.vlgmr.msra.gmra.mrb[32].mxu1 %v9296_v7 }
 0x1f8   : > { %1616 = vmatmul.mubr.bf16.vlgmr.msra.gmra.mrb[64].mxu0 %v9298_v8  ;;  %3418 = vmatprep.mubr.bf16.mxu1 %v11476_v0 }
 0x1f9   : > { %1697 = vmatpush1.bf16.msra.mxu0 %v7294_v12  ;;  %1625 = vmatprep.mubr.bf16.mxu0 %v11476_v0  ;;  %v2490_v12 = vld [vmem:[#allocation8 + $0x360] sm:$0xff] }
 0x1fa   : > { %1698 = vmatprep.subr.bf16.mxu0 %v7311_v16  ;;  %3603 = vmatpush1.bf16.msra.mxu1 %v7426_v17  ;;  %v7374_v16 = vcombine.low %v784_v56, %v792_v57  ;;  %v7391_v17 = vcombine.high %v800_v3, %v808_v4  ;;  %v7523_v21 = vcombine.high %v2482_v9, %v2490_v12  ;;  %v737_v57 = vld [vmem:[#allocation7 + $0x118] sm:$0xff] }
 0x1fb   : > { %3604 = vmatprep.subr.bf16.mxu1 %v7443_v18  ;;  %v824_v18 = vld [vmem:[#allocation7 + $0x3d0] sm:$0xff]  ;;  %v7522_v54 = vcombine.low %v2482_v9, %v2490_v12 }
 0x1fc   : > { %v2436_v12 = vld [vmem:[#allocation8 + $0x1b0] sm:$0xff] }
 0x1fd   : > { %1699 = vmatpush1.bf16.msra.mxu0 %v7310_v24  ;;  %v2506_v24 = vld [vmem:[#allocation8 + $0x3e0] sm:$0xff] }
 0x1fe   : > { %1700 = vmatprep.subr.bf16.mxu0 %v7327_v51  ;;  %3605 = vmatpush1.bf16.msra.mxu1 %v7442_v52  ;;  %v7390_v51 = vcombine.low %v800_v3, %v808_v4  ;;  %v7407_v52 = vcombine.high %v816_v15, %v824_v18  ;;  %v7539_v55 = vcombine.high %v2498_v22, %v2506_v24  ;;  %v753_v4 = vld [vmem:[#allocation7 + $0x198] sm:$0xff] }
 0x1ff   : > { %3419 = vmatmul.mubr.bf16.gmra.mrb[36].mxu1 %v9308_v37  ;;  %3606 = vmatprep.subr.bf16.mxu1 %v7459_v26  ;;  %v705_v26 = vld [vmem:[#allocation7 + $0x18] sm:$0xff] }
 0x200   : > { %1626 = vmatmul.mubr.bf16.gmra.mrb[68].mxu0 %v9310_v40  ;;  %3428 = vmatprep.mubr.bf16.mxu1 %v11476_v0  ;;  %v7297_v20 = vcombine.high %v705_v26, %v713_v27 }
 0x201   : > { %1635 = vmatprep.mubr.bf16.mxu0 %v11476_v0  ;;  %1701 = vmatpush1.bf16.msra.mxu0 %v7326_v32  ;;  %v2396_v32 = vld [vmem:[#allocation8 + $0x70] sm:$0xff] }
 0x202   : > { %1702 = vmatprep.subr.bf16.mxu0 %v7343_v33  ;;  %3607 = vmatpush1.bf16.msra.mxu1 %v7458_v34  ;;  %v7406_v33 = vcombine.low %v816_v15, %v824_v18  ;;  %v7538_v34 = vcombine.low %v2498_v22, %v2506_v24  ;;  %v7431_v36 = vcombine.high %v2388_v31, %v2396_v32  ;;  %v769_v18 = vld [vmem:[#allocation7 + $0x218] sm:$0xff]  ;;  %v2452_v24 = vld [vmem:[#allocation8 + $0x230] sm:$0xff] }
 0x203   : > { %3608 = vmatprep.subr.bf16.mxu1 %v7475_v38  ;;  %v721_v38 = vld [vmem:[#allocation7 + $0x98] sm:$0xff]  ;;  %v7430_v56 = vcombine.low %v2388_v31, %v2396_v32  ;;  %v2468_v32 = vld [vmem:[#allocation8 + $0x2b0] sm:$0xff] }
 0x205   : > { %1703 = vmatpush1.bf16.msra.mxu0 %v7342_v43  ;;  %v2412_v43 = vld [vmem:[#allocation8 + $0xf0] sm:$0xff] }
 0x206   : > { %1704 = vmatprep.subr.bf16.mxu0 %v7359_v49  ;;  %3609 = vmatpush1.bf16.msra.mxu1 %v7474_v50  ;;  %v7296_v49 = vcombine.low %v705_v26, %v713_v27  ;;  %v7313_v50 = vcombine.high %v721_v38, %v729_v41  ;;  %v7447_v59 = vcombine.high %v2404_v42, %v2412_v43  ;;  %v785_v26 = vld [vmem:[#allocation7 + $0x298] sm:$0xff] }
 0x207   : > { %3429 = vmatmul.mubr.bf16.gmra.mrb[40].mxu1 %v9320_v5  ;;  %3610 = vmatprep.subr.bf16.mxu1 %v7491_v58  ;;  %v745_v58 = vld [vmem:[#allocation7 + $0x158] sm:$0xff]  ;;  %v7446_v3 = vcombine.low %v2404_v42, %v2412_v43  ;;  %v2484_v43 = vld [vmem:[#allocation8 + $0x330] sm:$0xff] }
 0x208   : > { %1636 = vmatmul.mubr.bf16.gmra.mrb[72].mxu0 %v9322_v10  ;;  %3438 = vmatprep.mubr.bf16.mxu1 %v11476_v0  ;;  %v793_v27 = vld [vmem:[#allocation7 + $0x2d8] sm:$0xff] }
 0x209   : > { %1645 = vmatprep.mubr.bf16.mxu0 %v11476_v0  ;;  %1705 = vmatpush1.bf16.msra.mxu0 %v7358_v61  ;;  %v2428_v61 = vld [vmem:[#allocation8 + $0x170] sm:$0xff] }
 0x20a   : > { %1706 = vmatprep.subr.bf16.mxu0 %v7375_v62  ;;  %3611 = vmatpush1.bf16.msra.mxu1 %v7490_v63  ;;  %v7312_v62 = vcombine.low %v721_v38, %v729_v41  ;;  %v7329_v63 = vcombine.high %v737_v57, %v745_v58  ;;  %v7463_v9 = vcombine.high %v2420_v60, %v2428_v61  ;;  %v801_v38 = vld [vmem:[#allocation7 + $0x318] sm:$0xff] }
 0x20b   : > { %3612 = vmatprep.subr.bf16.mxu1 %v7507_v53  ;;  %v761_v53 = vld [vmem:[#allocation7 + $0x1d8] sm:$0xff]  ;;  %v7462_v15 = vcombine.low %v2420_v60, %v2428_v61  ;;  %v2500_v61 = vld [vmem:[#allocation8 + $0x3b0] sm:$0xff] }
 0x20c   : > { %v809_v41 = vld [vmem:[#allocation7 + $0x358] sm:$0xff] }
 0x20d   : > { %1707 = vmatpush1.bf16.msra.mxu0 %v7374_v16  ;;  %v2444_v16 = vld [vmem:[#allocation8 + $0x1f0] sm:$0xff] }
 0x20e   : > { %1708 = vmatprep.subr.bf16.mxu0 %v7391_v17  ;;  %3613 = vmatpush1.bf16.msra.mxu1 %v7506_v11  ;;  %v7328_v17 = vcombine.low %v737_v57, %v745_v58  ;;  %v7345_v11 = vcombine.high %v753_v4, %v761_v53  ;;  %v7479_v22 = vcombine.high %v2436_v12, %v2444_v16  ;;  %v817_v58 = vld [vmem:[#allocation7 + $0x398] sm:$0xff] }
 0x20f   : > { %3439 = vmatmul.mubr.bf16.gmra.mrb[44].mxu1 %v9332_v44  ;;  %3614 = vmatprep.subr.bf16.mxu1 %v7523_v21  ;;  %v777_v21 = vld [vmem:[#allocation7 + $0x258] sm:$0xff] }
 0x210   : > { %1646 = vmatmul.mubr.bf16.gmra.mrb[76].mxu0 %v9334_v46  ;;  %3448 = vmatprep.mubr.bf16.mxu1 %v11476_v0 }
 0x211   : > { %1655 = vmatprep.mubr.bf16.mxu0 %v11476_v0  ;;  %1709 = vmatpush1.bf16.msra.mxu0 %v7390_v51  ;;  %v2460_v51 = vld [vmem:[#allocation8 + $0x270] sm:$0xff] }
 0x212   : > { %1710 = vmatprep.subr.bf16.mxu0 %v7407_v52  ;;  %3615 = vmatpush1.bf16.msra.mxu1 %v7522_v54  ;;  %v7344_v52 = vcombine.low %v753_v4, %v761_v53  ;;  %v7361_v54 = vcombine.high %v769_v18, %v777_v21  ;;  %v7495_v31 = vcombine.high %v2452_v24, %v2460_v51 }
 0x213   : > { %3616 = vmatprep.subr.bf16.mxu1 %v7539_v55  ;;  %v7478_v55 = vcombine.low %v2436_v12, %v2444_v16  ;;  %v714_v12 = vld [vmem:[#allocation7 + $0x60] sm:$0xff] }
 0x215   : > { %1711 = vmatpush1.bf16.msra.mxu0 %v7406_v33  ;;  %v2476_v33 = vld [vmem:[#allocation8 + $0x2f0] sm:$0xff] }
 0x216   : > { %3617 = vmatpush1.bf16.msra.mxu1 %v7538_v34  ;;  %1809 = vmatprep.subr.bf16.mxu0 %v7297_v20  ;;  %v7360_v34 = vcombine.low %v769_v18, %v777_v21  ;;  %v7377_v20 = vcombine.high %v785_v26, %v793_v27  ;;  %v7511_v42 = vcombine.high %v2468_v32, %v2476_v33  ;;  %v722_v18 = vld [vmem:[#allocation7 + $0xa0] sm:$0xff] }
 0x217   : > { %3449 = vmatmul.mubr.bf16.gmra.mrb[48].mxu1 %v9356_v13  ;;  %3828 = vmatprep.subr.bf16.mxu1 %v7431_v36  ;;  %v7494_v36 = vcombine.low %v2452_v24, %v2460_v51  ;;  %v7510_v57 = vcombine.low %v2468_v32, %v2476_v33  ;;  %v730_v21 = vld [vmem:[#allocation7 + $0xe0] sm:$0xff] }
 0x218   : > { %1656 = vmatmul.mubr.bf16.gmra.mrb[80].mxu0 %v9358_v14  ;;  %3458 = vmatprep.mubr.bf16.mxu1 %v11476_v0  ;;  %v7315_v24 = vcombine.high %v722_v18, %v730_v21  ;;  %v8214_v51 = vld [vmem:[#allocation11] ss:$8 sps:$4 sm:$0xff]  }
 0x219   : > { %1665 = vmatprep.mubr.bf16.mxu0 %v11476_v0  ;;  %v754_v32 = vld [vmem:[#allocation7 + $0x1a0] sm:$0xff] }
 0x21a   : > { %v762_v33 = vld [vmem:[#allocation7 + $0x1e0] sm:$0xff] }
 0x21f   : > { %3459 = vmatmul.mubr.bf16.gmra.mrb[52].mxu1 %v9368_v29 }
 0x220   : > { %1666 = vmatmul.mubr.bf16.gmra.mrb[84].mxu0 %v9370_v30  ;;  %3468 = vmatprep.mubr.bf16.mxu1 %v11476_v0 }
 0x221   : > { %1675 = vmatprep.mubr.bf16.mxu0 %v11476_v0 }
 0x227   : > { %3469 = vmatmul.mubr.bf16.gmra.mrb[56].mxu1 %v9380_v45 }
 0x228   : > { %1676 = vmatmul.mubr.bf16.gmra.mrb[88].mxu0 %v9382_v47  ;;  %3478 = vmatprep.mubr.bf16.mxu1 %v11476_v0 }
 0x229   : > { %1685 = vmatprep.mubr.bf16.mxu0 %v11476_v0 }
 0x22f   : > { %3479 = vmatmul.mubr.bf16.gmra.mrb[60].mxu1 %v9392_v1 }
 0x230   : > { %1686 = vmatmul.mubr.bf16.gmra.mrb[92].mxu0 %v9394_v2  ;;  %3634 = vmatprep.mubr.bf16.mxu1 %v11476_v0 }
 0x231   : > { %1728 = vmatprep.mubr.bf16.mxu0 %v11476_v0 }
 0x237   : > { %3635 = vmatmul.mubr.bf16.vlgmr.msra.gmra.mrb[64].mxu1 %v9296_v7 }
 0x238   : > { %1729 = vmatmul.mubr.bf16.vlgmr.msra.gmra.mrb[96].mxu0 %v9298_v8  ;;  %3644 = vmatprep.mubr.bf16.mxu1 %v11476_v0 }
 0x239   : > { %1810 = vmatpush1.bf16.msra.mxu0 %v7296_v49  ;;  %1738 = vmatprep.mubr.bf16.mxu0 %v11476_v0  ;;  %v2492_v49 = vld [vmem:[#allocation8 + $0x370] sm:$0xff] }
 0x23a   : > { %1811 = vmatprep.subr.bf16.mxu0 %v7313_v50  ;;  %3829 = vmatpush1.bf16.msra.mxu1 %v7430_v56  ;;  %v7376_v50 = vcombine.low %v785_v26, %v793_v27  ;;  %v7393_v56 = vcombine.high %v801_v38, %v809_v41  ;;  %v7527_v60 = vcombine.high %v2484_v43, %v2492_v49 }
 0x23b   : > { %3830 = vmatprep.subr.bf16.mxu1 %v7447_v59  ;;  %v825_v59 = vld [vmem:[#allocation7 + $0x3d8] sm:$0xff]  ;;  %v7526_v4 = vcombine.low %v2484_v43, %v2492_v49  ;;  %v7314_v26 = vcombine.low %v722_v18, %v730_v21  ;;  %v7346_v49 = vcombine.low %v754_v32, %v762_v33  ;;  %v826_v18 = vld [vmem:[#allocation7 + $0x3e0] sm:$0xff] }
 0x23c   : > { %v7408_v16 = vcombine.low %v817_v58, %v825_v59  ;;  %v8225_v43 = vld [vmem:[#allocation11 + $0x34] ss:$8 sps:$4 sm:$0xff]   ;;  %v8234_v21 = vld [vmem:[#allocation11 + $0x64] ss:$8 sps:$4 sm:$0xff]  }
 0x23d   : > { %1812 = vmatpush1.bf16.msra.mxu0 %v7312_v62  ;;  %v2508_v62 = vld [vmem:[#allocation8 + $0x3f0] sm:$0xff] }
 0x23e   : > { %1813 = vmatprep.subr.bf16.mxu0 %v7329_v63  ;;  %3831 = vmatpush1.bf16.msra.mxu1 %v7446_v3  ;;  %v7392_v63 = vcombine.low %v801_v38, %v809_v41  ;;  %v7409_v3 = vcombine.high %v817_v58, %v825_v59  ;;  %v7543_v53 = vcombine.high %v2500_v61, %v2508_v62  ;;  %v8220_v38 = vld [vmem:[#allocation11 + $0x20] ss:$8 sps:$4 sm:$0xff]   ;;  %v8228_v59 = vld [vmem:[#allocation11 + $0x44] ss:$8 sps:$4 sm:$0xff]  }
 0x23f   : > { %3645 = vmatmul.mubr.bf16.gmra.mrb[68].mxu1 %v9308_v37  ;;  %3832 = vmatprep.subr.bf16.mxu1 %v7463_v9  ;;  %v706_v9 = vld [vmem:[#allocation7 + $0x20] sm:$0xff] }
 0x240   : > { %1739 = vmatmul.mubr.bf16.gmra.mrb[100].mxu0 %v9310_v40  ;;  %3654 = vmatprep.mubr.bf16.mxu1 %v11476_v0  ;;  %v770_v41 = vld [vmem:[#allocation7 + $0x220] sm:$0xff] }
 0x241   : > { %1748 = vmatprep.mubr.bf16.mxu0 %v11476_v0  ;;  %1814 = vmatpush1.bf16.msra.mxu0 %v7328_v17  ;;  %v7542_v17 = vcombine.low %v2500_v61, %v2508_v62  ;;  %v794_v58 = vld [vmem:[#allocation7 + $0x2e0] sm:$0xff] }
 0x242   : > { %1815 = vmatprep.subr.bf16.mxu0 %v7345_v11  ;;  %3833 = vmatpush1.bf16.msra.mxu1 %v7462_v15  ;;  %v7299_v11 = vcombine.high %v706_v9, %v714_v12  ;;  %v8216_v15 = vld [vmem:[#allocation11 + $0x4] ss:$8 sps:$4 sm:$0xff]   ;;  %v8226_v62 = vld [vmem:[#allocation11 + $0x40] ss:$8 sps:$4 sm:$0xff]  }
 0x243   : > { %3834 = vmatprep.subr.bf16.mxu1 %v7479_v22  ;;  %v7298_v22 = vcombine.low %v706_v9, %v714_v12 }
 0x245   : > { %1816 = vmatpush1.bf16.msra.mxu0 %v7344_v52  ;;  %v738_v52 = vld [vmem:[#allocation7 + $0x120] sm:$0xff] }
 0x246   : > { %1817 = vmatprep.subr.bf16.mxu0 %v7361_v54  ;;  %3835 = vmatpush1.bf16.msra.mxu1 %v7478_v55  ;;  %v746_v54 = vld [vmem:[#allocation7 + $0x160] sm:$0xff]  ;;  %v8219_v55 = vld [vmem:[#allocation11 + $0x14] ss:$8 sps:$4 sm:$0xff]  }
 0x247   : > { %3655 = vmatmul.mubr.bf16.gmra.mrb[72].mxu1 %v9320_v5  ;;  %3836 = vmatprep.subr.bf16.mxu1 %v7495_v31  ;;  %v7331_v27 = vcombine.high %v738_v52, %v746_v54  ;;  %v8217_v31 = vld [vmem:[#allocation11 + $0x10] ss:$8 sps:$4 sm:$0xff]  }
 0x248   : > { %1749 = vmatmul.mubr.bf16.gmra.mrb[104].mxu0 %v9322_v10  ;;  %3664 = vmatprep.mubr.bf16.mxu1 %v11476_v0 }
 0x249   : > { %1758 = vmatprep.mubr.bf16.mxu0 %v11476_v0  ;;  %1818 = vmatpush1.bf16.msra.mxu0 %v7360_v34  ;;  %v8222_v34 = vld [vmem:[#allocation11 + $0x24] ss:$8 sps:$4 sm:$0xff]  }
 0x24a   : > { %1819 = vmatprep.subr.bf16.mxu0 %v7377_v20  ;;  %3837 = vmatpush1.bf16.msra.mxu1 %v7494_v36  ;;  %v7330_v20 = vcombine.low %v738_v52, %v746_v54  ;;  %v7347_v36 = vcombine.high %v754_v32, %v762_v33  ;;  %v8232_v33 = vld [vmem:[#allocation11 + $0x60] ss:$8 sps:$4 sm:$0xff]  }
 0x24b   : > { %3838 = vmatprep.subr.bf16.mxu1 %v7511_v42  ;;  %v778_v42 = vld [vmem:[#allocation7 + $0x260] sm:$0xff] }
 0x24d   : > { %1820 = vmatpush1.bf16.msra.mxu0 %v7376_v50  ;;  %v7363_v50 = vcombine.high %v770_v41, %v778_v42 }
 0x24e   : > { %1821 = vmatprep.subr.bf16.mxu0 %v7393_v56  ;;  %3839 = vmatpush1.bf16.msra.mxu1 %v7510_v57  ;;  %v8223_v56 = vld [vmem:[#allocation11 + $0x30] ss:$8 sps:$4 sm:$0xff]   ;;  %v786_v57 = vld [vmem:[#allocation7 + $0x2a0] sm:$0xff] }
 0x24f   : > { %3665 = vmatmul.mubr.bf16.gmra.mrb[76].mxu1 %v9332_v44  ;;  %3840 = vmatprep.subr.bf16.mxu1 %v7527_v60  ;;  %v7362_v60 = vcombine.low %v770_v41, %v778_v42  ;;  %v7379_v61 = vcombine.high %v786_v57, %v794_v58 }
 0x250   : > { %1759 = vmatmul.mubr.bf16.gmra.mrb[108].mxu0 %v9334_v46  ;;  %3674 = vmatprep.mubr.bf16.mxu1 %v11476_v0 }
 0x251   : > { %1768 = vmatprep.mubr.bf16.mxu0 %v11476_v0  ;;  %1822 = vmatpush1.bf16.msra.mxu0 %v7392_v63  ;;  %v802_v63 = vld [vmem:[#allocation7 + $0x320] sm:$0xff] }
 0x252   : > { %1823 = vmatprep.subr.bf16.mxu0 %v7409_v3  ;;  %3841 = vmatpush1.bf16.msra.mxu1 %v7526_v4  ;;  %v810_v3 = vld [vmem:[#allocation7 + $0x360] sm:$0xff]  ;;  %v8231_v4 = vld [vmem:[#allocation11 + $0x54] ss:$8 sps:$4 sm:$0xff]  }
 0x253   : > { %3842 = vmatprep.subr.bf16.mxu1 %v7543_v53  ;;  %v7378_v53 = vcombine.low %v786_v57, %v794_v58  ;;  %v7395_v12 = vcombine.high %v802_v63, %v810_v3 }
 0x255   : > { %1824 = vmatpush1.bf16.msra.mxu0 %v7408_v16  ;;  %v8229_v16 = vld [vmem:[#allocation11 + $0x50] ss:$8 sps:$4 sm:$0xff]  }
 0x256   : > { %3843 = vmatpush1.bf16.msra.mxu1 %v7542_v17  ;;  %1922 = vmatprep.subr.bf16.mxu0 %v7299_v11 }
 0x257   : > { %3675 = vmatmul.mubr.bf16.gmra.mrb[80].mxu1 %v9356_v13  ;;  %4790 = vmatprep.subr.bf16.mxu1 %v8216_v15  ;;  %v818_v15 = vld [vmem:[#allocation7 + $0x3a0] sm:$0xff] }
 0x258   : > { %1769 = vmatmul.mubr.bf16.gmra.mrb[112].mxu0 %v9358_v14  ;;  %3684 = vmatprep.mubr.bf16.mxu1 %v11476_v0  ;;  %v7411_v32 = vcombine.high %v818_v15, %v826_v18  ;;  %v7410_v42 = vcombine.low %v818_v15, %v826_v18 }
 0x259   : > { %1778 = vmatprep.mubr.bf16.mxu0 %v11476_v0 }
 0x25f   : > { %3685 = vmatmul.mubr.bf16.gmra.mrb[84].mxu1 %v9368_v29 }
 0x260   : > { %1779 = vmatmul.mubr.bf16.gmra.mrb[116].mxu0 %v9370_v30  ;;  %3694 = vmatprep.mubr.bf16.mxu1 %v11476_v0 }
 0x261   : > { %1788 = vmatprep.mubr.bf16.mxu0 %v11476_v0 }
 0x267   : > { %3695 = vmatmul.mubr.bf16.gmra.mrb[88].mxu1 %v9380_v45 }
 0x268   : > { %1789 = vmatmul.mubr.bf16.gmra.mrb[120].mxu0 %v9382_v47  ;;  %3704 = vmatprep.mubr.bf16.mxu1 %v11476_v0 }
 0x269   : > { %1798 = vmatprep.mubr.bf16.mxu0 %v11476_v0 }
 0x26f   : > { %3705 = vmatmul.mubr.bf16.gmra.mrb[92].mxu1 %v9392_v1 }
 0x270   : > { %1799 = vmatmul.mubr.bf16.gmra.mrb[124].mxu0 %v9394_v2  ;;  %3860 = vmatprep.mubr.bf16.mxu1 %v11476_v0 }
 0x271   : > { %1841 = vmatprep.mubr.bf16.mxu0 %v11476_v0 }
 0x277   : > { %3861 = vmatmul.mubr.bf16.vlgmr.msra.gmra.mrb[96].mxu1 %v9296_v7 }
 0x278   : > { %1842 = vmatmul.mubr.bf16.vlgmr.msra.gmra.mrb[128].mxu0 %v9298_v8  ;;  %3870 = vmatprep.mubr.bf16.mxu1 %v11476_v0 }
 0x279   : > { %1923 = vmatpush1.bf16.msra.mxu0 %v7298_v22  ;;  %1851 = vmatprep.mubr.bf16.mxu0 %v11476_v0 }
 0x27a   : > { %1924 = vmatprep.subr.bf16.mxu0 %v7315_v24  ;;  %4791 = vmatpush1.bf16.msra.mxu1 %v8214_v51 }
 0x27b   : > { %4792 = vmatprep.subr.bf16.mxu1 %v8219_v55 }
 0x27d   : > { %1925 = vmatpush1.bf16.msra.mxu0 %v7314_v26  ;;  %v7394_v26 = vcombine.low %v802_v63, %v810_v3 }
 0x27e   : > { %1926 = vmatprep.subr.bf16.mxu0 %v7331_v27  ;;  %4793 = vmatpush1.bf16.msra.mxu1 %v8217_v31 }
 0x27f   : > { %3871 = vmatmul.mubr.bf16.gmra.mrb[100].mxu1 %v9308_v37  ;;  %4794 = vmatprep.subr.bf16.mxu1 %v8222_v34 }
 0x280   : > { %1852 = vmatmul.mubr.bf16.gmra.mrb[132].mxu0 %v9310_v40  ;;  %3880 = vmatprep.mubr.bf16.mxu1 %v11476_v0 }
 0x281   : > { %1861 = vmatprep.mubr.bf16.mxu0 %v11476_v0  ;;  %1927 = vmatpush1.bf16.msra.mxu0 %v7330_v20  ;;  %v8237_v20 = vld [vmem:[#allocation11 + $0x74] ss:$8 sps:$4 sm:$0xff]  }
 0x282   : > { %1928 = vmatprep.subr.bf16.mxu0 %v7347_v36  ;;  %4795 = vmatpush1.bf16.msra.mxu1 %v8220_v38  ;;  %v9489_v36 = vld [vmem:[#allocation7 + $0x28] sm:$0xff] }
 0x283   : > { %4796 = vmatprep.subr.bf16.mxu1 %v8225_v43  ;;  %v9491_v38 = vld [vmem:[#allocation7 + $0x68] sm:$0xff] }
 0x285   : > { %1929 = vmatpush1.bf16.msra.mxu0 %v7346_v49 }
 0x286   : > { %1930 = vmatprep.subr.bf16.mxu0 %v7363_v50  ;;  %4797 = vmatpush1.bf16.msra.mxu1 %v8223_v56  ;;  %v8235_v50 = vld [vmem:[#allocation11 + $0x70] ss:$8 sps:$4 sm:$0xff]   ;;  %v7301_v56 = vcombine.high %v9489_v36, %v9491_v38 }
 0x287   : > { %3881 = vmatmul.mubr.bf16.gmra.mrb[104].mxu1 %v9320_v5  ;;  %4798 = vmatprep.subr.bf16.mxu1 %v8228_v59  ;;  %v8240_v59 = vld [vmem:[#allocation10 + $0x4] ss:$8 sps:$4 sm:$0xff]  }
 0x288   : > { %1862 = vmatmul.mubr.bf16.gmra.mrb[136].mxu0 %v9322_v10  ;;  %3890 = vmatprep.mubr.bf16.mxu1 %v11476_v0 }
 0x289   : > { %1871 = vmatprep.mubr.bf16.mxu0 %v11476_v0  ;;  %1931 = vmatpush1.bf16.msra.mxu0 %v7362_v60 }
 0x28a   : > { %v3184_v9 = vpop.f32.mrb[0].mxu1  ;;  %1932 = vmatprep.subr.bf16.mxu0 %v7379_v61  ;;  %4799 = vmatpush1.bf16.msra.mxu1 %v8226_v62 }
 0x28b   : > { %v1504_v17 = vpop.f32.mrb[32].mxu0  ;;  %v3186_v11 = vpop.f32.mrb[1].mxu1  ;;  %4800 = vmatprep.subr.bf16.mxu1 %v8231_v4 }
 0x28c   : > { %v9480_v22 = vmul.f32 %v3184_v9, %v1504_v17  ;;  %v1506_v24 = vpop.f32.mrb[33].mxu0  ;;  %v3188_v51 = vpop.f32.mrb[2].mxu1  ;;  %v8243_v17 = vld [vmem:[#allocation10 + $0x14] ss:$8 sps:$4 sm:$0xff]  }
 0x28d   : > { %v9482_v52 = vmul.f32 %v3186_v11, %v1506_v24  ;;  %v1508_v54 = vpop.f32.mrb[34].mxu0  ;;  %v3190_v55 = vpop.f32.mrb[3].mxu1  ;;  %1933 = vmatpush1.bf16.msra.mxu0 %v7378_v53 }
 0x28e   : > { %v9484_v27 = vmul.f32 %v3188_v51, %v1508_v54  ;;  %v1510_v31 = vpop.f32.mrb[35].mxu0  ;;  %1934 = vmatprep.subr.bf16.mxu0 %v7395_v12  ;;  %4801 = vmatpush1.bf16.msra.mxu1 %v8229_v16 }
 0x28f   : > { %v9486_v34 = vmul.f32 %v3190_v55, %v1510_v31  ;;  %3891 = vmatmul.mubr.bf16.gmra.mrb[108].mxu1 %v9332_v44  ;;  %4802 = vmatprep.subr.bf16.mxu1 %v8234_v21 }
 0x290   : > { %1872 = vmatmul.mubr.bf16.gmra.mrb[140].mxu0 %v9334_v46  ;;  %3900 = vmatprep.mubr.bf16.mxu1 %v11476_v0 }
 0x291   : > { %1881 = vmatprep.mubr.bf16.mxu0 %v11476_v0  ;;  %1935 = vmatpush1.bf16.msra.mxu0 %v7394_v26 }
 0x292   : > { %v3194_v49 = vpop.f32.mrb[4].mxu1  ;;  %1936 = vmatprep.subr.bf16.mxu0 %v7411_v32  ;;  %4803 = vmatpush1.bf16.msra.mxu1 %v8232_v33 }
 0x293   : > { %v1514_v57 = vpop.f32.mrb[36].mxu0  ;;  %v3196_v58 = vpop.f32.mrb[5].mxu1  ;;  %4804 = vmatprep.subr.bf16.mxu1 %v8237_v20 }
 0x294   : > { %v9502_v60 = vmul.f32 %v3194_v49, %v1514_v57  ;;  %v1516_v61 = vpop.f32.mrb[37].mxu0  ;;  %v3198_v62 = vpop.f32.mrb[6].mxu1 }
 0x295   : > { %v9504_v63 = vmul.f32 %v3196_v58, %v1516_v61  ;;  %v1518_v3 = vpop.f32.mrb[38].mxu0  ;;  %v3200_v4 = vpop.f32.mrb[7].mxu1  ;;  %1937 = vmatpush1.bf16.msra.mxu0 %v7410_v42 }
 0x296   : > { %v9506_v53 = vmul.f32 %v3198_v62, %v1518_v3  ;;  %v1520_v9 = vpop.f32.mrb[39].mxu0  ;;  %4805 = vmatpush1.bf16.msra.mxu1 %v8235_v50  ;;  %2035 = vmatprep.subr.bf16.mxu0 %v7301_v56 }
 0x297   : > { %v9508_v12 = vmul.f32 %v3200_v4, %v1520_v9  ;;  %3901 = vmatmul.mubr.bf16.gmra.mrb[112].mxu1 %v9356_v13  ;;  %6183 = vmatprep.subr.bf16.mxu1 %v8240_v59  ;;  %v8249_v13 = vld [vmem:[#allocation10 + $0x34] ss:$8 sps:$4 sm:$0xff]  }
 0x298   : > { %1882 = vmatmul.mubr.bf16.gmra.mrb[144].mxu0 %v9358_v14  ;;  %3910 = vmatprep.mubr.bf16.mxu1 %v11476_v0 }
 0x299   : > { %1891 = vmatprep.mubr.bf16.mxu0 %v11476_v0 }
 0x29a   : > { %v3204_v11 = vpop.f32.mrb[8].mxu1 }
 0x29b   : > { %v1524_v15 = vpop.f32.mrb[40].mxu0  ;;  %v3206_v18 = vpop.f32.mrb[9].mxu1 }
 0x29c   : > { %v9518_v21 = vmul.f32 %v3204_v11, %v1524_v15  ;;  %v1526_v24 = vpop.f32.mrb[41].mxu0  ;;  %v3208_v51 = vpop.f32.mrb[10].mxu1  ;;  %v723_v15 = vld [vmem:[#allocation7 + $0xa8] sm:$0xff] }
 0x29d   : > { %v9520_v54 = vmul.f32 %v3206_v18, %v1526_v24  ;;  %v1528_v55 = vpop.f32.mrb[42].mxu0  ;;  %v3210_v26 = vpop.f32.mrb[11].mxu1  ;;  %v731_v18 = vld [vmem:[#allocation7 + $0xe8] sm:$0xff] }
 0x29e   : > { %v9522_v31 = vmul.f32 %v3208_v51, %v1528_v55  ;;  %v1530_v32 = vpop.f32.mrb[43].mxu0 }
 0x29f   : > { %v9524_v33 = vmul.f32 %v3210_v26, %v1530_v32  ;;  %3911 = vmatmul.mubr.bf16.gmra.mrb[116].mxu1 %v9368_v29 }
 0x2a0   : > { %1892 = vmatmul.mubr.bf16.gmra.mrb[148].mxu0 %v9370_v30  ;;  %3920 = vmatprep.mubr.bf16.mxu1 %v11476_v0 }
 0x2a1   : > { %1901 = vmatprep.mubr.bf16.mxu0 %v11476_v0 }
 0x2a2   : > { %v3214_v49 = vpop.f32.mrb[12].mxu1 }
 0x2a3   : > { %v1534_v50 = vpop.f32.mrb[44].mxu0  ;;  %v3216_v56 = vpop.f32.mrb[13].mxu1 }
 0x2a4   : > { %v9534_v57 = vmul.f32 %v3214_v49, %v1534_v50  ;;  %v1536_v58 = vpop.f32.mrb[45].mxu0  ;;  %v3218_v59 = vpop.f32.mrb[14].mxu1 }
 0x2a5   : > { %v9536_v61 = vmul.f32 %v3216_v56, %v1536_v58  ;;  %v1538_v62 = vpop.f32.mrb[46].mxu0  ;;  %v3220_v3 = vpop.f32.mrb[15].mxu1 }
 0x2a6   : > { %v9538_v4 = vmul.f32 %v3218_v59, %v1538_v62  ;;  %v1540_v9 = vpop.f32.mrb[47].mxu0 }
 0x2a7   : > { %v9540_v11 = vmul.f32 %v3220_v3, %v1540_v9  ;;  %3921 = vmatmul.mubr.bf16.gmra.mrb[120].mxu1 %v9380_v45  ;;  %v7300_v9 = vcombine.low %v9489_v36, %v9491_v38  ;;  %v7316_v36 = vcombine.low %v723_v15, %v731_v18  ;;  %v8246_v38 = vld [vmem:[#allocation10 + $0x24] ss:$8 sps:$4 sm:$0xff]  }
 0x2a8   : > { %1902 = vmatmul.mubr.bf16.gmra.mrb[152].mxu0 %v9382_v47  ;;  %3930 = vmatprep.mubr.bf16.mxu1 %v11476_v0 }
 0x2a9   : > { %1911 = vmatprep.mubr.bf16.mxu0 %v11476_v0 }
 0x2aa   : > { %v3224_v24 = vpop.f32.mrb[16].mxu1 }
 0x2ab   : > { %v1544_v51 = vpop.f32.mrb[48].mxu0  ;;  %v3226_v55 = vpop.f32.mrb[17].mxu1 }
 0x2ac   : > { %v9550_v26 = vmul.f32 %v3224_v24, %v1544_v51  ;;  %v1546_v32 = vpop.f32.mrb[49].mxu0  ;;  %v3228_v49 = vpop.f32.mrb[18].mxu1 }
 0x2ad   : > { %v9552_v50 = vmul.f32 %v3226_v55, %v1546_v32  ;;  %v1548_v56 = vpop.f32.mrb[50].mxu0  ;;  %v3230_v58 = vpop.f32.mrb[19].mxu1 }
 0x2ae   : > { %v9554_v59 = vmul.f32 %v3228_v49, %v1548_v56  ;;  %v1550_v62 = vpop.f32.mrb[51].mxu0 }
 0x2af   : > { %v9556_v3 = vmul.f32 %v3230_v58, %v1550_v62  ;;  %3931 = vmatmul.mubr.bf16.gmra.mrb[124].mxu1 %v9392_v1  ;;  %v8238_v62 = vld [vmem:[#allocation10] ss:$8 sps:$4 sm:$0xff]  }
 0x2b0   : > { %1912 = vmatmul.mubr.bf16.gmra.mrb[156].mxu0 %v9394_v2  ;;  %4822 = vmatprep.mubr.bf16.mxu1 %v11476_v0 }
 0x2b1   : > { %1954 = vmatprep.mubr.bf16.mxu0 %v11476_v0  ;;  %v747_v0 = vld [vmem:[#allocation7 + $0x168] sm:$0xff] }
 0x2b2   : > { %v3234_v51 = vpop.f32.mrb[20].mxu1 }
 0x2b3   : > { %v1554_v55 = vpop.f32.mrb[52].mxu0  ;;  %v3236_v32 = vpop.f32.mrb[21].mxu1 }
 0x2b4   : > { %v9566_v49 = vmul.f32 %v3234_v51, %v1554_v55  ;;  %v1556_v56 = vpop.f32.mrb[53].mxu0  ;;  %v3238_v58 = vpop.f32.mrb[22].mxu1  ;;  %v7317_v51 = vcombine.high %v723_v15, %v731_v18  ;;  %v739_v55 = vld [vmem:[#allocation7 + $0x128] sm:$0xff] }
 0x2b5   : > { %v9568_v20 = vmul.f32 %v3236_v32, %v1556_v56  ;;  %v1558_v42 = vpop.f32.mrb[54].mxu0  ;;  %v3240_v16 = vpop.f32.mrb[23].mxu1  ;;  %v8241_v32 = vld [vmem:[#allocation10 + $0x10] ss:$8 sps:$4 sm:$0xff]   ;;  %v755_v15 = vld [vmem:[#allocation7 + $0x1a8] sm:$0xff]  ;;  %v7332_v37 = vcombine.low %v739_v55, %v747_v0 }
 0x2b6   : > { %v9572_v41 = vmul.f32 %v3238_v58, %v1558_v42  ;;  %v1560_v24 = vpop.f32.mrb[55].mxu0  ;;  %v763_v18 = vld [vmem:[#allocation7 + $0x1e8] sm:$0xff] }
 0x2b7   : > { %v9574_v43 = vmul.f32 %v3240_v16, %v1560_v24  ;;  %4823 = vmatmul.mubr.bf16.vlgmr.msra.gmra.mrb[128].mxu1 %v9226_v48  ;;  %v11654_v24 = vmov 0   ;;  %v7333_v48 = vcombine.high %v739_v55, %v747_v0 }
 0x2b8   : > { %1955 = vmatmul.mubr.bf16.vlgmr.msra.gmra.mrb[160].mxu0 %v9298_v8  ;;  %6184 = vmatpush1.bf16.msra.mxu1 %v8238_v62 }
 0x2b9   : > { %2036 = vmatpush1.bf16.msra.mxu0 %v7300_v9  ;;  %6185 = vmatprep.subr.bf16.mxu1 %v8243_v17  ;;  %v8244_v17 = vld [vmem:[#allocation10 + $0x20] ss:$8 sps:$4 sm:$0xff]  }
 0x2ba   : > { %v3244_v42 = vpop.f32.mrb[24].mxu1  ;;  %4832 = vmatprep.mubr.bf16.mxu1 %v11654_v24  ;;  %1964 = vmatprep.mubr.bf16.mxu0 %v11654_v24 }
 0x2bb   : > { %v1564_v58 = vpop.f32.mrb[56].mxu0  ;;  %v3246_v1 = vpop.f32.mrb[25].mxu1  ;;  %2037 = vmatprep.subr.bf16.mxu0 %v7317_v51 }
 0x2bc   : > { %v9584_v62 = vmul.f32 %v3244_v42, %v1564_v58  ;;  %v1566_v45 = vpop.f32.mrb[57].mxu0  ;;  %v3248_v56 = vpop.f32.mrb[26].mxu1  ;;  %6186 = vmatpush1.bf16.msra.mxu1 %v8241_v32  ;;  %v7349_v32 = vcombine.high %v755_v15, %v763_v18  ;;  %v779_v42 = vld [vmem:[#allocation7 + $0x268] sm:$0xff] }
 0x2bd   : > { %v9586_v9 = vmul.f32 %v3246_v1, %v1566_v45  ;;  %v1568_v16 = vpop.f32.mrb[58].mxu0  ;;  %v3250_v29 = vpop.f32.mrb[27].mxu1  ;;  %6187 = vmatprep.subr.bf16.mxu1 %v8246_v38  ;;  %2038 = vmatpush1.bf16.msra.mxu0 %v7316_v36  ;;  %v8247_v45 = vld [vmem:[#allocation10 + $0x30] ss:$8 sps:$4 sm:$0xff]   ;;  %v771_v1 = vld [vmem:[#allocation7 + $0x228] sm:$0xff] }
 0x2be   : > { %11655 = vst [vmem:[#allocation31_spill] sm:$0xff] %v9584_v62  ;;  %v9588_v44 = vmul.f32 %v3248_v56, %v1568_v16  ;;  %v1570_v5 = vpop.f32.mrb[59].mxu0  ;;  %2039 = vmatprep.subr.bf16.mxu0 %v7333_v48  ;;  %v8252_v56 = vld [vmem:[#allocation10 + $0x44] ss:$8 sps:$4 sm:$0xff]   ;;  %v7365_v38 = vcombine.high %v771_v1, %v779_v42 }
 0x2bf   : > { %v9590_v51 = vmul.f32 %v3250_v29, %v1570_v5  ;;  %4833 = vmatmul.mubr.bf16.gmra.mrb[132].mxu1 %v9248_v6  ;;  %v7348_v6 = vcombine.low %v755_v15, %v763_v18  ;;  %v795_v36 = vld [vmem:[#allocation7 + $0x2e8] sm:$0xff]  ;;  %v7364_v18 = vcombine.low %v771_v1, %v779_v42 }
 0x2c0   : > { %11656 = vst [vmem:[#allocation32_spill] sm:$0xff] %v9588_v44  ;;  %1965 = vmatmul.mubr.bf16.gmra.mrb[164].mxu0 %v9310_v40  ;;  %6188 = vmatpush1.bf16.msra.mxu1 %v8244_v17  ;;  %v787_v17 = vld [vmem:[#allocation7 + $0x2a8] sm:$0xff]  ;;  %v8255_v44 = vld [vmem:[#allocation10 + $0x54] ss:$8 sps:$4 sm:$0xff]  }
 0x2c1   : > { %6189 = vmatprep.subr.bf16.mxu1 %v8249_v13  ;;  %4842 = vmatprep.mubr.bf16.mxu1 %v11654_v24  ;;  %v8250_v13 = vld [vmem:[#allocation10 + $0x40] ss:$8 sps:$4 sm:$0xff]  }
 0x2c2   : > { %v3254_v5 = vpop.f32.mrb[28].mxu1  ;;  %1974 = vmatprep.mubr.bf16.mxu0 %v11654_v24  ;;  %2040 = vmatpush1.bf16.msra.mxu0 %v7332_v37 }
 0x2c3   : > { %v1574_v29 = vpop.f32.mrb[60].mxu0  ;;  %v3256_v55 = vpop.f32.mrb[29].mxu1  ;;  %2041 = vmatprep.subr.bf16.mxu0 %v7349_v32 }
 0x2c4   : > { %v9600_v16 = vmul.f32 %v3254_v5, %v1574_v29  ;;  %v1576_v48 = vpop.f32.mrb[61].mxu0  ;;  %v3258_v58 = vpop.f32.mrb[30].mxu1  ;;  %6190 = vmatpush1.bf16.msra.mxu1 %v8247_v45  ;;  %v7381_v45 = vcombine.high %v787_v17, %v795_v36  ;;  %v8253_v5 = vld [vmem:[#allocation10 + $0x50] ss:$8 sps:$4 sm:$0xff]   ;;  %v803_v29 = vld [vmem:[#allocation7 + $0x328] sm:$0xff] }
 0x2c5   : > { %v9602_v7 = vmul.f32 %v3256_v55, %v1576_v48  ;;  %v1578_v0 = vpop.f32.mrb[62].mxu0  ;;  %v3260_v62 = vpop.f32.mrb[31].mxu1  ;;  %6191 = vmatprep.subr.bf16.mxu1 %v8252_v56  ;;  %v811_v55 = vld [vmem:[#allocation7 + $0x368] sm:$0xff] }
 0x2c6   : > { %11657 = vst [vmem:[#allocation33_spill] sm:$0xff] %v9600_v16  ;;  %v9604_v37 = vmul.f32 %v3258_v58, %v1578_v0  ;;  %v1580_v15 = vpop.f32.mrb[63].mxu0  ;;  %2042 = vmatpush1.bf16.msra.mxu0 %v7348_v6  ;;  %v8258_v0 = vld [vmem:[#allocation10 + $0x64] ss:$8 sps:$4 sm:$0xff]   ;;  %v8256_v58 = vld [vmem:[#allocation10 + $0x60] ss:$8 sps:$4 sm:$0xff]  }
 0x2c7   : > { %11658 = vst [vmem:[#allocation34_spill] sm:$0xff] %v9602_v7  ;;  %v9606_v32 = vmul.f32 %v3260_v62, %v1580_v15  ;;  %4843 = vmatmul.mubr.bf16.gmra.mrb[136].mxu1 %v9256_v25  ;;  %2043 = vmatprep.subr.bf16.mxu0 %v7365_v38  ;;  %v7380_v25 = vcombine.low %v787_v17, %v795_v36  ;;  %v827_v15 = vld [vmem:[#allocation7 + $0x3e8] sm:$0xff]  ;;  %v8261_v36 = vld [vmem:[#allocation10 + $0x74] ss:$8 sps:$4 sm:$0xff]  }
 0x2c8   : > { %11659 = vst [vmem:[#allocation35_spill] sm:$0xff] %v9604_v37  ;;  %1975 = vmatmul.mubr.bf16.gmra.mrb[168].mxu0 %v9322_v10  ;;  %6192 = vmatpush1.bf16.msra.mxu1 %v8250_v13  ;;  %v7397_v38 = vcombine.high %v803_v29, %v811_v55  ;;  %v819_v13 = vld [vmem:[#allocation7 + $0x3a8] sm:$0xff]  ;;  %v8279_v37 = vld [vmem:[#allocation10 + $0xd4] ss:$8 sps:$4 sm:$0xff]  }
 0x2c9   : > { %11660 = vst [vmem:[#allocation36_spill] sm:$0xff] %v9606_v32  ;;  %6193 = vmatprep.subr.bf16.mxu1 %v8255_v44  ;;  %4852 = vmatprep.mubr.bf16.mxu1 %v11654_v24 }
 0x2ca   : > { %v9615_v1 = vpop.f32.mrb[32].mxu1  ;;  %1984 = vmatprep.mubr.bf16.mxu0 %v11654_v24  ;;  %2044 = vmatpush1.bf16.msra.mxu0 %v7364_v18  ;;  %v7396_v18 = vcombine.low %v803_v29, %v811_v55 }
 0x2cb   : > { %v9618_v42 = vpop.f32.mrb[64].mxu0  ;;  %v9620_v6 = vpop.f32.mrb[33].mxu1  ;;  %2045 = vmatprep.subr.bf16.mxu0 %v7381_v45  ;;  %v7413_v45 = vcombine.high %v819_v13, %v827_v15 }
 0x2cc   : > { %11661 = vst [vmem:[#allocation37_spill] sm:$0xff] %v9618_v42  ;;  %v9622_v48 = vpop.f32.mrb[65].mxu0  ;;  %v9624_v44 = vpop.f32.mrb[34].mxu1  ;;  %6194 = vmatpush1.bf16.msra.mxu1 %v8253_v5  ;;  %v8259_v5 = vld [vmem:[#allocation10 + $0x70] ss:$8 sps:$4 sm:$0xff]  }
 0x2cd   : > { %11662 = vst [vmem:[#allocation38_spill] sm:$0xff] %v9622_v48  ;;  %v9626_v56 = vpop.f32.mrb[66].mxu0  ;;  %v9628_v62 = vpop.f32.mrb[35].mxu1  ;;  %6195 = vmatprep.subr.bf16.mxu1 %v8258_v0  ;;  %v9634_v48 = vld [vmem:[#allocation7 + $0x30] sm:$0xff]  ;;  %v8264_v0 = vld [vmem:[#allocation10 + $0x84] ss:$8 sps:$4 sm:$0xff]  }
 0x2ce   : > { %11663 = vst [vmem:[#allocation39_spill] sm:$0xff] %v9626_v56  ;;  %v9630_v17 = vpop.f32.mrb[67].mxu0  ;;  %2046 = vmatpush1.bf16.msra.mxu0 %v7380_v25  ;;  %v9636_v42 = vld [vmem:[#allocation7 + $0x70] sm:$0xff] }
 0x2cf   : > { %11664 = vst [vmem:[#allocation40_spill] sm:$0xff] %v9630_v17  ;;  %4853 = vmatmul.mubr.bf16.gmra.mrb[140].mxu1 %v9262_v19  ;;  %2047 = vmatprep.subr.bf16.mxu0 %v7397_v38  ;;  %v7412_v19 = vcombine.low %v819_v13, %v827_v15  ;;  %v7303_v25 = vcombine.high %v9634_v48, %v9636_v42  ;;  %v8267_v13 = vld [vmem:[#allocation10 + $0x94] ss:$8 sps:$4 sm:$0xff]  }
 0x2d0   : > { %1985 = vmatmul.mubr.bf16.gmra.mrb[172].mxu0 %v9334_v46  ;;  %6196 = vmatpush1.bf16.msra.mxu1 %v8256_v58 }
 0x2d1   : > { %6197 = vmatprep.subr.bf16.mxu1 %v8261_v36  ;;  %4862 = vmatprep.mubr.bf16.mxu1 %v11654_v24  ;;  %v8262_v36 = vld [vmem:[#allocation10 + $0x80] ss:$8 sps:$4 sm:$0xff]  }
 0x2d2   : > { %v9639_v56 = vpop.f32.mrb[36].mxu1  ;;  %1994 = vmatprep.mubr.bf16.mxu0 %v11654_v24  ;;  %2048 = vmatpush1.bf16.msra.mxu0 %v7396_v18  ;;  %v8265_v18 = vld [vmem:[#allocation10 + $0x90] ss:$8 sps:$4 sm:$0xff]  }
 0x2d3   : > { %v9642_v29 = vpop.f32.mrb[68].mxu0  ;;  %v9644_v55 = vpop.f32.mrb[37].mxu1  ;;  %2049 = vmatprep.subr.bf16.mxu0 %v7413_v45  ;;  %v8270_v45 = vld [vmem:[#allocation10 + $0xa4] ss:$8 sps:$4 sm:$0xff]  }
 0x2d4   : > { %11665 = vst [vmem:[#allocation41_spill] sm:$0xff] %v9642_v29  ;;  %v9648_v38 = vpop.f32.mrb[69].mxu0  ;;  %v9650_v58 = vpop.f32.mrb[38].mxu1  ;;  %6198 = vmatpush1.bf16.msra.mxu1 %v8259_v5 }
 0x2d5   : > { %11666 = vst [vmem:[#allocation42_spill] sm:$0xff] %v9648_v38  ;;  %v9652_v17 = vpop.f32.mrb[70].mxu0  ;;  %v9654_v16 = vpop.f32.mrb[39].mxu1  ;;  %6199 = vmatprep.subr.bf16.mxu1 %v8264_v0 }
 0x2d6   : > { %11667 = vst [vmem:[#allocation43_spill] sm:$0xff] %v9652_v17  ;;  %v9656_v15 = vpop.f32.mrb[71].mxu0  ;;  %2050 = vmatpush1.bf16.msra.mxu0 %v7412_v19 }
 0x2d7   : > { %11668 = vst [vmem:[#allocation44_spill] sm:$0xff] %v9656_v15  ;;  %4863 = vmatmul.mubr.bf16.gmra.mrb[144].mxu1 %v9268_v39  ;;  %2148 = vmatprep.subr.bf16.mxu0 %v7303_v25  ;;  %v8268_v25 = vld [vmem:[#allocation10 + $0xa0] ss:$8 sps:$4 sm:$0xff]   ;;  %v8273_v15 = vld [vmem:[#allocation10 + $0xb4] ss:$8 sps:$4 sm:$0xff]  }
 0x2d8   : > { %1995 = vmatmul.mubr.bf16.gmra.mrb[176].mxu0 %v9358_v14  ;;  %6200 = vmatpush1.bf16.msra.mxu1 %v8262_v36 }
 0x2d9   : > { %6201 = vmatprep.subr.bf16.mxu1 %v8267_v13  ;;  %4872 = vmatprep.mubr.bf16.mxu1 %v11654_v24 }
 0x2da   : > { %v9661_v5 = vpop.f32.mrb[40].mxu1  ;;  %2004 = vmatprep.mubr.bf16.mxu0 %v11654_v24 }
 0x2db   : > { %v9664_v0 = vpop.f32.mrb[72].mxu0  ;;  %v9666_v17 = vpop.f32.mrb[41].mxu1 }
 0x2dc   : > { %11669 = vst [vmem:[#allocation45_spill] sm:$0xff] %v9664_v0  ;;  %v9668_v19 = vpop.f32.mrb[73].mxu0  ;;  %v9670_v39 = vpop.f32.mrb[42].mxu1  ;;  %6202 = vmatpush1.bf16.msra.mxu1 %v8265_v18  ;;  %v8271_v0 = vld [vmem:[#allocation10 + $0xb0] ss:$8 sps:$4 sm:$0xff]  }
 0x2dd   : > { %11670 = vst [vmem:[#allocation46_spill] sm:$0xff] %v9668_v19  ;;  %v9672_v36 = vpop.f32.mrb[74].mxu0  ;;  %v9674_v13 = vpop.f32.mrb[43].mxu1  ;;  %6203 = vmatprep.subr.bf16.mxu1 %v8270_v45  ;;  %v8276_v19 = vld [vmem:[#allocation10 + $0xc4] ss:$8 sps:$4 sm:$0xff]  }
 0x2de   : > { %11671 = vst [vmem:[#allocation47_spill] sm:$0xff] %v9672_v36  ;;  %v9676_v38 = vpop.f32.mrb[75].mxu0 }
 0x2df   : > { %11672 = vst [vmem:[#allocation48_spill] sm:$0xff] %v9676_v38  ;;  %4873 = vmatmul.mubr.bf16.gmra.mrb[148].mxu1 %v9274_v23  ;;  %v8274_v23 = vld [vmem:[#allocation10 + $0xc0] ss:$8 sps:$4 sm:$0xff]  }
 0x2e0   : > { %2005 = vmatmul.mubr.bf16.gmra.mrb[180].mxu0 %v9370_v30  ;;  %6204 = vmatpush1.bf16.msra.mxu1 %v8268_v25 }
 0x2e1   : > { %6205 = vmatprep.subr.bf16.mxu1 %v8273_v15  ;;  %4882 = vmatprep.mubr.bf16.mxu1 %v11654_v24 }
 0x2e2   : > { %v9681_v18 = vpop.f32.mrb[44].mxu1  ;;  %2014 = vmatprep.mubr.bf16.mxu0 %v11654_v24 }
 0x2e3   : > { %v9684_v36 = vpop.f32.mrb[76].mxu0  ;;  %v9686_v45 = vpop.f32.mrb[45].mxu1 }
 0x2e4   : > { %11673 = vst [vmem:[#allocation49_spill] sm:$0xff] %v9684_v36  ;;  %v9688_v29 = vpop.f32.mrb[77].mxu0  ;;  %v9690_v38 = vpop.f32.mrb[46].mxu1  ;;  %6206 = vmatpush1.bf16.msra.mxu1 %v8271_v0  ;;  %v8277_v36 = vld [vmem:[#allocation10 + $0xd0] ss:$8 sps:$4 sm:$0xff]  }
 0x2e5   : > { %11674 = vst [vmem:[#allocation50_spill] sm:$0xff] %v9688_v29  ;;  %v9692_v25 = vpop.f32.mrb[78].mxu0  ;;  %v9694_v15 = vpop.f32.mrb[47].mxu1  ;;  %6207 = vmatprep.subr.bf16.mxu1 %v8276_v19  ;;  %v8282_v29 = vld [vmem:[#allocation10 + $0xe4] ss:$8 sps:$4 sm:$0xff]  }
 0x2e6   : > { %11675 = vst [vmem:[#allocation51_spill] sm:$0xff] %v9692_v25  ;;  %11676 = vst [vmem:[#allocation52_spill] sm:$0xff] %v9694_v15  ;;  %v9696_v7 = vpop.f32.mrb[79].mxu0 }
 0x2e7   : > { %11677 = vst [vmem:[#allocation53_spill] sm:$0xff] %v9696_v7  ;;  %4883 = vmatmul.mubr.bf16.gmra.mrb[152].mxu1 %v9280_v28  ;;  %v8280_v28 = vld [vmem:[#allocation10 + $0xe0] ss:$8 sps:$4 sm:$0xff]  }
 0x2e8   : > { %2015 = vmatmul.mubr.bf16.gmra.mrb[184].mxu0 %v9382_v47  ;;  %6208 = vmatpush1.bf16.msra.mxu1 %v8274_v23  ;;  %v8285_v47 = vld [vmem:[#allocation10 + $0xf4] ss:$8 sps:$4 sm:$0xff]  }
 0x2e9   : > { %6209 = vmatprep.subr.bf16.mxu1 %v8279_v37  ;;  %4892 = vmatprep.mubr.bf16.mxu1 %v11654_v24 }
 0x2ea   : > { %v9701_v0 = vpop.f32.mrb[48].mxu1  ;;  %2024 = vmatprep.mubr.bf16.mxu0 %v11654_v24 }
 0x2eb   : > { %v9704_v25 = vpop.f32.mrb[80].mxu0  ;;  %v9706_v19 = vpop.f32.mrb[49].mxu1 }
 0x2ec   : > { %11678 = vst [vmem:[#allocation54_spill] sm:$0xff] %v9704_v25  ;;  %v9708_v32 = vpop.f32.mrb[81].mxu0  ;;  %v9710_v7 = vpop.f32.mrb[50].mxu1  ;;  %6210 = vmatpush1.bf16.msra.mxu1 %v8277_v36  ;;  %v8283_v25 = vld [vmem:[#allocation10 + $0xf0] ss:$8 sps:$4 sm:$0xff]  }
 0x2ed   : > { %11679 = vst [vmem:[#allocation55_spill] sm:$0xff] %v9708_v32  ;;  %v9712_v23 = vpop.f32.mrb[82].mxu0  ;;  %v9714_v37 = vpop.f32.mrb[51].mxu1  ;;  %6211 = vmatprep.subr.bf16.mxu1 %v8282_v29  ;;  %v11683_v32 = vpack.c.bf16 %v9486_v34, %v9482_v52 }
 0x2ee   : > { %11680 = vst [vmem:[#allocation56_spill] sm:$0xff] %v9712_v23  ;;  %11681 = vst [vmem:[#allocation57_spill] sm:$0xff] %v9714_v37  ;;  %v9716_v15 = vpop.f32.mrb[83].mxu0  ;;  %v732_v37 = vld [vmem:[#allocation7 + $0xf0] sm:$0xff] }
 0x2ef   : > { %11682 = vst [vmem:[#allocation58_spill] sm:$0xff] %v9716_v15  ;;  %4893 = vmatmul.mubr.bf16.gmra.mrb[156].mxu1 %v9285_v35  ;;  %v724_v15 = vld [vmem:[#allocation7 + $0xb0] sm:$0xff] }
 0x2f0   : > { %2025 = vmatmul.mubr.bf16.gmra.mrb[188].mxu0 %v9394_v2  ;;  %6212 = vmatpush1.bf16.msra.mxu1 %v8280_v28 }
 0x2f1   : > { %6215 = vmatprep.mubr.bf16.mxu1 %v11683_v32  ;;  %6213 = vmatprep.subr.bf16.mxu1 %v8285_v47  ;;  %v7302_v47 = vcombine.low %v9634_v48, %v9636_v42  ;;  %v7319_v32 = vcombine.high %v724_v15, %v732_v37 }
 0x2f2   : > { %v9723_v36 = vpop.f32.mrb[52].mxu1  ;;  %2067 = vmatprep.mubr.bf16.mxu0 %v11654_v24 }
 0x2f3   : > { %11684 = vst [vmem:[#allocation59_spill] sm:$0xff] %v9723_v36  ;;  %v9726_v23 = vpop.f32.mrb[84].mxu0  ;;  %v9728_v29 = vpop.f32.mrb[53].mxu1  ;;  %v748_v36 = vld [vmem:[#allocation7 + $0x170] sm:$0xff] }
 0x2f4   : > { %11685 = vst [vmem:[#allocation60_spill] sm:$0xff] %v9726_v23  ;;  %11686 = vst [vmem:[#allocation61_spill] sm:$0xff] %v9728_v29  ;;  %v9730_v35 = vpop.f32.mrb[85].mxu0  ;;  %v9732_v2 = vpop.f32.mrb[54].mxu1  ;;  %6214 = vmatpush1.bf16.msra.mxu1 %v8283_v25  ;;  %v11690_v23 = vpack.c.bf16 %v9484_v27, %v9480_v22  ;;  %v740_v29 = vld [vmem:[#allocation7 + $0x130] sm:$0xff]  ;;  %v11691_v25 = vpack.c.bf16 %v9508_v12, %v9504_v63 }
 0x2f5   : > { %11687 = vst [vmem:[#allocation62_spill] sm:$0xff] %v9730_v35  ;;  %v9734_v28 = vpop.f32.mrb[86].mxu0  ;;  %v9736_v52 = vpop.f32.mrb[55].mxu1  ;;  %v7335_v48 = vcombine.high %v740_v29, %v748_v36  ;;  %v756_v27 = vld [vmem:[#allocation7 + $0x1b0] sm:$0xff] }
 0x2f6   : > { %11688 = vst [vmem:[#allocation63_spill] sm:$0xff] %v9734_v28  ;;  %v9740_v34 = vpop.f32.mrb[87].mxu0  ;;  %v7318_v28 = vcombine.low %v724_v15, %v732_v37  ;;  %v7334_v15 = vcombine.low %v740_v29, %v748_v36 }
 0x2f7   : > { %11689 = vst [vmem:[#allocation64_spill] sm:$0xff] %v9740_v34  ;;  %6216 = vmatmul.mubr.bf16.vlgmr.msra.gmra.mrb[128].mxu1 %v11690_v23  ;;  %v764_v23 = vld [vmem:[#allocation7 + $0x1f0] sm:$0xff] }
 0x2f8   : > { %2068 = vmatmul.mubr.bf16.vlgmr.msra.gmra.mrb[192].mxu0 %v9298_v8  ;;  %6225 = vmatprep.mubr.bf16.mxu1 %v11691_v25  ;;  %v772_v25 = vld [vmem:[#allocation7 + $0x230] sm:$0xff]  ;;  %v7350_v36 = vcombine.low %v756_v27, %v764_v23 }
 0x2f9   : > { %2149 = vmatpush1.bf16.msra.mxu0 %v7302_v47  ;;  %2077 = vmatprep.mubr.bf16.mxu0 %v11654_v24  ;;  %v7351_v47 = vcombine.high %v756_v27, %v764_v23 }
 0x2fa   : > { %v9750_v42 = vpop.f32.mrb[56].mxu1  ;;  %2150 = vmatprep.subr.bf16.mxu0 %v7319_v32  ;;  %v11696_v32 = vpack.c.bf16 %v9506_v53, %v9502_v60  ;;  %v788_v53 = vld [vmem:[#allocation7 + $0x2b0] sm:$0xff] }
 0x2fb   : > { %v9752_v34 = vpop.f32.mrb[88].mxu0  ;;  %v9754_v22 = vpop.f32.mrb[57].mxu1 }
 0x2fc   : > { %11692 = vst [vmem:[#allocation65_spill] sm:$0xff] %v9752_v34  ;;  %v9756_v35 = vpop.f32.mrb[89].mxu0  ;;  %v9758_v8 = vpop.f32.mrb[58].mxu1  ;;  %v780_v34 = vld [vmem:[#allocation7 + $0x270] sm:$0xff] }
 0x2fd   : > { %11693 = vst [vmem:[#allocation66_spill] sm:$0xff] %v9756_v35  ;;  %v9760_v63 = vpop.f32.mrb[90].mxu0  ;;  %v9762_v12 = vpop.f32.mrb[59].mxu1  ;;  %2151 = vmatpush1.bf16.msra.mxu0 %v7318_v28  ;;  %v11697_v35 = vpack.c.bf16 %v9524_v33, %v9520_v54  ;;  %v7367_v28 = vcombine.high %v772_v25, %v780_v34 }
 0x2fe   : > { %11694 = vst [vmem:[#allocation67_spill] sm:$0xff] %v9760_v63  ;;  %v9764_v37 = vpop.f32.mrb[91].mxu0  ;;  %2152 = vmatprep.subr.bf16.mxu0 %v7335_v48 }
 0x2ff   : > { %11695 = vst [vmem:[#allocation68_spill] sm:$0xff] %v9764_v37  ;;  %6226 = vmatmul.mubr.bf16.gmra.mrb[132].mxu1 %v11696_v32  ;;  %v796_v32 = vld [vmem:[#allocation7 + $0x2f0] sm:$0xff] }
 0x300   : > { %2078 = vmatmul.mubr.bf16.gmra.mrb[196].mxu0 %v9310_v40  ;;  %6235 = vmatprep.mubr.bf16.mxu1 %v11697_v35  ;;  %v7366_v35 = vcombine.low %v772_v25, %v780_v34  ;;  %v7383_v23 = vcombine.high %v788_v53, %v796_v32  ;;  %v7382_v34 = vcombine.low %v788_v53, %v796_v32 }
 0x301   : > { %2087 = vmatprep.mubr.bf16.mxu0 %v11654_v24  ;;  %2153 = vmatpush1.bf16.msra.mxu0 %v7334_v15  ;;  %v11702_v15 = vpack.c.bf16 %v9522_v31, %v9518_v21  ;;  %v820_v21 = vld [vmem:[#allocation7 + $0x3b0] sm:$0xff] }
 0x302   : > { %v9774_v29 = vpop.f32.mrb[60].mxu1  ;;  %2154 = vmatprep.subr.bf16.mxu0 %v7351_v47  ;;  %v804_v47 = vld [vmem:[#allocation7 + $0x330] sm:$0xff] }
 0x303   : > { %v9776_v48 = vpop.f32.mrb[92].mxu0  ;;  %v9778_v60 = vpop.f32.mrb[61].mxu1  ;;  %v828_v31 = vld [vmem:[#allocation7 + $0x3f0] sm:$0xff] }
 0x304   : > { %11698 = vst [vmem:[#allocation69_spill] sm:$0xff] %v9776_v48  ;;  %v9780_v37 = vpop.f32.mrb[93].mxu0  ;;  %v9782_v63 = vpop.f32.mrb[62].mxu1  ;;  %v812_v48 = vld [vmem:[#allocation7 + $0x370] sm:$0xff] }
 0x305   : > { %11699 = vst [vmem:[#allocation70_spill] sm:$0xff] %v9780_v37  ;;  %v9784_v54 = vpop.f32.mrb[94].mxu0  ;;  %v9786_v33 = vpop.f32.mrb[63].mxu1  ;;  %2155 = vmatpush1.bf16.msra.mxu0 %v7350_v36  ;;  %v11703_v37 = vpack.c.bf16 %v9540_v11, %v9536_v61  ;;  %v7399_v36 = vcombine.high %v804_v47, %v812_v48  ;;  %v7398_v53 = vcombine.low %v804_v47, %v812_v48  ;;  %v11731_v48 = vld [vmem:[#allocation36_spill] sm:$0xff] }
 0x306   : > { %11700 = vst [vmem:[#allocation71_spill] sm:$0xff] %v9784_v54  ;;  %v9788_v27 = vpop.f32.mrb[95].mxu0  ;;  %2156 = vmatprep.subr.bf16.mxu0 %v7367_v28 }
 0x307   : > { %11701 = vst [vmem:[#allocation72_spill] sm:$0xff] %v9788_v27  ;;  %6236 = vmatmul.mubr.bf16.gmra.mrb[136].mxu1 %v11702_v15 }
 0x308   : > { %2088 = vmatmul.mubr.bf16.gmra.mrb[200].mxu0 %v9322_v10  ;;  %6245 = vmatprep.mubr.bf16.mxu1 %v11703_v37 }
 0x309   : > { %2097 = vmatprep.mubr.bf16.mxu0 %v11654_v24  ;;  %2157 = vmatpush1.bf16.msra.mxu0 %v7366_v35 }
 0x30a   : > { %v9798_v25 = vpop.f32.mrb[64].mxu1  ;;  %2158 = vmatprep.subr.bf16.mxu0 %v7383_v23  ;;  %v7415_v23 = vcombine.high %v820_v21, %v828_v31 }
 0x30b   : > { %v1730_v28 = vpop.f32.mrb[96].mxu0  ;;  %v9800_v27 = vpop.f32.mrb[65].mxu1 }
 0x30c   : > { %v9803_v15 = vmul.f32 %v9615_v1, %v1730_v28  ;;  %v1732_v54 = vpop.f32.mrb[97].mxu0  ;;  %v9805_v10 = vpop.f32.mrb[66].mxu1  ;;  %v11708_v28 = vpack.c.bf16 %v9538_v4, %v9534_v57  ;;  %v11732_v57 = vld [vmem:[#allocation34_spill] sm:$0xff] }
 0x30d   : > { %v9808_v61 = vmul.f32 %v9620_v6, %v1732_v54  ;;  %v1734_v11 = vpop.f32.mrb[98].mxu0  ;;  %v9810_v37 = vpop.f32.mrb[67].mxu1  ;;  %2159 = vmatpush1.bf16.msra.mxu0 %v7382_v34  ;;  %v9821_v6 = vld [vmem:[#allocation7 + $0x38] sm:$0xff] }
 0x30e   : > { %11704 = vst [vmem:[#allocation73_spill] sm:$0xff] %v9803_v15  ;;  %v9813_v32 = vmul.f32 %v9624_v44, %v1734_v11  ;;  %v1736_v35 = vpop.f32.mrb[99].mxu0  ;;  %2160 = vmatprep.subr.bf16.mxu0 %v7399_v36  ;;  %v9823_v54 = vld [vmem:[#allocation7 + $0x78] sm:$0xff]  ;;  %v11709_v44 = vpack.c.bf16 %v9556_v3, %v9552_v50  ;;  %v11758_v15 = vld [vmem:[#allocation23_spill] sm:$0xff] }
 0x30f   : > { %11705 = vst [vmem:[#allocation74_spill] sm:$0xff] %v9808_v61  ;;  %v9816_v1 = vmul.f32 %v9628_v62, %v1736_v35  ;;  %6246 = vmatmul.mubr.bf16.gmra.mrb[140].mxu1 %v11708_v28  ;;  %v7414_v62 = vcombine.low %v820_v21, %v828_v31  ;;  %v7305_v47 = vcombine.high %v9821_v6, %v9823_v54 }
 0x310   : > { %11706 = vst [vmem:[#allocation75_spill] sm:$0xff] %v9813_v32  ;;  %2098 = vmatmul.mubr.bf16.gmra.mrb[204].mxu0 %v9334_v46  ;;  %6255 = vmatprep.mubr.bf16.mxu1 %v11709_v44  ;;  %v11727_v44 = vld [vmem:[#allocation32_spill] sm:$0xff] }
 0x311   : > { %11707 = vst [vmem:[#allocation76_spill] sm:$0xff] %v9816_v1  ;;  %2107 = vmatprep.mubr.bf16.mxu0 %v11654_v24  ;;  %2161 = vmatpush1.bf16.msra.mxu0 %v7398_v53 }
 0x312   : > { %v9834_v4 = vpop.f32.mrb[68].mxu1  ;;  %2162 = vmatprep.subr.bf16.mxu0 %v7415_v23 }
 0x313   : > { %v1740_v34 = vpop.f32.mrb[100].mxu0  ;;  %v9838_v36 = vpop.f32.mrb[69].mxu1 }
 0x314   : > { %v9841_v11 = vmul.f32 %v9639_v56, %v1740_v34  ;;  %v1742_v50 = vpop.f32.mrb[101].mxu0  ;;  %v9843_v3 = vpop.f32.mrb[70].mxu1  ;;  %v11714_v56 = vpack.c.bf16 %v9554_v59, %v9550_v26 }
 0x315   : > { %v9846_v21 = vmul.f32 %v9644_v55, %v1742_v50  ;;  %v1744_v31 = vpop.f32.mrb[102].mxu0  ;;  %v9848_v53 = vpop.f32.mrb[71].mxu1  ;;  %2163 = vmatpush1.bf16.msra.mxu0 %v7414_v62  ;;  %v11715_v55 = vpack.c.bf16 %v9574_v43, %v9568_v20 }
 0x316   : > { %11710 = vst [vmem:[#allocation77_spill] sm:$0xff] %v9841_v11  ;;  %v9851_v35 = vmul.f32 %v9650_v58, %v1744_v31  ;;  %v1746_v23 = vpop.f32.mrb[103].mxu0  ;;  %2261 = vmatprep.subr.bf16.mxu0 %v7305_v47  ;;  %v11728_v58 = vld [vmem:[#allocation31_spill] sm:$0xff]  ;;  %v749_v11 = vld [vmem:[#allocation7 + $0x178] sm:$0xff] }
 0x317   : > { %11711 = vst [vmem:[#allocation78_spill] sm:$0xff] %v9846_v21  ;;  %v9854_v28 = vmul.f32 %v9654_v16, %v1746_v23  ;;  %6256 = vmatmul.mubr.bf16.gmra.mrb[144].mxu1 %v11714_v56  ;;  %v765_v21 = vld [vmem:[#allocation7 + $0x1f8] sm:$0xff] }
 0x318   : > { %11712 = vst [vmem:[#allocation79_spill] sm:$0xff] %v9851_v35  ;;  %2108 = vmatmul.mubr.bf16.gmra.mrb[208].mxu0 %v9358_v14  ;;  %6265 = vmatprep.mubr.bf16.mxu1 %v11715_v55  ;;  %v11725_v55 = vld [vmem:[#allocation52_spill] sm:$0xff] }
 0x319   : > { %11713 = vst [vmem:[#allocation80_spill] sm:$0xff] %v9854_v28  ;;  %2117 = vmatprep.mubr.bf16.mxu0 %v11654_v24  ;;  %v11749_v35 = vld [vmem:[#allocation20_spill] sm:$0xff] }
 0x31a   : > { %v9868_v16 = vpop.f32.mrb[72].mxu1 }
 0x31b   : > { %v1750_v62 = vpop.f32.mrb[104].mxu0  ;;  %v9870_v47 = vpop.f32.mrb[73].mxu1 }
 0x31c   : > { %v9873_v26 = vmul.f32 %v9661_v5, %v1750_v62  ;;  %v1752_v59 = vpop.f32.mrb[105].mxu0  ;;  %v9875_v34 = vpop.f32.mrb[74].mxu1  ;;  %v11720_v5 = vpack.c.bf16 %v9572_v41, %v9566_v49 }
 0x31d   : > { %v9878_v43 = vmul.f32 %v9666_v17, %v1752_v59  ;;  %v1754_v20 = vpop.f32.mrb[106].mxu0  ;;  %v9880_v50 = vpop.f32.mrb[75].mxu1  ;;  %v11721_v17 = vpack.c.bf16 %v9590_v51, %v9586_v9 }
 0x31e   : > { %11716 = vst [vmem:[#allocation81_spill] sm:$0xff] %v9873_v26  ;;  %v9883_v31 = vmul.f32 %v9670_v39, %v1754_v20  ;;  %v1756_v23 = vpop.f32.mrb[107].mxu0 }
 0x31f   : > { %11717 = vst [vmem:[#allocation82_spill] sm:$0xff] %v9878_v43  ;;  %v9886_v56 = vmul.f32 %v9674_v13, %v1756_v23  ;;  %6266 = vmatmul.mubr.bf16.gmra.mrb[148].mxu1 %v11720_v5  ;;  %v11745_v43 = vld [vmem:[#allocation61_spill] sm:$0xff] }
 0x320   : > { %11718 = vst [vmem:[#allocation83_spill] sm:$0xff] %v9883_v31  ;;  %2118 = vmatmul.mubr.bf16.gmra.mrb[212].mxu0 %v9370_v30  ;;  %6275 = vmatprep.mubr.bf16.mxu1 %v11721_v17  ;;  %v11743_v31 = vld [vmem:[#allocation59_spill] sm:$0xff] }
 0x321   : > { %11719 = vst [vmem:[#allocation84_spill] sm:$0xff] %v9886_v56  ;;  %2127 = vmatprep.mubr.bf16.mxu0 %v11654_v24 }
 0x322   : > { %v9900_v13 = vpop.f32.mrb[76].mxu1 }
 0x323   : > { %v1760_v62 = vpop.f32.mrb[108].mxu0  ;;  %v9902_v59 = vpop.f32.mrb[77].mxu1 }
 0x324   : > { %v9905_v41 = vmul.f32 %v9681_v18, %v1760_v62  ;;  %v1762_v49 = vpop.f32.mrb[109].mxu0  ;;  %v9907_v20 = vpop.f32.mrb[78].mxu1  ;;  %v11729_v18 = vpack.c.bf16 %v11727_v44, %v11728_v58  ;;  %v11730_v62 = vld [vmem:[#allocation28_spill] sm:$0xff] }
 0x325   : > { %v9910_v9 = vmul.f32 %v9686_v45, %v1762_v49  ;;  %v1764_v51 = vpop.f32.mrb[110].mxu0  ;;  %v9912_v23 = vpop.f32.mrb[79].mxu1  ;;  %v11733_v45 = vpack.c.bf16 %v11731_v48, %v11732_v57 }
 0x326   : > { %11722 = vst [vmem:[#allocation85_spill] sm:$0xff] %v9905_v41  ;;  %v9915_v5 = vmul.f32 %v9690_v38, %v1764_v51  ;;  %v1766_v17 = vpop.f32.mrb[111].mxu0  ;;  %v11737_v41 = vld [vmem:[#allocation57_spill] sm:$0xff] }
 0x327   : > { %11723 = vst [vmem:[#allocation86_spill] sm:$0xff] %v9910_v9  ;;  %v9918_v39 = vmul.f32 %v11725_v55, %v1766_v17  ;;  %6276 = vmatmul.mubr.bf16.gmra.mrb[152].mxu1 %v11729_v18  ;;  %v11739_v9 = vld [vmem:[#allocation35_spill] sm:$0xff] }
 0x328   : > { %11724 = vst [vmem:[#allocation87_spill] sm:$0xff] %v9915_v5  ;;  %2128 = vmatmul.mubr.bf16.gmra.mrb[216].mxu0 %v11730_v62  ;;  %6285 = vmatprep.mubr.bf16.mxu1 %v11733_v45 }
 0x329   : > { %11726 = vst [vmem:[#allocation52_spill] sm:$0xff] %v9918_v39  ;;  %2137 = vmatprep.mubr.bf16.mxu0 %v11654_v24  ;;  %v11740_v39 = vld [vmem:[#allocation33_spill] sm:$0xff] }
 0x32a   : > { %v9932_v55 = vpop.f32.mrb[80].mxu1 }
 0x32b   : > { %v1770_v51 = vpop.f32.mrb[112].mxu0  ;;  %v9934_v17 = vpop.f32.mrb[81].mxu1 }
 0x32c   : > { %v9937_v44 = vmul.f32 %v9701_v0, %v1770_v51  ;;  %v1772_v58 = vpop.f32.mrb[113].mxu0  ;;  %v9939_v18 = vpop.f32.mrb[82].mxu1  ;;  %v11741_v0 = vpack.c.bf16 %v11739_v9, %v11740_v39  ;;  %v11742_v51 = vld [vmem:[#allocation30_spill] sm:$0xff] }
 0x32d   : > { %v9942_v48 = vmul.f32 %v9706_v19, %v1772_v58  ;;  %v1774_v57 = vpop.f32.mrb[114].mxu0  ;;  %v9944_v45 = vpop.f32.mrb[83].mxu1  ;;  %v7304_v58 = vcombine.low %v9821_v6, %v9823_v54 }
 0x32e   : > { %11734 = vst [vmem:[#allocation32_spill] sm:$0xff] %v9937_v44  ;;  %v9947_v49 = vmul.f32 %v9710_v7, %v1774_v57  ;;  %v1776_v38 = vpop.f32.mrb[115].mxu0 }
 0x32f   : > { %11735 = vst [vmem:[#allocation31_spill] sm:$0xff] %v9942_v48  ;;  %v9950_v5 = vmul.f32 %v11737_v41, %v1776_v38  ;;  %6286 = vmatmul.mubr.bf16.gmra.mrb[156].mxu1 %v11741_v0  ;;  %v725_v41 = vld [vmem:[#allocation7 + $0xb8] sm:$0xff] }
 0x330   : > { %11736 = vst [vmem:[#allocation28_spill] sm:$0xff] %v9947_v49  ;;  %2138 = vmatmul.mubr.bf16.gmra.mrb[220].mxu0 %v11742_v51  ;;  %v733_v38 = vld [vmem:[#allocation7 + $0xf8] sm:$0xff] }
 0x331   : > { %11738 = vst [vmem:[#allocation36_spill] sm:$0xff] %v9950_v5  ;;  %2180 = vmatprep.mubr.bf16.mxu0 %v11654_v24  ;;  %v7321_v56 = vcombine.high %v725_v41, %v733_v38 }
 0x332   : > { %v9961_v7 = vpop.f32.mrb[84].mxu1 }
 0x333   : > { %v1780_v57 = vpop.f32.mrb[116].mxu0  ;;  %v9963_v26 = vpop.f32.mrb[85].mxu1 }
 0x334   : > { %v9966_v39 = vmul.f32 %v11743_v31, %v1780_v57  ;;  %v1782_v9 = vpop.f32.mrb[117].mxu0  ;;  %v9968_v0 = vpop.f32.mrb[86].mxu1  ;;  %v741_v57 = vld [vmem:[#allocation7 + $0x138] sm:$0xff] }
 0x335   : > { %v9971_v19 = vmul.f32 %v11745_v43, %v1782_v9  ;;  %v1784_v44 = vpop.f32.mrb[118].mxu0  ;;  %v9973_v49 = vpop.f32.mrb[87].mxu1  ;;  %v7320_v9 = vcombine.low %v725_v41, %v733_v38  ;;  %v7337_v54 = vcombine.high %v741_v57, %v749_v11 }
 0x336   : > { %11744 = vst [vmem:[#allocation34_spill] sm:$0xff] %v9966_v39  ;;  %v9978_v48 = vmul.f32 %v9732_v2, %v1784_v44  ;;  %v1786_v5 = vpop.f32.mrb[119].mxu0  ;;  %v757_v44 = vld [vmem:[#allocation7 + $0x1b8] sm:$0xff] }
 0x337   : > { %11746 = vst [vmem:[#allocation57_spill] sm:$0xff] %v9971_v19  ;;  %v9981_v31 = vmul.f32 %v9736_v52, %v1786_v5  ;;  %v7353_v19 = vcombine.high %v757_v44, %v765_v21 }
 0x338   : > { %11747 = vst [vmem:[#allocation35_spill] sm:$0xff] %v9978_v48  ;;  %2181 = vmatmul.mubr.bf16.vlgmr.msra.gmra.mrb[224].mxu0 %v11749_v35 }
 0x339   : > { %11748 = vst [vmem:[#allocation33_spill] sm:$0xff] %v9981_v31  ;;  %2262 = vmatpush1.bf16.msra.mxu0 %v7304_v58  ;;  %2190 = vmatprep.mubr.bf16.mxu0 %v11654_v24  ;;  %v781_v31 = vld [vmem:[#allocation7 + $0x278] sm:$0xff] }
 0x33a   : > { %v9989_v6 = vpop.f32.mrb[88].mxu1  ;;  %2263 = vmatprep.subr.bf16.mxu0 %v7321_v56  ;;  %v7336_v56 = vcombine.low %v741_v57, %v749_v11  ;;  %v7352_v11 = vcombine.low %v757_v44, %v765_v21 }
 0x33b   : > { %v1790_v52 = vpop.f32.mrb[120].mxu0  ;;  %v9991_v5 = vpop.f32.mrb[89].mxu1 }
 0x33c   : > { %v9994_v28 = vmul.f32 %v9750_v42, %v1790_v52  ;;  %v1792_v43 = vpop.f32.mrb[121].mxu0  ;;  %v9996_v58 = vpop.f32.mrb[90].mxu1  ;;  %v773_v52 = vld [vmem:[#allocation7 + $0x238] sm:$0xff] }
 0x33d   : > { %v9999_v41 = vmul.f32 %v9754_v22, %v1792_v43  ;;  %v1794_v38 = vpop.f32.mrb[122].mxu0  ;;  %v10001_v2 = vpop.f32.mrb[91].mxu1  ;;  %2264 = vmatpush1.bf16.msra.mxu0 %v7320_v9  ;;  %v7369_v43 = vcombine.high %v773_v52, %v781_v31  ;;  %v789_v9 = vld [vmem:[#allocation7 + $0x2b8] sm:$0xff] }
 0x33e   : > { %11750 = vst [vmem:[#allocation30_spill] sm:$0xff] %v9994_v28  ;;  %v10004_v39 = vmul.f32 %v9758_v8, %v1794_v38  ;;  %v1796_v48 = vpop.f32.mrb[123].mxu0  ;;  %2265 = vmatprep.subr.bf16.mxu0 %v7337_v54  ;;  %v797_v54 = vld [vmem:[#allocation7 + $0x2f8] sm:$0xff] }
 0x33f   : > { %11751 = vst [vmem:[#allocation59_spill] sm:$0xff] %v9999_v41  ;;  %v10007_v42 = vmul.f32 %v9762_v12, %v1796_v48  ;;  %v7385_v41 = vcombine.high %v789_v9, %v797_v54 }
 0x340   : > { %11752 = vst [vmem:[#allocation61_spill] sm:$0xff] %v10004_v39  ;;  %2191 = vmatmul.mubr.bf16.gmra.mrb[228].mxu0 %v9310_v40 }
 0x341   : > { %11753 = vst [vmem:[#allocation20_spill] sm:$0xff] %v10007_v42  ;;  %2200 = vmatprep.mubr.bf16.mxu0 %v11654_v24  ;;  %2266 = vmatpush1.bf16.msra.mxu0 %v7336_v56  ;;  %v813_v42 = vld [vmem:[#allocation7 + $0x378] sm:$0xff] }
 0x342   : > { %v10015_v57 = vpop.f32.mrb[92].mxu1  ;;  %2267 = vmatprep.subr.bf16.mxu0 %v7353_v19  ;;  %v7368_v19 = vcombine.low %v773_v52, %v781_v31  ;;  %v7384_v31 = vcombine.low %v789_v9, %v797_v54 }
 0x343   : > { %v1800_v12 = vpop.f32.mrb[124].mxu0  ;;  %v10017_v48 = vpop.f32.mrb[93].mxu1 }
 0x344   : > { %v10020_v38 = vmul.f32 %v9774_v29, %v1800_v12  ;;  %v1802_v22 = vpop.f32.mrb[125].mxu0  ;;  %v10022_v28 = vpop.f32.mrb[94].mxu1  ;;  %v805_v12 = vld [vmem:[#allocation7 + $0x338] sm:$0xff] }
 0x345   : > { %v10025_v21 = vmul.f32 %v9778_v60, %v1802_v22  ;;  %v1804_v44 = vpop.f32.mrb[126].mxu0  ;;  %v10027_v56 = vpop.f32.mrb[95].mxu1  ;;  %2268 = vmatpush1.bf16.msra.mxu0 %v7352_v11  ;;  %v7401_v22 = vcombine.high %v805_v12, %v813_v42  ;;  %v821_v11 = vld [vmem:[#allocation7 + $0x3b8] sm:$0xff]  ;;  %v7400_v54 = vcombine.low %v805_v12, %v813_v42 }
 0x346   : > { %11754 = vst [vmem:[#allocation88_spill] sm:$0xff] %v10020_v38  ;;  %v10030_v8 = vmul.f32 %v9782_v63, %v1804_v44  ;;  %v1806_v39 = vpop.f32.mrb[127].mxu0  ;;  %2269 = vmatprep.subr.bf16.mxu0 %v7369_v43  ;;  %v829_v43 = vld [vmem:[#allocation7 + $0x3f8] sm:$0xff]  ;;  %v10057_v63 = vld [vmem:[#allocation8 + $0x8] sm:$0xff] }
 0x347   : > { %11755 = vst [vmem:[#allocation89_spill] sm:$0xff] %v10025_v21  ;;  %v10033_v29 = vmul.f32 %v9786_v33, %v1806_v39  ;;  %v7416_v21 = vcombine.low %v821_v11, %v829_v43 }
 0x348   : > { %11756 = vst [vmem:[#allocation90_spill] sm:$0xff] %v10030_v8  ;;  %2201 = vmatmul.mubr.bf16.gmra.mrb[232].mxu0 %v11758_v15  ;;  %v10059_v8 = vld [vmem:[#allocation8 + $0x48] sm:$0xff] }
 0x349   : > { %11757 = vst [vmem:[#allocation91_spill] sm:$0xff] %v10033_v29  ;;  %2210 = vmatprep.mubr.bf16.mxu0 %v11654_v24  ;;  %2270 = vmatpush1.bf16.msra.mxu0 %v7368_v19  ;;  %v7421_v42 = vcombine.high %v10057_v63, %v10059_v8 }
 0x34a   : > { %v10041_v52 = vpop.f32.mrb[96].mxu1  ;;  %2271 = vmatprep.subr.bf16.mxu0 %v7385_v41  ;;  %v7417_v41 = vcombine.high %v821_v11, %v829_v43 }
 0x34b   : > { %v10043_v33 = vpop.f32.mrb[128].mxu0  ;;  %v10045_v39 = vpop.f32.mrb[97].mxu1 }
 0x34c   : > { %11759 = vst [vmem:[#allocation23_spill] sm:$0xff] %v10043_v33  ;;  %v10047_v44 = vpop.f32.mrb[129].mxu0  ;;  %v10049_v60 = vpop.f32.mrb[98].mxu1 }
 0x34d   : > { %11760 = vst [vmem:[#allocation92_spill] sm:$0xff] %v10047_v44  ;;  %v10051_v38 = vpop.f32.mrb[130].mxu0  ;;  %v10053_v9 = vpop.f32.mrb[99].mxu1  ;;  %2272 = vmatpush1.bf16.msra.mxu0 %v7384_v31 }
 0x34e   : > { %11761 = vst [vmem:[#allocation93_spill] sm:$0xff] %v10051_v38  ;;  %v10055_v19 = vpop.f32.mrb[131].mxu0  ;;  %2273 = vmatprep.subr.bf16.mxu0 %v7401_v22 }
 0x34f   : > { %11762 = vst [vmem:[#allocation94_spill] sm:$0xff] %v10055_v19 }
 0x350   : > { %2211 = vmatmul.mubr.bf16.gmra.mrb[236].mxu0 %v9334_v46 }
 0x351   : > { %2220 = vmatprep.mubr.bf16.mxu0 %v11654_v24  ;;  %2274 = vmatpush1.bf16.msra.mxu0 %v7400_v54 }
 0x352   : > { %v10063_v29 = vpop.f32.mrb[100].mxu1  ;;  %2275 = vmatprep.subr.bf16.mxu0 %v7417_v41 }
 0x353   : > { %v10067_v12 = vpop.f32.mrb[132].mxu0  ;;  %v10069_v31 = vpop.f32.mrb[101].mxu1 }
 0x354   : > { %11763 = vst [vmem:[#allocation95_spill] sm:$0xff] %v10067_v12  ;;  %v10071_v22 = vpop.f32.mrb[133].mxu0  ;;  %v10073_v32 = vpop.f32.mrb[102].mxu1 }
 0x355   : > { %11764 = vst [vmem:[#allocation96_spill] sm:$0xff] %v10071_v22  ;;  %v10075_v19 = vpop.f32.mrb[134].mxu0  ;;  %v10077_v38 = vpop.f32.mrb[103].mxu1  ;;  %2276 = vmatpush1.bf16.msra.mxu0 %v7416_v21 }
 0x356   : > { %11765 = vst [vmem:[#allocation97_spill] sm:$0xff] %v10075_v19  ;;  %11766 = vst [vmem:[#allocation98_spill] sm:$0xff] %v10077_v38  ;;  %v10079_v11 = vpop.f32.mrb[135].mxu0  ;;  %3263 = vmatprep.subr.bf16.mxu0 %v7421_v42 }
 0x357   : > { %11767 = vst [vmem:[#allocation99_spill] sm:$0xff] %v10079_v11 }
 0x358   : > { %2221 = vmatmul.mubr.bf16.gmra.mrb[240].mxu0 %v9358_v14 }
 0x359   : > { %2230 = vmatprep.mubr.bf16.mxu0 %v11654_v24 }
 0x35a   : > { %v10083_v43 = vpop.f32.mrb[104].mxu1 }
 0x35b   : > { %11768 = vst [vmem:[#allocation100_spill] sm:$0xff] %v10083_v43  ;;  %v10085_v54 = vpop.f32.mrb[136].mxu0  ;;  %v10087_v41 = vpop.f32.mrb[105].mxu1 }
 0x35c   : > { %11769 = vst [vmem:[#allocation101_spill] sm:$0xff] %v10085_v54  ;;  %11770 = vst [vmem:[#allocation102_spill] sm:$0xff] %v10087_v41  ;;  %v10089_v22 = vpop.f32.mrb[137].mxu0  ;;  %v10091_v12 = vpop.f32.mrb[106].mxu1  ;;  %v2415_v41 = vld [vmem:[#allocation8 + $0x108] sm:$0xff] }
 0x35d   : > { %11771 = vst [vmem:[#allocation103_spill] sm:$0xff] %v10089_v22  ;;  %11772 = vst [vmem:[#allocation104_spill] sm:$0xff] %v10091_v12  ;;  %v10093_v19 = vpop.f32.mrb[138].mxu0  ;;  %v10095_v21 = vpop.f32.mrb[107].mxu1 }
 0x35e   : > { %11773 = vst [vmem:[#allocation105_spill] sm:$0xff] %v10093_v19  ;;  %11774 = vst [vmem:[#allocation106_spill] sm:$0xff] %v10095_v21  ;;  %v10097_v11 = vpop.f32.mrb[139].mxu0 }
 0x35f   : > { %11775 = vst [vmem:[#allocation107_spill] sm:$0xff] %v10097_v11 }
 0x360   : > { %2231 = vmatmul.mubr.bf16.gmra.mrb[244].mxu0 %v9370_v30 }
 0x361   : > { %2240 = vmatprep.mubr.bf16.mxu0 %v11654_v24 }
 0x362   : > { %v10101_v42 = vpop.f32.mrb[108].mxu1 }
 0x363   : > { %11776 = vst [vmem:[#allocation108_spill] sm:$0xff] %v10101_v42  ;;  %v10103_v61 = vpop.f32.mrb[140].mxu0  ;;  %v10105_v54 = vpop.f32.mrb[109].mxu1 }
 0x364   : > { %11777 = vst [vmem:[#allocation109_spill] sm:$0xff] %v10103_v61  ;;  %11778 = vst [vmem:[#allocation110_spill] sm:$0xff] %v10105_v54  ;;  %v10107_v1 = vpop.f32.mrb[141].mxu0  ;;  %v10109_v22 = vpop.f32.mrb[110].mxu1 }
 0x365   : > { %11779 = vst [vmem:[#allocation111_spill] sm:$0xff] %v10107_v1  ;;  %11780 = vst [vmem:[#allocation112_spill] sm:$0xff] %v10109_v22  ;;  %v10111_v44 = vpop.f32.mrb[142].mxu0  ;;  %v10113_v19 = vpop.f32.mrb[111].mxu1 }
 0x366   : > { %11781 = vst [vmem:[#allocation113_spill] sm:$0xff] %v10111_v44  ;;  %11782 = vst [vmem:[#allocation114_spill] sm:$0xff] %v10113_v19  ;;  %v10115_v33 = vpop.f32.mrb[143].mxu0 }
 0x367   : > { %11783 = vst [vmem:[#allocation115_spill] sm:$0xff] %v10115_v33 }
 0x368   : > { %2241 = vmatmul.mubr.bf16.gmra.mrb[248].mxu0 %v11730_v62 }
 0x369   : > { %2250 = vmatprep.mubr.bf16.mxu0 %v11654_v24 }
 0x36a   : > { %v10119_v11 = vpop.f32.mrb[112].mxu1 }
 0x36b   : > { %11784 = vst [vmem:[#allocation116_spill] sm:$0xff] %v10119_v11  ;;  %v10121_v42 = vpop.f32.mrb[144].mxu0  ;;  %v10123_v61 = vpop.f32.mrb[113].mxu1 }
 0x36c   : > { %11785 = vst [vmem:[#allocation117_spill] sm:$0xff] %v10121_v42  ;;  %11786 = vst [vmem:[#allocation118_spill] sm:$0xff] %v10123_v61  ;;  %v10125_v54 = vpop.f32.mrb[145].mxu0  ;;  %v10127_v1 = vpop.f32.mrb[114].mxu1  ;;  %v2399_v61 = vld [vmem:[#allocation8 + $0x88] sm:$0xff] }
 0x36d   : > { %11787 = vst [vmem:[#allocation119_spill] sm:$0xff] %v10125_v54  ;;  %11788 = vst [vmem:[#allocation120_spill] sm:$0xff] %v10127_v1  ;;  %v10129_v22 = vpop.f32.mrb[146].mxu0  ;;  %v10131_v44 = vpop.f32.mrb[115].mxu1  ;;  %v2407_v54 = vld [vmem:[#allocation8 + $0xc8] sm:$0xff] }
 0x36e   : > { %11789 = vst [vmem:[#allocation121_spill] sm:$0xff] %v10129_v22  ;;  %11790 = vst [vmem:[#allocation122_spill] sm:$0xff] %v10131_v44  ;;  %v10133_v19 = vpop.f32.mrb[147].mxu0 }
 0x36f   : > { %11791 = vst [vmem:[#allocation123_spill] sm:$0xff] %v10133_v19  ;;  %v7420_v19 = vcombine.low %v10057_v63, %v10059_v8  ;;  %v2431_v8 = vld [vmem:[#allocation8 + $0x188] sm:$0xff] }
 0x370   : > { %2251 = vmatmul.mubr.bf16.gmra.mrb[252].mxu0 %v11742_v51  ;;  %v2439_v63 = vld [vmem:[#allocation8 + $0x1c8] sm:$0xff] }
 0x371   : > { %2293 = vmatprep.mubr.bf16.mxu0 %v11654_v24 }
 0x372   : > { %v10137_v33 = vpop.f32.mrb[116].mxu1 }
 0x373   : > { %11792 = vst [vmem:[#allocation124_spill] sm:$0xff] %v10137_v33  ;;  %v10139_v11 = vpop.f32.mrb[148].mxu0  ;;  %v10141_v42 = vpop.f32.mrb[117].mxu1  ;;  %v7437_v33 = vcombine.high %v2399_v61, %v2407_v54 }
 0x374   : > { %11793 = vst [vmem:[#allocation125_spill] sm:$0xff] %v10139_v11  ;;  %11794 = vst [vmem:[#allocation126_spill] sm:$0xff] %v10141_v42  ;;  %v10143_v21 = vpop.f32.mrb[149].mxu0  ;;  %v10145_v1 = vpop.f32.mrb[118].mxu1  ;;  %v2423_v11 = vld [vmem:[#allocation8 + $0x148] sm:$0xff] }
 0x375   : > { %11795 = vst [vmem:[#allocation127_spill] sm:$0xff] %v10143_v21  ;;  %11796 = vst [vmem:[#allocation128_spill] sm:$0xff] %v10145_v1  ;;  %v10147_v22 = vpop.f32.mrb[150].mxu0  ;;  %v10149_v44 = vpop.f32.mrb[119].mxu1  ;;  %v7436_v21 = vcombine.low %v2399_v61, %v2407_v54  ;;  %v7452_v61 = vcombine.low %v2415_v41, %v2423_v11  ;;  %v2447_v54 = vld [vmem:[#allocation8 + $0x208] sm:$0xff] }
 0x376   : > { %11797 = vst [vmem:[#allocation129_spill] sm:$0xff] %v10147_v22  ;;  %11798 = vst [vmem:[#allocation130_spill] sm:$0xff] %v10149_v44  ;;  %v10153_v12 = vpop.f32.mrb[151].mxu0  ;;  %v7453_v22 = vcombine.high %v2415_v41, %v2423_v11  ;;  %v2463_v11 = vld [vmem:[#allocation8 + $0x288] sm:$0xff] }
 0x377   : > { %11799 = vst [vmem:[#allocation131_spill] sm:$0xff] %v10153_v12  ;;  %v2471_v41 = vld [vmem:[#allocation8 + $0x2c8] sm:$0xff] }
 0x378   : > { %2294 = vmatmul.mubr.bf16.vlgmr.msra.gmra.mrb[0].mxu0 %v11749_v35 }
 0x379   : > { %3264 = vmatpush1.bf16.msra.mxu0 %v7420_v19  ;;  %2303 = vmatprep.mubr.bf16.mxu0 %v11654_v24 }
 0x37a   : > { %v10157_v42 = vpop.f32.mrb[120].mxu1  ;;  %3265 = vmatprep.subr.bf16.mxu0 %v7437_v33  ;;  %v7469_v33 = vcombine.high %v2431_v8, %v2439_v63 }
 0x37b   : > { %v10159_v1 = vpop.f32.mrb[152].mxu0  ;;  %v10161_v44 = vpop.f32.mrb[121].mxu1 }
 0x37c   : > { %11800 = vst [vmem:[#allocation132_spill] sm:$0xff] %v10159_v1  ;;  %11801 = vst [vmem:[#allocation133_spill] sm:$0xff] %v10161_v44  ;;  %v10163_v12 = vpop.f32.mrb[153].mxu0  ;;  %v10165_v43 = vpop.f32.mrb[122].mxu1  ;;  %v2455_v1 = vld [vmem:[#allocation8 + $0x248] sm:$0xff] }
 0x37d   : > { %11802 = vst [vmem:[#allocation134_spill] sm:$0xff] %v10163_v12  ;;  %11803 = vst [vmem:[#allocation135_spill] sm:$0xff] %v10165_v43  ;;  %v10167_v38 = vpop.f32.mrb[154].mxu0  ;;  %v10169_v35 = vpop.f32.mrb[123].mxu1  ;;  %3266 = vmatpush1.bf16.msra.mxu0 %v7436_v21  ;;  %v7468_v12 = vcombine.low %v2431_v8, %v2439_v63  ;;  %v7484_v8 = vcombine.low %v2447_v54, %v2455_v1 }
 0x37e   : > { %11804 = vst [vmem:[#allocation136_spill] sm:$0xff] %v10167_v38  ;;  %11805 = vst [vmem:[#allocation137_spill] sm:$0xff] %v10169_v35  ;;  %v10171_v19 = vpop.f32.mrb[155].mxu0  ;;  %3267 = vmatprep.subr.bf16.mxu0 %v7453_v22  ;;  %v7485_v38 = vcombine.high %v2447_v54, %v2455_v1 }
 0x37f   : > { %11806 = vst [vmem:[#allocation138_spill] sm:$0xff] %v10171_v19 }
 0x380   : > { %2304 = vmatmul.mubr.bf16.gmra.mrb[4].mxu0 %v9310_v40 }
 0x381   : > { %2313 = vmatprep.mubr.bf16.mxu0 %v11654_v24  ;;  %3268 = vmatpush1.bf16.msra.mxu0 %v7452_v61  ;;  %v7501_v61 = vcombine.high %v2463_v11, %v2471_v41 }
 0x382   : > { %v10175_v44 = vpop.f32.mrb[124].mxu1  ;;  %3269 = vmatprep.subr.bf16.mxu0 %v7469_v33  ;;  %v2479_v33 = vld [vmem:[#allocation8 + $0x308] sm:$0xff] }
 0x383   : > { %11807 = vst [vmem:[#allocation139_spill] sm:$0xff] %v10175_v44  ;;  %v10177_v43 = vpop.f32.mrb[156].mxu0  ;;  %v10179_v21 = vpop.f32.mrb[125].mxu1  ;;  %v2503_v44 = vld [vmem:[#allocation8 + $0x3c8] sm:$0xff] }
 0x384   : > { %11808 = vst [vmem:[#allocation140_spill] sm:$0xff] %v10177_v43  ;;  %11809 = vst [vmem:[#allocation141_spill] sm:$0xff] %v10179_v21  ;;  %v10181_v22 = vpop.f32.mrb[157].mxu0  ;;  %v10183_v19 = vpop.f32.mrb[126].mxu1  ;;  %v2487_v43 = vld [vmem:[#allocation8 + $0x348] sm:$0xff] }
 0x385   : > { %11810 = vst [vmem:[#allocation142_spill] sm:$0xff] %v10181_v22  ;;  %11811 = vst [vmem:[#allocation143_spill] sm:$0xff] %v10183_v19  ;;  %v10185_v35 = vpop.f32.mrb[158].mxu0  ;;  %v10187_v40 = vpop.f32.mrb[127].mxu1  ;;  %3270 = vmatpush1.bf16.msra.mxu0 %v7468_v12  ;;  %v7500_v22 = vcombine.low %v2463_v11, %v2471_v41  ;;  %v7517_v19 = vcombine.high %v2479_v33, %v2487_v43 }
 0x386   : > { %11812 = vst [vmem:[#allocation144_spill] sm:$0xff] %v10185_v35  ;;  %v10189_v63 = vpop.f32.mrb[159].mxu0  ;;  %3271 = vmatprep.subr.bf16.mxu0 %v7485_v38  ;;  %v2495_v35 = vld [vmem:[#allocation8 + $0x388] sm:$0xff] }
 0x387   : > { %11813 = vst [vmem:[#allocation145_spill] sm:$0xff] %v10189_v63  ;;  %v7516_v63 = vcombine.low %v2479_v33, %v2487_v43  ;;  %v7533_v11 = vcombine.high %v2495_v35, %v2503_v44 }
 0x388   : > { %2314 = vmatmul.mubr.bf16.gmra.mrb[8].mxu0 %v11758_v15 }
 0x389   : > { %2323 = vmatprep.mubr.bf16.mxu0 %v11654_v24  ;;  %3272 = vmatpush1.bf16.msra.mxu0 %v7484_v8 }
 0x38a   : > { %3273 = vmatprep.subr.bf16.mxu0 %v7501_v61  ;;  %v10205_v61 = vld [vmem:[#allocation8 + $0x18] sm:$0xff] }
 0x38b   : > { %v1956_v21 = vpop.f32.mrb[160].mxu0 }
 0x38c   : > { %v10194_v12 = vmul.f32 %v9798_v25, %v1956_v21  ;;  %v1958_v1 = vpop.f32.mrb[161].mxu0  ;;  %v10207_v25 = vld [vmem:[#allocation8 + $0x58] sm:$0xff] }
 0x38d   : > { %v10197_v38 = vmul.f32 %v9800_v27, %v1958_v1  ;;  %v1960_v54 = vpop.f32.mrb[162].mxu0  ;;  %3274 = vmatpush1.bf16.msra.mxu0 %v7500_v22 }
 0x38e   : > { %11814 = vst [vmem:[#allocation146_spill] sm:$0xff] %v10194_v12  ;;  %v10200_v15 = vmul.f32 %v9805_v10, %v1960_v54  ;;  %v1962_v8 = vpop.f32.mrb[163].mxu0  ;;  %3275 = vmatprep.subr.bf16.mxu0 %v7517_v19  ;;  %v7532_v10 = vcombine.low %v2495_v35, %v2503_v44  ;;  %v2457_v35 = vld [vmem:[#allocation8 + $0x258] sm:$0xff] }
 0x38f   : > { %11815 = vst [vmem:[#allocation147_spill] sm:$0xff] %v10197_v38  ;;  %v10203_v41 = vmul.f32 %v9810_v37, %v1962_v8  ;;  %v7425_v37 = vcombine.high %v10205_v61, %v10207_v25 }
 0x390   : > { %11816 = vst [vmem:[#allocation148_spill] sm:$0xff] %v10200_v15  ;;  %2324 = vmatmul.mubr.bf16.gmra.mrb[12].mxu0 %v9334_v46 }
 0x391   : > { %11817 = vst [vmem:[#allocation149_spill] sm:$0xff] %v10203_v41  ;;  %2333 = vmatprep.mubr.bf16.mxu0 %v11654_v24  ;;  %3276 = vmatpush1.bf16.msra.mxu0 %v7516_v63 }
 0x392   : > { %3277 = vmatprep.subr.bf16.mxu0 %v7533_v11 }
 0x393   : > { %v1966_v19 = vpop.f32.mrb[164].mxu0 }
 0x394   : > { %v10218_v21 = vmul.f32 %v9834_v4, %v1966_v19  ;;  %v1968_v22 = vpop.f32.mrb[165].mxu0  ;;  %v2489_v4 = vld [vmem:[#allocation8 + $0x358] sm:$0xff] }
 0x395   : > { %v10221_v33 = vmul.f32 %v9838_v36, %v1968_v22  ;;  %v1970_v46 = vpop.f32.mrb[166].mxu0  ;;  %3278 = vmatpush1.bf16.msra.mxu0 %v7532_v10 }
 0x396   : > { %11818 = vst [vmem:[#allocation150_spill] sm:$0xff] %v10218_v21  ;;  %v10224_v1 = vmul.f32 %v9843_v3, %v1970_v46  ;;  %v1972_v54 = vpop.f32.mrb[167].mxu0  ;;  %3489 = vmatprep.subr.bf16.mxu0 %v7425_v37  ;;  %v2435_v21 = vld [vmem:[#allocation8 + $0x1a8] sm:$0xff] }
 0x397   : > { %11819 = vst [vmem:[#allocation151_spill] sm:$0xff] %v10221_v33  ;;  %v10227_v44 = vmul.f32 %v9848_v53, %v1972_v54 }
 0x398   : > { %11820 = vst [vmem:[#allocation152_spill] sm:$0xff] %v10224_v1  ;;  %2334 = vmatmul.mubr.bf16.gmra.mrb[16].mxu0 %v9358_v14 }
 0x399   : > { %11821 = vst [vmem:[#allocation153_spill] sm:$0xff] %v10227_v44  ;;  %2343 = vmatprep.mubr.bf16.mxu0 %v11654_v24 }
 0x39b   : > { %v1976_v36 = vpop.f32.mrb[168].mxu0 }
 0x39c   : > { %v10236_v63 = vmul.f32 %v9868_v16, %v1976_v36  ;;  %v1978_v3 = vpop.f32.mrb[169].mxu0  ;;  %v2417_v36 = vld [vmem:[#allocation8 + $0x118] sm:$0xff] }
 0x39d   : > { %v10239_v8 = vmul.f32 %v9870_v47, %v1978_v3  ;;  %v1980_v53 = vpop.f32.mrb[170].mxu0 }
 0x39e   : > { %11822 = vst [vmem:[#allocation154_spill] sm:$0xff] %v10236_v63  ;;  %v10242_v11 = vmul.f32 %v9875_v34, %v1980_v53  ;;  %v1982_v10 = vpop.f32.mrb[171].mxu0  ;;  %v8315_v63 = vld [vmem:[#allocation10 + $0x194] ss:$8 sps:$4 sm:$0xff]  }
 0x39f   : > { %11823 = vst [vmem:[#allocation155_spill] sm:$0xff] %v10239_v8  ;;  %v10245_v14 = vmul.f32 %v9880_v50, %v1982_v10 }
 0x3a0   : > { %11824 = vst [vmem:[#allocation156_spill] sm:$0xff] %v10242_v11  ;;  %2344 = vmatmul.mubr.bf16.gmra.mrb[20].mxu0 %v9370_v30  ;;  %v2427_v11 = vld [vmem:[#allocation8 + $0x168] sm:$0xff] }
 0x3a1   : > { %11825 = vst [vmem:[#allocation157_spill] sm:$0xff] %v10245_v14  ;;  %2353 = vmatprep.mubr.bf16.mxu0 %v11654_v24 }
 0x3a3   : > { %v1986_v47 = vpop.f32.mrb[172].mxu0 }
 0x3a4   : > { %v10254_v19 = vmul.f32 %v9900_v13, %v1986_v47  ;;  %v1988_v34 = vpop.f32.mrb[173].mxu0  ;;  %v2425_v13 = vld [vmem:[#allocation8 + $0x158] sm:$0xff] }
 0x3a5   : > { %v10257_v22 = vmul.f32 %v9902_v59, %v1988_v34  ;;  %v1990_v50 = vpop.f32.mrb[174].mxu0  ;;  %v7456_v16 = vcombine.low %v2417_v36, %v2425_v13 }
 0x3a6   : > { %11826 = vst [vmem:[#allocation158_spill] sm:$0xff] %v10254_v19  ;;  %v10260_v46 = vmul.f32 %v9907_v20, %v1990_v50  ;;  %v1992_v54 = vpop.f32.mrb[175].mxu0  ;;  %v2401_v50 = vld [vmem:[#allocation8 + $0x98] sm:$0xff]  ;;  %v8312_v19 = vld [vmem:[#allocation10 + $0x184] ss:$8 sps:$4 sm:$0xff]  }
 0x3a7   : > { %11827 = vst [vmem:[#allocation159_spill] sm:$0xff] %v10257_v22  ;;  %v10263_v30 = vmul.f32 %v9912_v23, %v1992_v54  ;;  %v2409_v54 = vld [vmem:[#allocation8 + $0xd8] sm:$0xff] }
 0x3a8   : > { %11828 = vst [vmem:[#allocation160_spill] sm:$0xff] %v10260_v46  ;;  %2354 = vmatmul.mubr.bf16.gmra.mrb[24].mxu0 %v11730_v62  ;;  %v7441_v34 = vcombine.high %v2401_v50, %v2409_v54 }
 0x3a9   : > { %11829 = vst [vmem:[#allocation161_spill] sm:$0xff] %v10263_v30  ;;  %2363 = vmatprep.mubr.bf16.mxu0 %v11654_v24  ;;  %v8313_v30 = vld [vmem:[#allocation10 + $0x190] ss:$8 sps:$4 sm:$0xff]  }
 0x3ab   : > { %v1996_v59 = vpop.f32.mrb[176].mxu0 }
 0x3ac   : > { %v10272_v3 = vmul.f32 %v9932_v55, %v1996_v59  ;;  %v1998_v20 = vpop.f32.mrb[177].mxu0 }
 0x3ad   : > { %v10275_v53 = vmul.f32 %v9934_v17, %v1998_v20  ;;  %v2000_v23 = vpop.f32.mrb[178].mxu0 }
 0x3ae   : > { %11830 = vst [vmem:[#allocation162_spill] sm:$0xff] %v10272_v3  ;;  %v10278_v10 = vmul.f32 %v9939_v18, %v2000_v23  ;;  %v2002_v47 = vpop.f32.mrb[179].mxu0  ;;  %v7424_v23 = vcombine.low %v10205_v61, %v10207_v25  ;;  %v7457_v61 = vcombine.high %v2417_v36, %v2425_v13  ;;  %v2465_v13 = vld [vmem:[#allocation8 + $0x298] sm:$0xff] }
 0x3af   : > { %11831 = vst [vmem:[#allocation163_spill] sm:$0xff] %v10275_v53  ;;  %v10281_v62 = vmul.f32 %v9944_v45, %v2002_v47  ;;  %v8309_v3 = vld [vmem:[#allocation10 + $0x174] ss:$8 sps:$4 sm:$0xff]   ;;  %v2411_v53 = vld [vmem:[#allocation8 + $0xe8] sm:$0xff] }
 0x3b0   : > { %11832 = vst [vmem:[#allocation164_spill] sm:$0xff] %v10278_v10  ;;  %2364 = vmatmul.mubr.bf16.gmra.mrb[28].mxu0 %v11742_v51  ;;  %v11853_v10 = vld [vmem:[#allocation29_spill] sm:$0xff] }
 0x3b1   : > { %11833 = vst [vmem:[#allocation165_spill] sm:$0xff] %v10281_v62  ;;  %3295 = vmatprep.mubr.bf16.mxu0 %v11654_v24  ;;  %v8310_v62 = vld [vmem:[#allocation10 + $0x180] ss:$8 sps:$4 sm:$0xff]  }
 0x3b3   : > { %v2006_v17 = vpop.f32.mrb[180].mxu0 }
 0x3b4   : > { %v10290_v18 = vmul.f32 %v9961_v7, %v2006_v17  ;;  %v2008_v59 = vpop.f32.mrb[181].mxu0  ;;  %v11838_v17 = vld [vmem:[#allocation19_spill] sm:$0xff] }
 0x3b5   : > { %v10293_v45 = vmul.f32 %v9963_v26, %v2008_v59  ;;  %v2010_v20 = vpop.f32.mrb[182].mxu0  ;;  %v2433_v59 = vld [vmem:[#allocation8 + $0x198] sm:$0xff] }
 0x3b6   : > { %11834 = vst [vmem:[#allocation166_spill] sm:$0xff] %v10290_v18  ;;  %v10298_v51 = vmul.f32 %v9968_v0, %v2010_v20  ;;  %v2012_v47 = vpop.f32.mrb[183].mxu0  ;;  %v7440_v0 = vcombine.low %v2401_v50, %v2409_v54  ;;  %v2449_v54 = vld [vmem:[#allocation8 + $0x218] sm:$0xff]  ;;  %v11852_v18 = vld [vmem:[#allocation27_spill] sm:$0xff] }
 0x3b7   : > { %11835 = vst [vmem:[#allocation167_spill] sm:$0xff] %v10293_v45  ;;  %v10301_v55 = vmul.f32 %v9973_v49, %v2012_v47  ;;  %v2441_v49 = vld [vmem:[#allocation8 + $0x1d8] sm:$0xff] }
 0x3b8   : > { %11836 = vst [vmem:[#allocation168_spill] sm:$0xff] %v10298_v51  ;;  %3296 = vmatmul.mubr.bf16.vlgmr.msra.gmra.mrb[32].mxu0 %v11838_v17  ;;  %v8306_v51 = vld [vmem:[#allocation10 + $0x164] ss:$8 sps:$4 sm:$0xff]  }
 0x3b9   : > { %11837 = vst [vmem:[#allocation169_spill] sm:$0xff] %v10301_v55  ;;  %3305 = vmatprep.mubr.bf16.mxu0 %v11654_v24  ;;  %3490 = vmatpush1.bf16.msra.mxu0 %v7424_v23 }
 0x3ba   : > { %3491 = vmatprep.subr.bf16.mxu0 %v7441_v34  ;;  %v7473_v34 = vcombine.high %v2433_v59, %v2441_v49 }
 0x3bb   : > { %v2016_v25 = vpop.f32.mrb[184].mxu0 }
 0x3bc   : > { %v10310_v20 = vmul.f32 %v9989_v6, %v2016_v25  ;;  %v2018_v47 = vpop.f32.mrb[185].mxu0  ;;  %v11843_v25 = vld [vmem:[#allocation21_spill] sm:$0xff]  ;;  %v7488_v6 = vcombine.low %v2449_v54, %v2457_v35 }
 0x3bd   : > { %v10313_v7 = vmul.f32 %v9991_v5, %v2018_v47  ;;  %v2020_v37 = vpop.f32.mrb[186].mxu0  ;;  %3492 = vmatpush1.bf16.msra.mxu0 %v7440_v0 }
 0x3be   : > { %11839 = vst [vmem:[#allocation19_spill] sm:$0xff] %v10310_v20  ;;  %v10316_v26 = vmul.f32 %v9996_v58, %v2020_v37  ;;  %v2022_v23 = vpop.f32.mrb[187].mxu0  ;;  %3493 = vmatprep.subr.bf16.mxu0 %v7457_v61  ;;  %v7472_v58 = vcombine.low %v2433_v59, %v2441_v49  ;;  %v7489_v37 = vcombine.high %v2449_v54, %v2457_v35  ;;  %v8300_v20 = vld [vmem:[#allocation10 + $0x144] ss:$8 sps:$4 sm:$0xff]  }
 0x3bf   : > { %11840 = vst [vmem:[#allocation170_spill] sm:$0xff] %v10313_v7  ;;  %v10319_v50 = vmul.f32 %v10001_v2, %v2022_v23  ;;  %v2473_v2 = vld [vmem:[#allocation8 + $0x2d8] sm:$0xff] }
 0x3c0   : > { %11841 = vst [vmem:[#allocation171_spill] sm:$0xff] %v10316_v26  ;;  %3306 = vmatmul.mubr.bf16.gmra.mrb[36].mxu0 %v11843_v25  ;;  %v7505_v59 = vcombine.high %v2465_v13, %v2473_v2 }
 0x3c1   : > { %11842 = vst [vmem:[#allocation172_spill] sm:$0xff] %v10319_v50  ;;  %3315 = vmatprep.mubr.bf16.mxu0 %v11654_v24  ;;  %3494 = vmatpush1.bf16.msra.mxu0 %v7456_v16  ;;  %v8303_v50 = vld [vmem:[#allocation10 + $0x154] ss:$8 sps:$4 sm:$0xff]  }
 0x3c2   : > { %3495 = vmatprep.subr.bf16.mxu0 %v7473_v34  ;;  %v2481_v34 = vld [vmem:[#allocation8 + $0x318] sm:$0xff] }
 0x3c3   : > { %v2026_v36 = vpop.f32.mrb[188].mxu0  ;;  %v7521_v35 = vcombine.high %v2481_v34, %v2489_v4 }
 0x3c4   : > { %v10328_v0 = vmul.f32 %v10015_v57, %v2026_v36  ;;  %v2028_v61 = vpop.f32.mrb[189].mxu0  ;;  %v11848_v36 = vld [vmem:[#allocation22_spill] sm:$0xff] }
 0x3c5   : > { %v10331_v47 = vmul.f32 %v10017_v48, %v2028_v61  ;;  %v2030_v23 = vpop.f32.mrb[190].mxu0  ;;  %3496 = vmatpush1.bf16.msra.mxu0 %v7472_v58  ;;  %v2505_v58 = vld [vmem:[#allocation8 + $0x3d8] sm:$0xff]  ;;  %v10353_v48 = vld [vmem:[#allocation8 + $0x28] sm:$0xff] }
 0x3c6   : > { %11844 = vst [vmem:[#allocation21_spill] sm:$0xff] %v10328_v0  ;;  %v10334_v5 = vmul.f32 %v10022_v28, %v2030_v23  ;;  %v2032_v16 = vpop.f32.mrb[191].mxu0  ;;  %3497 = vmatprep.subr.bf16.mxu0 %v7489_v37  ;;  %v7504_v28 = vcombine.low %v2465_v13, %v2473_v2  ;;  %v7520_v23 = vcombine.low %v2481_v34, %v2489_v4  ;;  %v11849_v13 = vld [vmem:[#allocation24_spill] sm:$0xff] }
 0x3c7   : > { %11845 = vst [vmem:[#allocation173_spill] sm:$0xff] %v10331_v47  ;;  %v10337_v49 = vmul.f32 %v10027_v56, %v2032_v16  ;;  %v2497_v56 = vld [vmem:[#allocation8 + $0x398] sm:$0xff]  ;;  %v8286_v4 = vld [vmem:[#allocation10 + $0x100] ss:$8 sps:$4 sm:$0xff]   ;;  %v8288_v34 = vld [vmem:[#allocation10 + $0x104] ss:$8 sps:$4 sm:$0xff]  }
 0x3c8   : > { %11846 = vst [vmem:[#allocation174_spill] sm:$0xff] %v10334_v5  ;;  %3316 = vmatmul.mubr.bf16.gmra.mrb[40].mxu0 %v11848_v36  ;;  %v7537_v57 = vcombine.high %v2497_v56, %v2505_v58  ;;  %v7536_v2 = vcombine.low %v2497_v56, %v2505_v58  ;;  %6296 = vmatprep.subr.bf16.mxu1 %v8288_v34  ;;  %v8291_v56 = vld [vmem:[#allocation10 + $0x114] ss:$8 sps:$4 sm:$0xff]   ;;  %v8292_v0 = vld [vmem:[#allocation10 + $0x120] ss:$8 sps:$4 sm:$0xff]  }
 0x3c9   : > { %11847 = vst [vmem:[#allocation175_spill] sm:$0xff] %v10337_v49  ;;  %3325 = vmatprep.mubr.bf16.mxu0 %v11654_v24  ;;  %3498 = vmatpush1.bf16.msra.mxu0 %v7488_v6  ;;  %v10355_v6 = vld [vmem:[#allocation8 + $0x68] sm:$0xff]  ;;  %v11851_v49 = vld [vmem:[#allocation26_spill] sm:$0xff] }
 0x3ca   : > { %3499 = vmatprep.subr.bf16.mxu0 %v7505_v59  ;;  %v7429_v59 = vcombine.high %v10353_v48, %v10355_v6  ;;  %6297 = vmatpush1.bf16.msra.mxu1 %v8286_v4  ;;  %v8294_v5 = vld [vmem:[#allocation10 + $0x124] ss:$8 sps:$4 sm:$0xff]   ;;  %v8297_v4 = vld [vmem:[#allocation10 + $0x134] ss:$8 sps:$4 sm:$0xff]  }
 0x3cb   : > { %v10345_v54 = vpop.f32.mrb[192].mxu0  ;;  %6298 = vmatprep.subr.bf16.mxu1 %v8291_v56  ;;  %v8298_v56 = vld [vmem:[#allocation10 + $0x140] ss:$8 sps:$4 sm:$0xff]  }
 0x3cc   : > { %v10347_v37 = vpop.f32.mrb[193].mxu0 }
 0x3cd   : > { %v10349_v61 = vpop.f32.mrb[194].mxu0  ;;  %3500 = vmatpush1.bf16.msra.mxu0 %v7504_v28 }
 0x3ce   : > { %v10351_v16 = vpop.f32.mrb[195].mxu0  ;;  %3501 = vmatprep.subr.bf16.mxu0 %v7521_v35 }
 0x3d0   : > { %3326 = vmatmul.mubr.bf16.gmra.mrb[44].mxu0 %v11849_v13 }
 0x3d1   : > { %3335 = vmatprep.mubr.bf16.mxu0 %v11654_v24  ;;  %3502 = vmatpush1.bf16.msra.mxu0 %v7520_v23  ;;  %v8289_v23 = vld [vmem:[#allocation10 + $0x110] ss:$8 sps:$4 sm:$0xff]  }
 0x3d2   : > { %3503 = vmatprep.subr.bf16.mxu0 %v7537_v57  ;;  %v11850_v57 = vld [vmem:[#allocation25_spill] sm:$0xff]  ;;  %6299 = vmatpush1.bf16.msra.mxu1 %v8289_v23 }
 0x3d3   : > { %v10361_v28 = vpop.f32.mrb[196].mxu0  ;;  %6300 = vmatprep.subr.bf16.mxu1 %v8294_v5 }
 0x3d4   : > { %v10363_v35 = vpop.f32.mrb[197].mxu0 }
 0x3d5   : > { %v10365_v27 = vpop.f32.mrb[198].mxu0  ;;  %3504 = vmatpush1.bf16.msra.mxu0 %v7536_v2 }
 0x3d6   : > { %v10367_v43 = vpop.f32.mrb[199].mxu0  ;;  %3715 = vmatprep.subr.bf16.mxu0 %v7429_v59  ;;  %6301 = vmatpush1.bf16.msra.mxu1 %v8292_v0  ;;  %v8295_v59 = vld [vmem:[#allocation10 + $0x130] ss:$8 sps:$4 sm:$0xff]  }
 0x3d7   : > { %6302 = vmatprep.subr.bf16.mxu1 %v8297_v4  ;;  %v8301_v0 = vld [vmem:[#allocation10 + $0x150] ss:$8 sps:$4 sm:$0xff]   ;;  %v8304_v4 = vld [vmem:[#allocation10 + $0x160] ss:$8 sps:$4 sm:$0xff]  }
 0x3d8   : > { %3336 = vmatmul.mubr.bf16.gmra.mrb[48].mxu0 %v11850_v57 }
 0x3d9   : > { %3345 = vmatprep.mubr.bf16.mxu0 %v11654_v24 }
 0x3da   : > { %6303 = vmatpush1.bf16.msra.mxu1 %v8295_v59 }
 0x3db   : > { %v10371_v58 = vpop.f32.mrb[200].mxu0  ;;  %6304 = vmatprep.subr.bf16.mxu1 %v8300_v20 }
 0x3dc   : > { %v10373_v47 = vpop.f32.mrb[201].mxu0 }
 0x3dd   : > { %v10375_v2 = vpop.f32.mrb[202].mxu0 }
 0x3de   : > { %v10377_v34 = vpop.f32.mrb[203].mxu0  ;;  %6305 = vmatpush1.bf16.msra.mxu1 %v8298_v56  ;;  %v8307_v56 = vld [vmem:[#allocation10 + $0x170] ss:$8 sps:$4 sm:$0xff]  }
 0x3df   : > { %6306 = vmatprep.subr.bf16.mxu1 %v8303_v50  ;;  %v2403_v50 = vld [vmem:[#allocation8 + $0xa8] sm:$0xff] }
 0x3e0   : > { %3346 = vmatmul.mubr.bf16.gmra.mrb[52].mxu0 %v11851_v49  ;;  %v7444_v8 = vcombine.low %v2403_v50, %v2411_v53 }
 0x3e1   : > { %3355 = vmatprep.mubr.bf16.mxu0 %v11654_v24 }
 0x3e2   : > { %6307 = vmatpush1.bf16.msra.mxu1 %v8301_v0 }
 0x3e3   : > { %v10381_v23 = vpop.f32.mrb[204].mxu0  ;;  %6308 = vmatprep.subr.bf16.mxu1 %v8306_v51 }
 0x3e4   : > { %v10383_v26 = vpop.f32.mrb[205].mxu0 }
 0x3e5   : > { %v10385_v7 = vpop.f32.mrb[206].mxu0 }
 0x3e6   : > { %v10387_v5 = vpop.f32.mrb[207].mxu0  ;;  %6309 = vmatpush1.bf16.msra.mxu1 %v8304_v4  ;;  %v7428_v4 = vcombine.low %v10353_v48, %v10355_v6  ;;  %v2443_v48 = vld [vmem:[#allocation8 + $0x1e8] sm:$0xff] }
 0x3e7   : > { %6310 = vmatprep.subr.bf16.mxu1 %v8309_v3  ;;  %v7445_v3 = vcombine.high %v2403_v50, %v2411_v53  ;;  %v8316_v6 = vld [vmem:[#allocation10 + $0x1a0] ss:$8 sps:$4 sm:$0xff]   ;;  %v7477_v53 = vcombine.high %v2435_v21, %v2443_v48  ;;  %v8319_v50 = vld [vmem:[#allocation10 + $0x1b0] ss:$8 sps:$4 sm:$0xff]   ;;  %v7476_v12 = vcombine.low %v2435_v21, %v2443_v48  ;;  %v8327_v48 = vld [vmem:[#allocation10 + $0x1d4] ss:$8 sps:$4 sm:$0xff]  }
 0x3e8   : > { %3356 = vmatmul.mubr.bf16.gmra.mrb[56].mxu0 %v11852_v18 }
 0x3e9   : > { %3365 = vmatprep.mubr.bf16.mxu0 %v11654_v24 }
 0x3ea   : > { %6311 = vmatpush1.bf16.msra.mxu1 %v8307_v56  ;;  %v2419_v56 = vld [vmem:[#allocation8 + $0x128] sm:$0xff] }
 0x3eb   : > { %v10391_v59 = vpop.f32.mrb[208].mxu0  ;;  %6312 = vmatprep.subr.bf16.mxu1 %v8312_v19  ;;  %v7461_v14 = vcombine.high %v2419_v56, %v2427_v11  ;;  %v7460_v44 = vcombine.low %v2419_v56, %v2427_v11  ;;  %v2467_v11 = vld [vmem:[#allocation8 + $0x2a8] sm:$0xff] }
 0x3ec   : > { %v10393_v45 = vpop.f32.mrb[209].mxu0 }
 0x3ed   : > { %v10395_v55 = vpop.f32.mrb[210].mxu0 }
 0x3ee   : > { %v10397_v20 = vpop.f32.mrb[211].mxu0  ;;  %6313 = vmatpush1.bf16.msra.mxu1 %v8310_v62  ;;  %v8318_v62 = vld [vmem:[#allocation10 + $0x1a4] ss:$8 sps:$4 sm:$0xff]  }
 0x3ef   : > { %6314 = vmatprep.subr.bf16.mxu1 %v8315_v63 }
 0x3f0   : > { %3366 = vmatmul.mubr.bf16.gmra.mrb[60].mxu0 %v11853_v10 }
 0x3f1   : > { %3521 = vmatprep.mubr.bf16.mxu0 %v11654_v24 }
 0x3f2   : > { %6315 = vmatpush1.bf16.msra.mxu1 %v8313_v30  ;;  %v2451_v30 = vld [vmem:[#allocation8 + $0x228] sm:$0xff] }
 0x3f3   : > { %v10401_v0 = vpop.f32.mrb[212].mxu0  ;;  %6316 = vmatprep.subr.bf16.mxu1 %v8318_v62  ;;  %v8322_v62 = vld [vmem:[#allocation10 + $0x1c0] ss:$8 sps:$4 sm:$0xff]  }
 0x3f4   : > { %v10403_v46 = vpop.f32.mrb[213].mxu0 }
 0x3f5   : > { %v10405_v51 = vpop.f32.mrb[214].mxu0 }
 0x3f6   : > { %11854 = vst [vmem:[#allocation22_spill] sm:$0xff] %v10405_v51  ;;  %v10409_v22 = vpop.f32.mrb[215].mxu0  ;;  %6317 = vmatpush1.bf16.msra.mxu1 %v8316_v6  ;;  %v8324_v6 = vld [vmem:[#allocation10 + $0x1c4] ss:$8 sps:$4 sm:$0xff]  }
 0x3f7   : > { %11855 = vst [vmem:[#allocation24_spill] sm:$0xff] %v10409_v22  ;;  %v12054_v22 = vld [vmem:[#allocation138_spill] sm:$0xff] }
 0x3f8   : > { %3522 = vmatmul.mubr.bf16.vlgmr.msra.gmra.mrb[64].mxu0 %v11838_v17 }
 0x3f9   : > { %3531 = vmatprep.mubr.bf16.mxu0 %v11654_v24  ;;  %3716 = vmatpush1.bf16.msra.mxu0 %v7428_v4  ;;  %v8321_v4 = vld [vmem:[#allocation10 + $0x1b4] ss:$8 sps:$4 sm:$0xff]  }
 0x3fa   : > { %3717 = vmatprep.subr.bf16.mxu0 %v7445_v3  ;;  %v2459_v3 = vld [vmem:[#allocation8 + $0x268] sm:$0xff]  ;;  %6318 = vmatprep.subr.bf16.mxu1 %v8321_v4 }
 0x3fb   : > { %v10413_v19 = vpop.f32.mrb[216].mxu0  ;;  %6319 = vmatpush1.bf16.msra.mxu1 %v8319_v50  ;;  %v7492_v41 = vcombine.low %v2451_v30, %v2459_v3  ;;  %v2491_v50 = vld [vmem:[#allocation8 + $0x368] sm:$0xff] }
 0x3fc   : > { %11856 = vst [vmem:[#allocation25_spill] sm:$0xff] %v10413_v19  ;;  %v10415_v1 = vpop.f32.mrb[217].mxu0  ;;  %6320 = vmatprep.subr.bf16.mxu1 %v8324_v6  ;;  %v2507_v6 = vld [vmem:[#allocation8 + $0x3e8] sm:$0xff] }
 0x3fd   : > { %11857 = vst [vmem:[#allocation26_spill] sm:$0xff] %v10415_v1  ;;  %v10417_v33 = vpop.f32.mrb[218].mxu0  ;;  %3718 = vmatpush1.bf16.msra.mxu0 %v7444_v8  ;;  %v7493_v8 = vcombine.high %v2451_v30, %v2459_v3  ;;  %v2499_v3 = vld [vmem:[#allocation8 + $0x3a8] sm:$0xff]  ;;  %v12041_v1 = vld [vmem:[#allocation131_spill] sm:$0xff] }
 0x3fe   : > { %11858 = vst [vmem:[#allocation27_spill] sm:$0xff] %v10417_v33  ;;  %v10419_v63 = vpop.f32.mrb[219].mxu0  ;;  %3719 = vmatprep.subr.bf16.mxu0 %v7461_v14  ;;  %v2475_v14 = vld [vmem:[#allocation8 + $0x2e8] sm:$0xff] }
 0x3ff   : > { %11859 = vst [vmem:[#allocation29_spill] sm:$0xff] %v10419_v63  ;;  %v7509_v21 = vcombine.high %v2467_v11, %v2475_v14  ;;  %6321 = vmatpush1.bf16.msra.mxu1 %v8322_v62 }
 0x400   : > { %3532 = vmatmul.mubr.bf16.gmra.mrb[68].mxu0 %v11843_v25  ;;  %6322 = vmatprep.subr.bf16.mxu1 %v8327_v48 }
 0x401   : > { %3541 = vmatprep.mubr.bf16.mxu0 %v11654_v24  ;;  %3720 = vmatpush1.bf16.msra.mxu0 %v7460_v44  ;;  %v8325_v44 = vld [vmem:[#allocation10 + $0x1d0] ss:$8 sps:$4 sm:$0xff]  }
 0x402   : > { %3721 = vmatprep.subr.bf16.mxu0 %v7477_v53  ;;  %v2483_v53 = vld [vmem:[#allocation8 + $0x328] sm:$0xff] }
 0x403   : > { %v10423_v56 = vpop.f32.mrb[220].mxu0  ;;  %6323 = vmatpush1.bf16.msra.mxu1 %v8325_v44  ;;  %v7524_v63 = vcombine.low %v2483_v53, %v2491_v50  ;;  %v10447_v44 = vld [vmem:[#allocation8 + $0x78] sm:$0xff] }
 0x404   : > { %11860 = vst [vmem:[#allocation176_spill] sm:$0xff] %v10423_v56  ;;  %v10425_v15 = vpop.f32.mrb[221].mxu0 }
 0x405   : > { %11861 = vst [vmem:[#allocation177_spill] sm:$0xff] %v10425_v15  ;;  %v10427_v38 = vpop.f32.mrb[222].mxu0  ;;  %3722 = vmatpush1.bf16.msra.mxu0 %v7476_v12  ;;  %v7508_v15 = vcombine.low %v2467_v11, %v2475_v14  ;;  %v7525_v12 = vcombine.high %v2483_v53, %v2491_v50  ;;  %v7541_v14 = vcombine.high %v2499_v3, %v2507_v6  ;;  %v8336_v50 = vld [vmem:[#allocation10 + $0x204] ss:$8 sps:$4 sm:$0xff]  }
 0x406   : > { %11862 = vst [vmem:[#allocation178_spill] sm:$0xff] %v10427_v38  ;;  %v10429_v4 = vpop.f32.mrb[223].mxu0  ;;  %3723 = vmatprep.subr.bf16.mxu0 %v7493_v8  ;;  %v8330_v8 = vld [vmem:[#allocation10 + $0x1e4] ss:$8 sps:$4 sm:$0xff]   ;;  %v8328_v38 = vld [vmem:[#allocation10 + $0x1e0] ss:$8 sps:$4 sm:$0xff]  }
 0x407   : > { %11863 = vst [vmem:[#allocation179_spill] sm:$0xff] %v10429_v4  ;;  %6324 = vmatprep.subr.bf16.mxu1 %v8330_v8 }
 0x408   : > { %3542 = vmatmul.mubr.bf16.gmra.mrb[72].mxu0 %v11848_v36  ;;  %6325 = vmatpush1.bf16.msra.mxu1 %v8328_v38  ;;  %v7540_v38 = vcombine.low %v2499_v3, %v2507_v6  ;;  %v11871_v6 = vld [vmem:[#allocation98_spill] sm:$0xff] }
 0x409   : > { %3551 = vmatprep.mubr.bf16.mxu0 %v11654_v24  ;;  %3724 = vmatpush1.bf16.msra.mxu0 %v7492_v41 }
 0x40a   : > { %3725 = vmatprep.subr.bf16.mxu0 %v7509_v21 }
 0x40b   : > { %v2182_v30 = vpop.f32.mrb[224].mxu0 }
 0x40c   : > { %v10434_v62 = vmul.f32 %v10041_v52, %v2182_v30  ;;  %v2184_v4 = vpop.f32.mrb[225].mxu0  ;;  %v10445_v52 = vld [vmem:[#allocation8 + $0x38] sm:$0xff] }
 0x40d   : > { %v10437_v56 = vmul.f32 %v10045_v39, %v2184_v4  ;;  %v2186_v48 = vpop.f32.mrb[226].mxu0  ;;  %3726 = vmatpush1.bf16.msra.mxu0 %v7508_v15  ;;  %v8333_v39 = vld [vmem:[#allocation10 + $0x1f4] ss:$8 sps:$4 sm:$0xff]   ;;  %v8331_v4 = vld [vmem:[#allocation10 + $0x1f0] ss:$8 sps:$4 sm:$0xff]  }
 0x40e   : > { %11864 = vst [vmem:[#allocation180_spill] sm:$0xff] %v10434_v62  ;;  %v10440_v41 = vmul.f32 %v10049_v60, %v2186_v48  ;;  %v2188_v11 = vpop.f32.mrb[227].mxu0  ;;  %3727 = vmatprep.subr.bf16.mxu0 %v7525_v12  ;;  %6326 = vmatprep.subr.bf16.mxu1 %v8333_v39  ;;  %v11873_v39 = vld [vmem:[#allocation100_spill] sm:$0xff]  ;;  %v11887_v60 = vld [vmem:[#allocation114_spill] sm:$0xff] }
 0x40f   : > { %11865 = vst [vmem:[#allocation181_spill] sm:$0xff] %v10437_v56  ;;  %v10443_v21 = vmul.f32 %v10053_v9, %v2188_v11  ;;  %v7433_v9 = vcombine.high %v10445_v52, %v10447_v44  ;;  %6327 = vmatpush1.bf16.msra.mxu1 %v8331_v4 }
 0x410   : > { %11866 = vst [vmem:[#allocation182_spill] sm:$0xff] %v10440_v41  ;;  %3552 = vmatmul.mubr.bf16.gmra.mrb[76].mxu0 %v11849_v13  ;;  %6409 = vmatprep.subr.bf16.mxu1 %v8336_v50  ;;  %v11877_v50 = vld [vmem:[#allocation104_spill] sm:$0xff] }
 0x411   : > { %11867 = vst [vmem:[#allocation183_spill] sm:$0xff] %v10443_v21  ;;  %3561 = vmatprep.mubr.bf16.mxu0 %v11654_v24  ;;  %3728 = vmatpush1.bf16.msra.mxu0 %v7524_v63 }
 0x412   : > { %3729 = vmatprep.subr.bf16.mxu0 %v7541_v14 }
 0x413   : > { %v2192_v53 = vpop.f32.mrb[228].mxu0 }
 0x414   : > { %v10458_v12 = vmul.f32 %v10063_v29, %v2192_v53  ;;  %v2194_v30 = vpop.f32.mrb[229].mxu0 }
 0x415   : > { %v10461_v8 = vmul.f32 %v10069_v31, %v2194_v30  ;;  %v2196_v48 = vpop.f32.mrb[230].mxu0  ;;  %3730 = vmatpush1.bf16.msra.mxu0 %v7540_v38  ;;  %v11875_v38 = vld [vmem:[#allocation102_spill] sm:$0xff] }
 0x416   : > { %11868 = vst [vmem:[#allocation184_spill] sm:$0xff] %v10458_v12  ;;  %v10464_v63 = vmul.f32 %v10073_v32, %v2196_v48  ;;  %v2198_v3 = vpop.f32.mrb[231].mxu0  ;;  %3941 = vmatprep.subr.bf16.mxu0 %v7433_v9  ;;  %v2421_v12 = vld [vmem:[#allocation8 + $0x138] sm:$0xff] }
 0x417   : > { %11869 = vst [vmem:[#allocation185_spill] sm:$0xff] %v10461_v8  ;;  %v10467_v11 = vmul.f32 %v11871_v6, %v2198_v3  ;;  %v11879_v3 = vld [vmem:[#allocation106_spill] sm:$0xff] }
 0x418   : > { %11870 = vst [vmem:[#allocation186_spill] sm:$0xff] %v10464_v63  ;;  %3562 = vmatmul.mubr.bf16.gmra.mrb[80].mxu0 %v11850_v57  ;;  %v2429_v63 = vld [vmem:[#allocation8 + $0x178] sm:$0xff] }
 0x419   : > { %11872 = vst [vmem:[#allocation98_spill] sm:$0xff] %v10467_v11  ;;  %3571 = vmatprep.mubr.bf16.mxu0 %v11654_v24  ;;  %v2461_v8 = vld [vmem:[#allocation8 + $0x278] sm:$0xff] }
 0x41b   : > { %v2202_v31 = vpop.f32.mrb[232].mxu0 }
 0x41c   : > { %v10476_v4 = vmul.f32 %v11873_v39, %v2202_v31  ;;  %v2204_v32 = vpop.f32.mrb[233].mxu0 }
 0x41d   : > { %v10479_v9 = vmul.f32 %v11875_v38, %v2204_v32  ;;  %v2206_v53 = vpop.f32.mrb[234].mxu0  ;;  %v11881_v32 = vld [vmem:[#allocation108_spill] sm:$0xff] }
 0x41e   : > { %11874 = vst [vmem:[#allocation100_spill] sm:$0xff] %v10476_v4  ;;  %v10482_v30 = vmul.f32 %v11877_v50, %v2206_v53  ;;  %v2208_v48 = vpop.f32.mrb[235].mxu0  ;;  %v11883_v50 = vld [vmem:[#allocation110_spill] sm:$0xff] }
 0x41f   : > { %11876 = vst [vmem:[#allocation102_spill] sm:$0xff] %v10479_v9  ;;  %v10485_v6 = vmul.f32 %v11879_v3, %v2208_v48  ;;  %v11885_v3 = vld [vmem:[#allocation112_spill] sm:$0xff] }
 0x420   : > { %11878 = vst [vmem:[#allocation104_spill] sm:$0xff] %v10482_v30  ;;  %3572 = vmatmul.mubr.bf16.gmra.mrb[84].mxu0 %v11851_v49 }
 0x421   : > { %11880 = vst [vmem:[#allocation106_spill] sm:$0xff] %v10485_v6  ;;  %3581 = vmatprep.mubr.bf16.mxu0 %v11654_v24 }
 0x423   : > { %v2212_v39 = vpop.f32.mrb[236].mxu0 }
 0x424   : > { %v10494_v38 = vmul.f32 %v11881_v32, %v2212_v39  ;;  %v2214_v53 = vpop.f32.mrb[237].mxu0  ;;  %v7432_v39 = vcombine.low %v10445_v52, %v10447_v44  ;;  %v7465_v44 = vcombine.high %v2421_v12, %v2429_v63 }
 0x425   : > { %v10497_v29 = vmul.f32 %v11883_v50, %v2214_v53  ;;  %v2216_v48 = vpop.f32.mrb[238].mxu0  ;;  %v11889_v53 = vld [vmem:[#allocation116_spill] sm:$0xff] }
 0x426   : > { %11882 = vst [vmem:[#allocation108_spill] sm:$0xff] %v10494_v38  ;;  %v10500_v15 = vmul.f32 %v11885_v3, %v2216_v48  ;;  %v2218_v14 = vpop.f32.mrb[239].mxu0  ;;  %v11891_v3 = vld [vmem:[#allocation118_spill] sm:$0xff] }
 0x427   : > { %11884 = vst [vmem:[#allocation110_spill] sm:$0xff] %v10497_v29  ;;  %v10503_v4 = vmul.f32 %v11887_v60, %v2218_v14  ;;  %v11893_v14 = vld [vmem:[#allocation120_spill] sm:$0xff]  ;;  %v11895_v38 = vld [vmem:[#allocation122_spill] sm:$0xff] }
 0x428   : > { %11886 = vst [vmem:[#allocation112_spill] sm:$0xff] %v10500_v15  ;;  %3582 = vmatmul.mubr.bf16.gmra.mrb[88].mxu0 %v11852_v18  ;;  %v11897_v29 = vld [vmem:[#allocation124_spill] sm:$0xff] }
 0x429   : > { %11888 = vst [vmem:[#allocation114_spill] sm:$0xff] %v10503_v4  ;;  %3591 = vmatprep.mubr.bf16.mxu0 %v11654_v24  ;;  %v11899_v4 = vld [vmem:[#allocation126_spill] sm:$0xff] }
 0x42b   : > { %v2222_v32 = vpop.f32.mrb[240].mxu0 }
 0x42c   : > { %v10512_v50 = vmul.f32 %v11889_v53, %v2222_v32  ;;  %v2224_v48 = vpop.f32.mrb[241].mxu0 }
 0x42d   : > { %v10515_v30 = vmul.f32 %v11891_v3, %v2224_v48  ;;  %v2226_v60 = vpop.f32.mrb[242].mxu0  ;;  %v2405_v48 = vld [vmem:[#allocation8 + $0xb8] sm:$0xff] }
 0x42e   : > { %11890 = vst [vmem:[#allocation116_spill] sm:$0xff] %v10512_v50  ;;  %v10518_v9 = vmul.f32 %v11893_v14, %v2226_v60  ;;  %v2228_v31 = vpop.f32.mrb[243].mxu0  ;;  %v2413_v3 = vld [vmem:[#allocation8 + $0xf8] sm:$0xff]  ;;  %v11901_v50 = vld [vmem:[#allocation128_spill] sm:$0xff] }
 0x42f   : > { %11892 = vst [vmem:[#allocation118_spill] sm:$0xff] %v10515_v30  ;;  %v10521_v15 = vmul.f32 %v11895_v38, %v2228_v31  ;;  %v7449_v30 = vcombine.high %v2405_v48, %v2413_v3  ;;  %v7448_v52 = vcombine.low %v2405_v48, %v2413_v3  ;;  %v11910_v48 = vld [vmem:[#allocation137_spill] sm:$0xff] }
 0x430   : > { %11894 = vst [vmem:[#allocation120_spill] sm:$0xff] %v10518_v9  ;;  %3592 = vmatmul.mubr.bf16.gmra.mrb[92].mxu0 %v11853_v10 }
 0x431   : > { %11896 = vst [vmem:[#allocation122_spill] sm:$0xff] %v10521_v15  ;;  %3747 = vmatprep.mubr.bf16.mxu0 %v11654_v24  ;;  %v11903_v15 = vld [vmem:[#allocation130_spill] sm:$0xff] }
 0x433   : > { %v2232_v53 = vpop.f32.mrb[244].mxu0 }
 0x434   : > { %v10530_v60 = vmul.f32 %v11897_v29, %v2232_v53  ;;  %v2234_v14 = vpop.f32.mrb[245].mxu0  ;;  %v2437_v53 = vld [vmem:[#allocation8 + $0x1b8] sm:$0xff] }
 0x435   : > { %v10533_v31 = vmul.f32 %v11899_v4, %v2234_v14  ;;  %v2236_v38 = vpop.f32.mrb[246].mxu0  ;;  %v11908_v4 = vld [vmem:[#allocation135_spill] sm:$0xff] }
 0x436   : > { %11898 = vst [vmem:[#allocation124_spill] sm:$0xff] %v10530_v60  ;;  %v10538_v9 = vmul.f32 %v11901_v50, %v2236_v38  ;;  %v2238_v32 = vpop.f32.mrb[247].mxu0  ;;  %v11906_v38 = vld [vmem:[#allocation133_spill] sm:$0xff] }
 0x437   : > { %11900 = vst [vmem:[#allocation126_spill] sm:$0xff] %v10533_v31  ;;  %v10541_v6 = vmul.f32 %v11903_v15, %v2238_v32  ;;  %v2445_v15 = vld [vmem:[#allocation8 + $0x1f8] sm:$0xff] }
 0x438   : > { %11902 = vst [vmem:[#allocation128_spill] sm:$0xff] %v10538_v9  ;;  %3748 = vmatmul.mubr.bf16.vlgmr.msra.gmra.mrb[96].mxu0 %v11838_v17  ;;  %v7464_v9 = vcombine.low %v2421_v12, %v2429_v63  ;;  %v7480_v12 = vcombine.low %v2437_v53, %v2445_v15 }
 0x439   : > { %11904 = vst [vmem:[#allocation130_spill] sm:$0xff] %v10541_v6  ;;  %3757 = vmatprep.mubr.bf16.mxu0 %v11654_v24  ;;  %3942 = vmatpush1.bf16.msra.mxu0 %v7432_v39  ;;  %v2453_v6 = vld [vmem:[#allocation8 + $0x238] sm:$0xff] }
 0x43a   : > { %3943 = vmatprep.subr.bf16.mxu0 %v7449_v30  ;;  %v7481_v30 = vcombine.high %v2437_v53, %v2445_v15  ;;  %v7497_v63 = vcombine.high %v2453_v6, %v2461_v8 }
 0x43b   : > { %v2242_v50 = vpop.f32.mrb[248].mxu0 }
 0x43c   : > { %v10550_v32 = vmul.f32 %v10157_v42, %v2242_v50  ;;  %v2244_v14 = vpop.f32.mrb[249].mxu0  ;;  %v11912_v50 = vld [vmem:[#allocation139_spill] sm:$0xff] }
 0x43d   : > { %v10553_v29 = vmul.f32 %v11906_v38, %v2244_v14  ;;  %v2246_v60 = vpop.f32.mrb[250].mxu0  ;;  %3944 = vmatpush1.bf16.msra.mxu0 %v7448_v52  ;;  %v11916_v52 = vld [vmem:[#allocation143_spill] sm:$0xff] }
 0x43e   : > { %11905 = vst [vmem:[#allocation187_spill] sm:$0xff] %v10550_v32  ;;  %v10556_v31 = vmul.f32 %v11908_v4, %v2246_v60  ;;  %v2248_v39 = vpop.f32.mrb[251].mxu0  ;;  %3945 = vmatprep.subr.bf16.mxu0 %v7465_v44  ;;  %v2469_v4 = vld [vmem:[#allocation8 + $0x2b8] sm:$0xff]  ;;  %v7496_v32 = vcombine.low %v2453_v6, %v2461_v8 }
 0x43f   : > { %11907 = vst [vmem:[#allocation133_spill] sm:$0xff] %v10553_v29  ;;  %v10559_v3 = vmul.f32 %v11910_v48, %v2248_v39  ;;  %v2477_v44 = vld [vmem:[#allocation8 + $0x2f8] sm:$0xff]  ;;  %v11914_v39 = vld [vmem:[#allocation141_spill] sm:$0xff] }
 0x440   : > { %11909 = vst [vmem:[#allocation135_spill] sm:$0xff] %v10556_v31  ;;  %3758 = vmatmul.mubr.bf16.gmra.mrb[100].mxu0 %v11843_v25  ;;  %v7513_v53 = vcombine.high %v2469_v4, %v2477_v44  ;;  %v2493_v29 = vld [vmem:[#allocation8 + $0x378] sm:$0xff]  ;;  %v7512_v8 = vcombine.low %v2469_v4, %v2477_v44 }
 0x441   : > { %11911 = vst [vmem:[#allocation137_spill] sm:$0xff] %v10559_v3  ;;  %3767 = vmatprep.mubr.bf16.mxu0 %v11654_v24  ;;  %3946 = vmatpush1.bf16.msra.mxu0 %v7464_v9 }
 0x442   : > { %3947 = vmatprep.subr.bf16.mxu0 %v7481_v30  ;;  %v2485_v30 = vld [vmem:[#allocation8 + $0x338] sm:$0xff] }
 0x443   : > { %v2252_v60 = vpop.f32.mrb[252].mxu0  ;;  %v7529_v6 = vcombine.high %v2485_v30, %v2493_v29 }
 0x444   : > { %v10568_v14 = vmul.f32 %v11912_v50, %v2252_v60  ;;  %v2254_v38 = vpop.f32.mrb[253].mxu0 }
 0x445   : > { %v10571_v48 = vmul.f32 %v11914_v39, %v2254_v38  ;;  %v2256_v42 = vpop.f32.mrb[254].mxu0  ;;  %3948 = vmatpush1.bf16.msra.mxu0 %v7480_v12  ;;  %v7528_v38 = vcombine.low %v2485_v30, %v2493_v29 }
 0x446   : > { %11913 = vst [vmem:[#allocation139_spill] sm:$0xff] %v10568_v14  ;;  %v10574_v31 = vmul.f32 %v11916_v52, %v2256_v42  ;;  %v2258_v9 = vpop.f32.mrb[255].mxu0  ;;  %3949 = vmatprep.subr.bf16.mxu0 %v7497_v63  ;;  %v2509_v52 = vld [vmem:[#allocation8 + $0x3f8] sm:$0xff] }
 0x447   : > { %11915 = vst [vmem:[#allocation141_spill] sm:$0xff] %v10571_v48  ;;  %v10577_v15 = vmul.f32 %v10187_v40, %v2258_v9  ;;  %v2501_v40 = vld [vmem:[#allocation8 + $0x3b8] sm:$0xff] }
 0x448   : > { %11917 = vst [vmem:[#allocation143_spill] sm:$0xff] %v10574_v31  ;;  %3768 = vmatmul.mubr.bf16.gmra.mrb[104].mxu0 %v11848_v36  ;;  %v7545_v9 = vcombine.high %v2501_v40, %v2509_v52 }
 0x449   : > { %11918 = vst [vmem:[#allocation188_spill] sm:$0xff] %v10577_v15  ;;  %3777 = vmatprep.mubr.bf16.mxu0 %v11654_v24  ;;  %3950 = vmatpush1.bf16.msra.mxu0 %v7496_v32  ;;  %v7544_v32 = vcombine.low %v2501_v40, %v2509_v52 }
 0x44a   : > { %3951 = vmatprep.subr.bf16.mxu0 %v7513_v53 }
 0x44b   : > { %v10585_v42 = vpop.f32.mrb[0].mxu0 }
 0x44c   : > { %11919 = vst [vmem:[#allocation189_spill] sm:$0xff] %v10585_v42  ;;  %v10587_v63 = vpop.f32.mrb[1].mxu0  ;;  %v12039_v42 = vld [vmem:[#allocation129_spill] sm:$0xff] }
 0x44d   : > { %11920 = vst [vmem:[#allocation190_spill] sm:$0xff] %v10587_v63  ;;  %v10589_v50 = vpop.f32.mrb[2].mxu0  ;;  %3952 = vmatpush1.bf16.msra.mxu0 %v7512_v8 }
 0x44e   : > { %11921 = vst [vmem:[#allocation191_spill] sm:$0xff] %v10589_v50  ;;  %v10591_v39 = vpop.f32.mrb[3].mxu0  ;;  %3953 = vmatprep.subr.bf16.mxu0 %v7529_v6  ;;  %v12029_v50 = vld [vmem:[#allocation123_spill] sm:$0xff] }
 0x44f   : > { %11922 = vst [vmem:[#allocation192_spill] sm:$0xff] %v10591_v39 }
 0x450   : > { %3778 = vmatmul.mubr.bf16.gmra.mrb[108].mxu0 %v11849_v13 }
 0x451   : > { %3787 = vmatprep.mubr.bf16.mxu0 %v11654_v24  ;;  %3954 = vmatpush1.bf16.msra.mxu0 %v7528_v38 }
 0x452   : > { %3955 = vmatprep.subr.bf16.mxu0 %v7545_v9 }
 0x453   : > { %v10595_v4 = vpop.f32.mrb[4].mxu0 }
 0x454   : > { %11923 = vst [vmem:[#allocation193_spill] sm:$0xff] %v10595_v4  ;;  %v10597_v44 = vpop.f32.mrb[5].mxu0  ;;  %v12028_v4 = vld [vmem:[#allocation121_spill] sm:$0xff] }
 0x455   : > { %11924 = vst [vmem:[#allocation194_spill] sm:$0xff] %v10597_v44  ;;  %v10599_v53 = vpop.f32.mrb[6].mxu0  ;;  %3956 = vmatpush1.bf16.msra.mxu0 %v7544_v32 }
 0x456   : > { %11925 = vst [vmem:[#allocation195_spill] sm:$0xff] %v10599_v53  ;;  %v10601_v8 = vpop.f32.mrb[7].mxu0  ;;  %v12019_v53 = vld [vmem:[#allocation115_spill] sm:$0xff] }
 0x457   : > { %11926 = vst [vmem:[#allocation196_spill] sm:$0xff] %v10601_v8 }
 0x458   : > { %3788 = vmatmul.mubr.bf16.gmra.mrb[112].mxu0 %v11850_v57 }
 0x459   : > { %3797 = vmatprep.mubr.bf16.mxu0 %v11654_v24 }
 0x45b   : > { %v10605_v29 = vpop.f32.mrb[8].mxu0 }
 0x45c   : > { %11927 = vst [vmem:[#allocation197_spill] sm:$0xff] %v10605_v29  ;;  %v10607_v30 = vpop.f32.mrb[9].mxu0  ;;  %v12018_v29 = vld [vmem:[#allocation113_spill] sm:$0xff] }
 0x45d   : > { %11928 = vst [vmem:[#allocation198_spill] sm:$0xff] %v10607_v30  ;;  %v10609_v6 = vpop.f32.mrb[10].mxu0 }
 0x45e   : > { %11929 = vst [vmem:[#allocation199_spill] sm:$0xff] %v10609_v6  ;;  %v10611_v40 = vpop.f32.mrb[11].mxu0  ;;  %v12009_v6 = vld [vmem:[#allocation107_spill] sm:$0xff] }
 0x45f   : > { %11930 = vst [vmem:[#allocation200_spill] sm:$0xff] %v10611_v40 }
 0x460   : > { %3798 = vmatmul.mubr.bf16.gmra.mrb[116].mxu0 %v11851_v49 }
 0x461   : > { %3807 = vmatprep.mubr.bf16.mxu0 %v11654_v24 }
 0x463   : > { %v10615_v52 = vpop.f32.mrb[12].mxu0 }
 0x464   : > { %11931 = vst [vmem:[#allocation201_spill] sm:$0xff] %v10615_v52  ;;  %v10617_v38 = vpop.f32.mrb[13].mxu0  ;;  %v12008_v52 = vld [vmem:[#allocation105_spill] sm:$0xff] }
 0x465   : > { %11932 = vst [vmem:[#allocation202_spill] sm:$0xff] %v10617_v38  ;;  %v10619_v9 = vpop.f32.mrb[14].mxu0 }
 0x466   : > { %11933 = vst [vmem:[#allocation203_spill] sm:$0xff] %v10619_v9  ;;  %v10621_v32 = vpop.f32.mrb[15].mxu0 }
 0x467   : > { %11934 = vst [vmem:[#allocation204_spill] sm:$0xff] %v10621_v32 }
 0x468   : > { %3808 = vmatmul.mubr.bf16.gmra.mrb[120].mxu0 %v11852_v18 }
 0x469   : > { %3817 = vmatprep.mubr.bf16.mxu0 %v11654_v24 }
 0x46b   : > { %v10625_v60 = vpop.f32.mrb[16].mxu0 }
 0x46c   : > { %11935 = vst [vmem:[#allocation205_spill] sm:$0xff] %v10625_v60  ;;  %v10627_v12 = vpop.f32.mrb[17].mxu0  ;;  %v11954_v60 = vld [vmem:[#allocation40_spill] sm:$0xff] }
 0x46d   : > { %11936 = vst [vmem:[#allocation206_spill] sm:$0xff] %v10627_v12  ;;  %v10629_v14 = vpop.f32.mrb[18].mxu0 }
 0x46e   : > { %11937 = vst [vmem:[#allocation207_spill] sm:$0xff] %v10629_v14  ;;  %v10631_v31 = vpop.f32.mrb[19].mxu0  ;;  %v11953_v14 = vld [vmem:[#allocation39_spill] sm:$0xff] }
 0x46f   : > { %11938 = vst [vmem:[#allocation208_spill] sm:$0xff] %v10631_v31 }
 0x470   : > { %3818 = vmatmul.mubr.bf16.gmra.mrb[124].mxu0 %v11853_v10 }
 0x471   : > { %3973 = vmatprep.mubr.bf16.mxu0 %v11654_v24 }
 0x473   : > { %v10635_v48 = vpop.f32.mrb[20].mxu0 }
 0x474   : > { %11939 = vst [vmem:[#allocation209_spill] sm:$0xff] %v10635_v48  ;;  %v10637_v15 = vpop.f32.mrb[21].mxu0  ;;  %v11952_v48 = vld [vmem:[#allocation38_spill] sm:$0xff] }
 0x475   : > { %11940 = vst [vmem:[#allocation210_spill] sm:$0xff] %v10637_v15  ;;  %v10639_v3 = vpop.f32.mrb[22].mxu0 }
 0x476   : > { %11941 = vst [vmem:[#allocation211_spill] sm:$0xff] %v10639_v3  ;;  %v10641_v11 = vpop.f32.mrb[23].mxu0 }
 0x477   : > { %11942 = vst [vmem:[#allocation212_spill] sm:$0xff] %v10641_v11 }
 0x478   : > { %3974 = vmatmul.mubr.bf16.vlgmr.msra.gmra.mrb[128].mxu0 %v11838_v17 }
 0x479   : > { %3983 = vmatprep.mubr.bf16.mxu0 %v11654_v24 }
 0x47b   : > { %v10645_v62 = vpop.f32.mrb[24].mxu0 }
 0x47c   : > { %11943 = vst [vmem:[#allocation213_spill] sm:$0xff] %v10645_v62  ;;  %v10647_v41 = vpop.f32.mrb[25].mxu0 }
 0x47d   : > { %11944 = vst [vmem:[#allocation214_spill] sm:$0xff] %v10647_v41  ;;  %v10649_v56 = vpop.f32.mrb[26].mxu0 }
 0x47e   : > { %11945 = vst [vmem:[#allocation215_spill] sm:$0xff] %v10649_v56  ;;  %v10651_v21 = vpop.f32.mrb[27].mxu0  ;;  %v11951_v56 = vld [vmem:[#allocation37_spill] sm:$0xff] }
 0x47f   : > { %11946 = vst [vmem:[#allocation216_spill] sm:$0xff] %v10651_v21 }
 0x480   : > { %3984 = vmatmul.mubr.bf16.gmra.mrb[132].mxu0 %v11843_v25 }
 0x481   : > { %3993 = vmatprep.mubr.bf16.mxu0 %v11654_v24 }
 0x483   : > { %v10655_v15 = vpop.f32.mrb[28].mxu0 }
 0x484   : > { %11947 = vst [vmem:[#allocation217_spill] sm:$0xff] %v10655_v15  ;;  %v10657_v3 = vpop.f32.mrb[29].mxu0 }
 0x485   : > { %11948 = vst [vmem:[#allocation218_spill] sm:$0xff] %v10657_v3  ;;  %v10659_v11 = vpop.f32.mrb[30].mxu0 }
 0x486   : > { %11949 = vst [vmem:[#allocation219_spill] sm:$0xff] %v10659_v11  ;;  %v10661_v17 = vpop.f32.mrb[31].mxu0  ;;  %v8334_v11 = vld [vmem:[#allocation10 + $0x200] ss:$8 sps:$4 sm:$0xff]  }
 0x487   : > { %11950 = vst [vmem:[#allocation220_spill] sm:$0xff] %v10661_v17 }
 0x488   : > { %3994 = vmatmul.mubr.bf16.gmra.mrb[136].mxu0 %v11848_v36  ;;  %v8339_v36 = vld [vmem:[#allocation10 + $0x214] ss:$8 sps:$4 sm:$0xff]  }
 0x489   : > { %4003 = vmatprep.mubr.bf16.mxu0 %v11654_v24 }
 0x48b   : > { %v3297_v41 = vpop.f32.mrb[32].mxu0 }
 0x48c   : > { %v4056_v62 = vmul.f32 %v3297_v41, %v11951_v56  ;;  %v3299_v21 = vpop.f32.mrb[33].mxu0  ;;  %v11955_v56 = vld [vmem:[#allocation41_spill] sm:$0xff] }
 0x48d   : > { %v4057_v25 = vmul.f32 %v3299_v21, %v11952_v48  ;;  %v3301_v31 = vpop.f32.mrb[34].mxu0  ;;  %v11956_v21 = vld [vmem:[#allocation42_spill] sm:$0xff] }
 0x48e   : > { %v4072_v12 = vmul.f32 %v3301_v31, %v11953_v14  ;;  %v3303_v15 = vpop.f32.mrb[35].mxu0  ;;  %v8337_v14 = vld [vmem:[#allocation10 + $0x210] ss:$8 sps:$4 sm:$0xff]  }
 0x48f   : > { %v4073_v3 = vmul.f32 %v3303_v15, %v11954_v60  ;;  %v11957_v15 = vld [vmem:[#allocation43_spill] sm:$0xff] }
 0x490   : > { %v4312_v32 = vpack.c.bf16 %v4072_v12, %v4056_v62  ;;  %4004 = vmatmul.mubr.bf16.gmra.mrb[140].mxu0 %v11849_v13  ;;  %v8342_v13 = vld [vmem:[#allocation10 + $0x224] ss:$8 sps:$4 sm:$0xff]  }
 0x491   : > { %v4313_v17 = vpack.c.bf16 %v4073_v3, %v4057_v25  ;;  %4013 = vmatprep.mubr.bf16.mxu0 %v11654_v24  ;;  %v11958_v3 = vld [vmem:[#allocation44_spill] sm:$0xff] }
 0x493   : > { %v3307_v9 = vpop.f32.mrb[36].mxu0  ;;  %6328 = vmatprep.mubr.bf16.mxu1 %v4313_v17 }
 0x494   : > { %v4088_v41 = vmul.f32 %v3307_v9, %v11955_v56  ;;  %v3309_v38 = vpop.f32.mrb[37].mxu0  ;;  %6329 = vmatmul.mubr.bf16.vlgmr.msra.gmra.mrb[128].mxu1 %v4312_v32  ;;  %v8340_v9 = vld [vmem:[#allocation10 + $0x220] ss:$8 sps:$4 sm:$0xff]   ;;  %v11959_v32 = vld [vmem:[#allocation45_spill] sm:$0xff] }
 0x495   : > { %v4089_v48 = vmul.f32 %v3309_v38, %v11956_v21  ;;  %6410 = vmatpush1.bf16.msra.mxu1 %v8334_v11  ;;  %v3311_v31 = vpop.f32.mrb[38].mxu0  ;;  %v8345_v38 = vld [vmem:[#allocation10 + $0x234] ss:$8 sps:$4 sm:$0xff]  }
 0x496   : > { %v4104_v62 = vmul.f32 %v3311_v31, %v11957_v15  ;;  %v3313_v60 = vpop.f32.mrb[39].mxu0  ;;  %6411 = vmatprep.subr.bf16.mxu1 %v8339_v36  ;;  %v11960_v36 = vld [vmem:[#allocation46_spill] sm:$0xff] }
 0x497   : > { %v4105_v12 = vmul.f32 %v3313_v60, %v11958_v3  ;;  %v11962_v60 = vld [vmem:[#allocation48_spill] sm:$0xff] }
 0x498   : > { %v4328_v25 = vpack.c.bf16 %v4104_v62, %v4088_v41  ;;  %4014 = vmatmul.mubr.bf16.gmra.mrb[144].mxu0 %v11850_v57  ;;  %v8343_v41 = vld [vmem:[#allocation10 + $0x230] ss:$8 sps:$4 sm:$0xff]   ;;  %v11961_v62 = vld [vmem:[#allocation47_spill] sm:$0xff] }
 0x499   : > { %v4329_v17 = vpack.c.bf16 %v4105_v12, %v4089_v48  ;;  %6412 = vmatpush1.bf16.msra.mxu1 %v8337_v14  ;;  %4023 = vmatprep.mubr.bf16.mxu0 %v11654_v24  ;;  %v8348_v14 = vld [vmem:[#allocation10 + $0x244] ss:$8 sps:$4 sm:$0xff]  }
 0x49a   : > { %6413 = vmatprep.subr.bf16.mxu1 %v8342_v13 }
 0x49b   : > { %v3317_v11 = vpop.f32.mrb[40].mxu0  ;;  %6338 = vmatprep.mubr.bf16.mxu1 %v4329_v17  ;;  %v8346_v17 = vld [vmem:[#allocation10 + $0x240] ss:$8 sps:$4 sm:$0xff]  }
 0x49c   : > { %v4120_v56 = vmul.f32 %v3317_v11, %v11959_v32  ;;  %v3319_v21 = vpop.f32.mrb[41].mxu0  ;;  %6339 = vmatmul.mubr.bf16.gmra.mrb[132].mxu1 %v4328_v25  ;;  %v8351_v25 = vld [vmem:[#allocation10 + $0x254] ss:$8 sps:$4 sm:$0xff]  }
 0x49d   : > { %v4121_v31 = vmul.f32 %v3319_v21, %v11960_v36  ;;  %6414 = vmatpush1.bf16.msra.mxu1 %v8340_v9  ;;  %v3321_v15 = vpop.f32.mrb[42].mxu0  ;;  %v11963_v11 = vld [vmem:[#allocation49_spill] sm:$0xff] }
 0x49e   : > { %v4136_v57 = vmul.f32 %v3321_v15, %v11961_v62  ;;  %v3323_v48 = vpop.f32.mrb[43].mxu0  ;;  %6415 = vmatprep.subr.bf16.mxu1 %v8345_v38  ;;  %v11964_v38 = vld [vmem:[#allocation50_spill] sm:$0xff]  ;;  %v11965_v62 = vld [vmem:[#allocation51_spill] sm:$0xff] }
 0x49f   : > { %v4137_v3 = vmul.f32 %v3323_v48, %v11962_v60 }
 0x4a0   : > { %v4344_v13 = vpack.c.bf16 %v4136_v57, %v4120_v56  ;;  %4024 = vmatmul.mubr.bf16.gmra.mrb[148].mxu0 %v11851_v49  ;;  %v8349_v56 = vld [vmem:[#allocation10 + $0x250] ss:$8 sps:$4 sm:$0xff]  }
 0x4a1   : > { %v4345_v12 = vpack.c.bf16 %v4137_v3, %v4121_v31  ;;  %6416 = vmatpush1.bf16.msra.mxu1 %v8343_v41  ;;  %4033 = vmatprep.mubr.bf16.mxu0 %v11654_v24  ;;  %v8354_v41 = vld [vmem:[#allocation10 + $0x264] ss:$8 sps:$4 sm:$0xff]   ;;  %v11966_v57 = vld [vmem:[#allocation53_spill] sm:$0xff]  ;;  %v8352_v3 = vld [vmem:[#allocation10 + $0x260] ss:$8 sps:$4 sm:$0xff]  }
 0x4a2   : > { %6417 = vmatprep.subr.bf16.mxu1 %v8348_v14 }
 0x4a3   : > { %v3327_v9 = vpop.f32.mrb[44].mxu0  ;;  %6348 = vmatprep.mubr.bf16.mxu1 %v4345_v12 }
 0x4a4   : > { %v4152_v32 = vmul.f32 %v3327_v9, %v11963_v11  ;;  %v3329_v21 = vpop.f32.mrb[45].mxu0  ;;  %6349 = vmatmul.mubr.bf16.gmra.mrb[136].mxu1 %v4344_v13  ;;  %v8357_v13 = vld [vmem:[#allocation10 + $0x274] ss:$8 sps:$4 sm:$0xff]  }
 0x4a5   : > { %v4153_v36 = vmul.f32 %v3329_v21, %v11964_v38  ;;  %6418 = vmatpush1.bf16.msra.mxu1 %v8346_v17  ;;  %v3331_v15 = vpop.f32.mrb[46].mxu0  ;;  %v11967_v17 = vld [vmem:[#allocation54_spill] sm:$0xff] }
 0x4a6   : > { %v4168_v49 = vmul.f32 %v3331_v15, %v11965_v62  ;;  %v3333_v31 = vpop.f32.mrb[47].mxu0  ;;  %6419 = vmatprep.subr.bf16.mxu1 %v8351_v25  ;;  %v11968_v25 = vld [vmem:[#allocation55_spill] sm:$0xff]  ;;  %v11969_v15 = vld [vmem:[#allocation56_spill] sm:$0xff]  ;;  %v11970_v62 = vld [vmem:[#allocation58_spill] sm:$0xff] }
 0x4a7   : > { %v4169_v48 = vmul.f32 %v3333_v31, %v11966_v57  ;;  %v8363_v57 = vld [vmem:[#allocation10 + $0x294] ss:$8 sps:$4 sm:$0xff]  }
 0x4a8   : > { %v4360_v14 = vpack.c.bf16 %v4168_v49, %v4152_v32  ;;  %4034 = vmatmul.mubr.bf16.gmra.mrb[152].mxu0 %v11852_v18  ;;  %v8355_v32 = vld [vmem:[#allocation10 + $0x270] ss:$8 sps:$4 sm:$0xff]  }
 0x4a9   : > { %v4361_v60 = vpack.c.bf16 %v4169_v48, %v4153_v36  ;;  %6420 = vmatpush1.bf16.msra.mxu1 %v8349_v56  ;;  %4043 = vmatprep.mubr.bf16.mxu0 %v11654_v24  ;;  %v8360_v56 = vld [vmem:[#allocation10 + $0x284] ss:$8 sps:$4 sm:$0xff]  }
 0x4aa   : > { %6421 = vmatprep.subr.bf16.mxu1 %v8354_v41  ;;  %v8358_v41 = vld [vmem:[#allocation10 + $0x280] ss:$8 sps:$4 sm:$0xff]  }
 0x4ab   : > { %v3337_v12 = vpop.f32.mrb[48].mxu0  ;;  %6358 = vmatprep.mubr.bf16.mxu1 %v4361_v60 }
 0x4ac   : > { %v4184_v9 = vmul.f32 %v3337_v12, %v11967_v17  ;;  %v3339_v11 = vpop.f32.mrb[49].mxu0  ;;  %6359 = vmatmul.mubr.bf16.gmra.mrb[140].mxu1 %v4360_v14  ;;  %v11971_v14 = vld [vmem:[#allocation60_spill] sm:$0xff]  ;;  %v11972_v12 = vld [vmem:[#allocation62_spill] sm:$0xff] }
 0x4ad   : > { %v4185_v21 = vmul.f32 %v3339_v11, %v11968_v25  ;;  %6422 = vmatpush1.bf16.msra.mxu1 %v8352_v3  ;;  %v3341_v38 = vpop.f32.mrb[50].mxu0  ;;  %v8361_v11 = vld [vmem:[#allocation10 + $0x290] ss:$8 sps:$4 sm:$0xff]   ;;  %v11973_v25 = vld [vmem:[#allocation63_spill] sm:$0xff] }
 0x4ae   : > { %v4200_v18 = vmul.f32 %v3341_v38, %v11969_v15  ;;  %v3343_v36 = vpop.f32.mrb[51].mxu0  ;;  %6423 = vmatprep.subr.bf16.mxu1 %v8357_v13 }
 0x4af   : > { %v4201_v24 = vmul.f32 %v3343_v36, %v11970_v62  ;;  %v8364_v36 = vld [vmem:[#allocation10 + $0x2a0] ss:$8 sps:$4 sm:$0xff]  }
 0x4b0   : > { %v4376_v49 = vpack.c.bf16 %v4200_v18, %v4184_v9  ;;  %4044 = vmatmul.mubr.bf16.gmra.mrb[156].mxu0 %v11853_v10  ;;  %v8366_v10 = vld [vmem:[#allocation10 + $0x2a4] ss:$8 sps:$4 sm:$0xff]  }
 0x4b1   : > { %v4377_v31 = vpack.c.bf16 %v4201_v24, %v4185_v21  ;;  %6424 = vmatpush1.bf16.msra.mxu1 %v8355_v32  ;;  %v11974_v21 = vld [vmem:[#allocation64_spill] sm:$0xff]  ;;  %v11975_v24 = vld [vmem:[#allocation65_spill] sm:$0xff] }
 0x4b2   : > { %6425 = vmatprep.subr.bf16.mxu1 %v8360_v56  ;;  %v8369_v56 = vld [vmem:[#allocation10 + $0x2b4] ss:$8 sps:$4 sm:$0xff]  }
 0x4b3   : > { %v3347_v48 = vpop.f32.mrb[52].mxu0  ;;  %6368 = vmatprep.mubr.bf16.mxu1 %v4377_v31 }
 0x4b4   : > { %v4216_v60 = vmul.f32 %v3347_v48, %v11971_v14  ;;  %v3349_v3 = vpop.f32.mrb[53].mxu0  ;;  %6369 = vmatmul.mubr.bf16.gmra.mrb[144].mxu1 %v4376_v49 }
 0x4b5   : > { %v4217_v17 = vmul.f32 %v3349_v3, %v11972_v12  ;;  %6426 = vmatpush1.bf16.msra.mxu1 %v8358_v41  ;;  %v3351_v13 = vpop.f32.mrb[54].mxu0  ;;  %v11976_v41 = vld [vmem:[#allocation66_spill] sm:$0xff]  ;;  %v11977_v3 = vld [vmem:[#allocation67_spill] sm:$0xff] }
 0x4b6   : > { %v4232_v9 = vmul.f32 %v3351_v13, %v11973_v25  ;;  %v3353_v38 = vpop.f32.mrb[55].mxu0  ;;  %6427 = vmatprep.subr.bf16.mxu1 %v8363_v57  ;;  %v8367_v57 = vld [vmem:[#allocation10 + $0x2b0] ss:$8 sps:$4 sm:$0xff]  }
 0x4b7   : > { %v4233_v32 = vmul.f32 %v3353_v38, %v11974_v21  ;;  %v8370_v38 = vld [vmem:[#allocation10 + $0x2c0] ss:$8 sps:$4 sm:$0xff]  }
 0x4b8   : > { %v4392_v15 = vpack.c.bf16 %v4232_v9, %v4216_v60  ;;  %v8372_v60 = vld [vmem:[#allocation10 + $0x2c4] ss:$8 sps:$4 sm:$0xff]  }
 0x4b9   : > { %v4393_v18 = vpack.c.bf16 %v4233_v32, %v4217_v17  ;;  %6428 = vmatpush1.bf16.msra.mxu1 %v8361_v11  ;;  %v11978_v17 = vld [vmem:[#allocation68_spill] sm:$0xff]  ;;  %v11979_v32 = vld [vmem:[#allocation69_spill] sm:$0xff] }
 0x4ba   : > { %6429 = vmatprep.subr.bf16.mxu1 %v8366_v10  ;;  %v8375_v10 = vld [vmem:[#allocation10 + $0x2d4] ss:$8 sps:$4 sm:$0xff]  }
 0x4bb   : > { %v3357_v62 = vpop.f32.mrb[56].mxu0  ;;  %6378 = vmatprep.mubr.bf16.mxu1 %v4393_v18 }
 0x4bc   : > { %v4248_v49 = vmul.f32 %v3357_v62, %v11975_v24  ;;  %v3359_v31 = vpop.f32.mrb[57].mxu0  ;;  %6379 = vmatmul.mubr.bf16.gmra.mrb[148].mxu1 %v4392_v15 }
 0x4bd   : > { %v4249_v48 = vmul.f32 %v3359_v31, %v11976_v41  ;;  %6430 = vmatpush1.bf16.msra.mxu1 %v8364_v36  ;;  %v3361_v14 = vpop.f32.mrb[58].mxu0  ;;  %v11980_v36 = vld [vmem:[#allocation70_spill] sm:$0xff]  ;;  %v11981_v31 = vld [vmem:[#allocation71_spill] sm:$0xff] }
 0x4be   : > { %v4264_v12 = vmul.f32 %v3361_v14, %v11977_v3  ;;  %v3363_v13 = vpop.f32.mrb[59].mxu0  ;;  %6431 = vmatprep.subr.bf16.mxu1 %v8369_v56  ;;  %v8373_v56 = vld [vmem:[#allocation10 + $0x2d0] ss:$8 sps:$4 sm:$0xff]  }
 0x4bf   : > { %v4265_v11 = vmul.f32 %v3363_v13, %v11978_v17  ;;  %v8376_v13 = vld [vmem:[#allocation10 + $0x2e0] ss:$8 sps:$4 sm:$0xff]  }
 0x4c0   : > { %v4408_v25 = vpack.c.bf16 %v4264_v12, %v4248_v49  ;;  %v8378_v49 = vld [vmem:[#allocation10 + $0x2e4] ss:$8 sps:$4 sm:$0xff]  }
 0x4c1   : > { %v4409_v9 = vpack.c.bf16 %v4265_v11, %v4249_v48  ;;  %6432 = vmatpush1.bf16.msra.mxu1 %v8367_v57  ;;  %v11982_v48 = vld [vmem:[#allocation72_spill] sm:$0xff]  ;;  %v11983_v11 = vld [vmem:[#allocation23_spill] sm:$0xff] }
 0x4c2   : > { %6433 = vmatprep.subr.bf16.mxu1 %v8372_v60  ;;  %v8381_v60 = vld [vmem:[#allocation10 + $0x2f4] ss:$8 sps:$4 sm:$0xff]  }
 0x4c3   : > { %v3367_v21 = vpop.f32.mrb[60].mxu0  ;;  %6388 = vmatprep.mubr.bf16.mxu1 %v4409_v9 }
 0x4c4   : > { %v4280_v15 = vmul.f32 %v3367_v21, %v11979_v32  ;;  %v3369_v18 = vpop.f32.mrb[61].mxu0  ;;  %6389 = vmatmul.mubr.bf16.gmra.mrb[152].mxu1 %v4408_v25  ;;  %v11985_v32 = vld [vmem:[#allocation76_spill] sm:$0xff] }
 0x4c5   : > { %v4281_v62 = vmul.f32 %v3369_v18, %v11980_v36  ;;  %6434 = vmatpush1.bf16.msra.mxu1 %v8370_v38  ;;  %v3371_v24 = vpop.f32.mrb[62].mxu0  ;;  %v11984_v38 = vld [vmem:[#allocation92_spill] sm:$0xff]  ;;  %v11986_v18 = vld [vmem:[#allocation74_spill] sm:$0xff] }
 0x4c6   : > { %v4296_v41 = vmul.f32 %v3371_v24, %v11981_v31  ;;  %v3373_v14 = vpop.f32.mrb[63].mxu0  ;;  %6435 = vmatprep.subr.bf16.mxu1 %v8375_v10  ;;  %v8379_v36 = vld [vmem:[#allocation10 + $0x2f0] ss:$8 sps:$4 sm:$0xff]   ;;  %v8384_v31 = vld [vmem:[#allocation10 + $0x304] ss:$8 sps:$4 sm:$0xff]  }
 0x4c7   : > { %v4297_v57 = vmul.f32 %v3373_v14, %v11982_v48 }
 0x4c8   : > { %v4424_v3 = vpack.c.bf16 %v4296_v41, %v4280_v15  ;;  %v11987_v15 = vpack.c.bf16 %v11985_v32, %v11986_v18  ;;  %v11989_v41 = vld [vmem:[#allocation94_spill] sm:$0xff] }
 0x4c9   : > { %v4425_v12 = vpack.c.bf16 %v4297_v57, %v4281_v62  ;;  %6436 = vmatpush1.bf16.msra.mxu1 %v8373_v56  ;;  %v11988_v62 = vld [vmem:[#allocation93_spill] sm:$0xff]  ;;  %v8382_v57 = vld [vmem:[#allocation10 + $0x300] ss:$8 sps:$4 sm:$0xff]  }
 0x4ca   : > { %6437 = vmatprep.subr.bf16.mxu1 %v8378_v49  ;;  %v11999_v49 = vld [vmem:[#allocation99_spill] sm:$0xff] }
 0x4cb   : > { %v3523_v17 = vpop.f32.mrb[64].mxu0  ;;  %6398 = vmatprep.mubr.bf16.mxu1 %v4425_v12 }
 0x4cc   : > { %v10707_v25 = vmul.f32 %v3523_v17, %v11983_v11  ;;  %v3525_v9 = vpop.f32.mrb[65].mxu0  ;;  %6399 = vmatmul.mubr.bf16.gmra.mrb[156].mxu1 %v4424_v3  ;;  %v8387_v3 = vld [vmem:[#allocation10 + $0x314] ss:$8 sps:$4 sm:$0xff]  }
 0x4cd   : > { %v10710_v21 = vmul.f32 %v3525_v9, %v11984_v38  ;;  %6438 = vmatpush1.bf16.msra.mxu1 %v8376_v13  ;;  %v3527_v10 = vpop.f32.mrb[66].mxu0  ;;  %6441 = vmatprep.mubr.bf16.mxu1 %v11987_v15  ;;  %v11990_v13 = vld [vmem:[#allocation95_spill] sm:$0xff]  ;;  %v11992_v9 = vld [vmem:[#allocation73_spill] sm:$0xff]  ;;  %v11995_v15 = vld [vmem:[#allocation80_spill] sm:$0xff] }
 0x4ce   : > { %v10716_v24 = vmul.f32 %v3527_v10, %v11988_v62  ;;  %v3529_v56 = vpop.f32.mrb[67].mxu0  ;;  %6439 = vmatprep.subr.bf16.mxu1 %v8381_v60  ;;  %v11991_v60 = vld [vmem:[#allocation75_spill] sm:$0xff]  ;;  %v11994_v10 = vld [vmem:[#allocation96_spill] sm:$0xff]  ;;  %v11996_v62 = vld [vmem:[#allocation78_spill] sm:$0xff] }
 0x4cf   : > { %v10719_v14 = vmul.f32 %v3529_v56, %v11989_v41  ;;  %v11993_v38 = vpack.c.bf16 %v11991_v60, %v11992_v9  ;;  %v8385_v56 = vld [vmem:[#allocation10 + $0x310] ss:$8 sps:$4 sm:$0xff]   ;;  %v8388_v60 = vld [vmem:[#allocation10 + $0x320] ss:$8 sps:$4 sm:$0xff]   ;;  %v8393_v9 = vld [vmem:[#allocation10 + $0x334] ss:$8 sps:$4 sm:$0xff]  }
 0x4d1   : > { %6440 = vmatpush1.bf16.msra.mxu1 %v8379_v36  ;;  %v11997_v36 = vpack.c.bf16 %v11995_v15, %v11996_v62  ;;  %v12002_v62 = vld [vmem:[#allocation77_spill] sm:$0xff] }
 0x4d2   : > { %6522 = vmatprep.subr.bf16.mxu1 %v8384_v31  ;;  %v11998_v31 = vld [vmem:[#allocation97_spill] sm:$0xff] }
 0x4d3   : > { %v3533_v12 = vpop.f32.mrb[68].mxu0 }
 0x4d4   : > { %v10726_v17 = vmul.f32 %v3533_v12, %v11990_v13  ;;  %v3535_v11 = vpop.f32.mrb[69].mxu0  ;;  %6442 = vmatmul.mubr.bf16.vlgmr.msra.gmra.mrb[128].mxu1 %v11993_v38  ;;  %v8390_v13 = vld [vmem:[#allocation10 + $0x324] ss:$8 sps:$4 sm:$0xff]  }
 0x4d5   : > { %v10732_v32 = vmul.f32 %v3535_v11, %v11994_v10  ;;  %6523 = vmatpush1.bf16.msra.mxu1 %v8382_v57  ;;  %v3537_v18 = vpop.f32.mrb[70].mxu0  ;;  %6451 = vmatprep.mubr.bf16.mxu1 %v11997_v36  ;;  %v12000_v10 = vld [vmem:[#allocation101_spill] sm:$0xff]  ;;  %v12005_v11 = vld [vmem:[#allocation84_spill] sm:$0xff]  ;;  %v12006_v57 = vld [vmem:[#allocation82_spill] sm:$0xff] }
 0x4d6   : > { %v10738_v41 = vmul.f32 %v3537_v18, %v11998_v31  ;;  %v3539_v12 = vpop.f32.mrb[71].mxu0  ;;  %6524 = vmatprep.subr.bf16.mxu1 %v8387_v3  ;;  %v12001_v3 = vld [vmem:[#allocation79_spill] sm:$0xff] }
 0x4d7   : > { %v10741_v48 = vmul.f32 %v3539_v12, %v11999_v49  ;;  %v12003_v36 = vpack.c.bf16 %v12001_v3, %v12002_v62  ;;  %v12004_v49 = vld [vmem:[#allocation103_spill] sm:$0xff]  ;;  %v12010_v62 = vld [vmem:[#allocation109_spill] sm:$0xff] }
 0x4d8   : > { %v8394_v3 = vld [vmem:[#allocation10 + $0x340] ss:$8 sps:$4 sm:$0xff]  }
 0x4d9   : > { %6525 = vmatpush1.bf16.msra.mxu1 %v8385_v56  ;;  %v12007_v56 = vpack.c.bf16 %v12005_v11, %v12006_v57  ;;  %v8399_v11 = vld [vmem:[#allocation10 + $0x354] ss:$8 sps:$4 sm:$0xff]  }
 0x4da   : > { %6526 = vmatprep.subr.bf16.mxu1 %v8390_v13  ;;  %v8391_v13 = vld [vmem:[#allocation10 + $0x330] ss:$8 sps:$4 sm:$0xff]  }
 0x4db   : > { %v3543_v38 = vpop.f32.mrb[72].mxu0 }
 0x4dc   : > { %v10748_v18 = vmul.f32 %v3543_v38, %v12000_v10  ;;  %v3545_v15 = vpop.f32.mrb[73].mxu0  ;;  %6452 = vmatmul.mubr.bf16.gmra.mrb[132].mxu1 %v12003_v36  ;;  %v8396_v10 = vld [vmem:[#allocation10 + $0x344] ss:$8 sps:$4 sm:$0xff]  }
 0x4dd   : > { %v10754_v31 = vmul.f32 %v3545_v15, %v12004_v49  ;;  %6527 = vmatpush1.bf16.msra.mxu1 %v8388_v60  ;;  %v3547_v12 = vpop.f32.mrb[74].mxu0  ;;  %6461 = vmatprep.mubr.bf16.mxu1 %v12007_v56  ;;  %v12012_v49 = vld [vmem:[#allocation81_spill] sm:$0xff]  ;;  %v12015_v15 = vld [vmem:[#allocation52_spill] sm:$0xff]  ;;  %v12016_v60 = vld [vmem:[#allocation86_spill] sm:$0xff] }
 0x4de   : > { %v10760_v40 = vmul.f32 %v3547_v12, %v12008_v52  ;;  %v3549_v38 = vpop.f32.mrb[75].mxu0  ;;  %6528 = vmatprep.subr.bf16.mxu1 %v8393_v9  ;;  %v12011_v9 = vld [vmem:[#allocation83_spill] sm:$0xff] }
 0x4df   : > { %v10763_v30 = vmul.f32 %v3549_v38, %v12009_v6  ;;  %v12013_v12 = vpack.c.bf16 %v12011_v9, %v12012_v49  ;;  %v12014_v6 = vld [vmem:[#allocation111_spill] sm:$0xff]  ;;  %v12020_v49 = vld [vmem:[#allocation117_spill] sm:$0xff] }
 0x4e0   : > { %v8400_v9 = vld [vmem:[#allocation10 + $0x360] ss:$8 sps:$4 sm:$0xff]  }
 0x4e1   : > { %6529 = vmatpush1.bf16.msra.mxu1 %v8391_v13  ;;  %v12017_v13 = vpack.c.bf16 %v12015_v15, %v12016_v60  ;;  %v8405_v15 = vld [vmem:[#allocation10 + $0x374] ss:$8 sps:$4 sm:$0xff]  }
 0x4e2   : > { %6530 = vmatprep.subr.bf16.mxu1 %v8396_v10  ;;  %v8397_v10 = vld [vmem:[#allocation10 + $0x350] ss:$8 sps:$4 sm:$0xff]  }
 0x4e3   : > { %v3553_v57 = vpop.f32.mrb[76].mxu0 }
 0x4e4   : > { %v10770_v52 = vmul.f32 %v3553_v57, %v12010_v62  ;;  %v3555_v36 = vpop.f32.mrb[77].mxu0  ;;  %6462 = vmatmul.mubr.bf16.gmra.mrb[136].mxu1 %v12013_v12  ;;  %v8402_v62 = vld [vmem:[#allocation10 + $0x364] ss:$8 sps:$4 sm:$0xff]  }
 0x4e5   : > { %v10776_v56 = vmul.f32 %v3555_v36, %v12014_v6  ;;  %6531 = vmatpush1.bf16.msra.mxu1 %v8394_v3  ;;  %v3557_v38 = vpop.f32.mrb[78].mxu0  ;;  %6471 = vmatprep.mubr.bf16.mxu1 %v12017_v13  ;;  %v12022_v6 = vld [vmem:[#allocation85_spill] sm:$0xff]  ;;  %v12025_v36 = vld [vmem:[#allocation36_spill] sm:$0xff]  ;;  %v12026_v3 = vld [vmem:[#allocation31_spill] sm:$0xff] }
 0x4e6   : > { %v10782_v8 = vmul.f32 %v3557_v38, %v12018_v29  ;;  %v3559_v57 = vpop.f32.mrb[79].mxu0  ;;  %6532 = vmatprep.subr.bf16.mxu1 %v8399_v11  ;;  %v12021_v11 = vld [vmem:[#allocation87_spill] sm:$0xff] }
 0x4e7   : > { %v10785_v44 = vmul.f32 %v3559_v57, %v12019_v53  ;;  %v12023_v38 = vpack.c.bf16 %v12021_v11, %v12022_v6  ;;  %v12024_v53 = vld [vmem:[#allocation119_spill] sm:$0xff]  ;;  %v12030_v6 = vld [vmem:[#allocation125_spill] sm:$0xff] }
 0x4e8   : > { %v8406_v11 = vld [vmem:[#allocation10 + $0x380] ss:$8 sps:$4 sm:$0xff]  }
 0x4e9   : > { %6533 = vmatpush1.bf16.msra.mxu1 %v8397_v10  ;;  %v12027_v10 = vpack.c.bf16 %v12025_v36, %v12026_v3  ;;  %v8411_v36 = vld [vmem:[#allocation10 + $0x394] ss:$8 sps:$4 sm:$0xff]  }
 0x4ea   : > { %6534 = vmatprep.subr.bf16.mxu1 %v8402_v62  ;;  %v8403_v62 = vld [vmem:[#allocation10 + $0x370] ss:$8 sps:$4 sm:$0xff]  }
 0x4eb   : > { %v3563_v60 = vpop.f32.mrb[80].mxu0 }
 0x4ec   : > { %v10792_v29 = vmul.f32 %v3563_v60, %v12020_v49  ;;  %v3565_v12 = vpop.f32.mrb[81].mxu0  ;;  %6472 = vmatmul.mubr.bf16.gmra.mrb[140].mxu1 %v12023_v38  ;;  %v8408_v49 = vld [vmem:[#allocation10 + $0x384] ss:$8 sps:$4 sm:$0xff]  }
 0x4ed   : > { %v10798_v13 = vmul.f32 %v3565_v12, %v12024_v53  ;;  %6535 = vmatpush1.bf16.msra.mxu1 %v8400_v9  ;;  %v3567_v57 = vpop.f32.mrb[82].mxu0  ;;  %6481 = vmatprep.mubr.bf16.mxu1 %v12027_v10  ;;  %v12033_v53 = vld [vmem:[#allocation32_spill] sm:$0xff]  ;;  %v12036_v12 = vld [vmem:[#allocation33_spill] sm:$0xff] }
 0x4ee   : > { %v10804_v39 = vmul.f32 %v3567_v57, %v12028_v4  ;;  %v3569_v60 = vpop.f32.mrb[83].mxu0  ;;  %6536 = vmatprep.subr.bf16.mxu1 %v8405_v15  ;;  %v12032_v15 = vld [vmem:[#allocation28_spill] sm:$0xff]  ;;  %v12037_v9 = vld [vmem:[#allocation57_spill] sm:$0xff] }
 0x4ef   : > { %v10807_v63 = vmul.f32 %v3569_v60, %v12029_v50  ;;  %v12034_v57 = vpack.c.bf16 %v12032_v15, %v12033_v53  ;;  %v12035_v50 = vld [vmem:[#allocation127_spill] sm:$0xff]  ;;  %v12042_v53 = vld [vmem:[#allocation132_spill] sm:$0xff] }
 0x4f0   : > { %v8412_v15 = vld [vmem:[#allocation10 + $0x3a0] ss:$8 sps:$4 sm:$0xff]  }
 0x4f1   : > { %6537 = vmatpush1.bf16.msra.mxu1 %v8403_v62  ;;  %v12038_v62 = vpack.c.bf16 %v12036_v12, %v12037_v9  ;;  %v8417_v12 = vld [vmem:[#allocation10 + $0x3b4] ss:$8 sps:$4 sm:$0xff]  }
 0x4f2   : > { %6538 = vmatprep.subr.bf16.mxu1 %v8408_v49  ;;  %v8409_v49 = vld [vmem:[#allocation10 + $0x390] ss:$8 sps:$4 sm:$0xff]  }
 0x4f3   : > { %v3573_v3 = vpop.f32.mrb[84].mxu0 }
 0x4f4   : > { %v10814_v4 = vmul.f32 %v3573_v3, %v12030_v6  ;;  %v3575_v38 = vpop.f32.mrb[85].mxu0  ;;  %6482 = vmatmul.mubr.bf16.gmra.mrb[144].mxu1 %v12034_v57  ;;  %v8414_v6 = vld [vmem:[#allocation10 + $0x3a4] ss:$8 sps:$4 sm:$0xff]  }
 0x4f5   : > { %v10820_v10 = vmul.f32 %v3575_v38, %v12035_v50  ;;  %6539 = vmatpush1.bf16.msra.mxu1 %v8406_v11  ;;  %v3577_v60 = vpop.f32.mrb[86].mxu0  ;;  %6491 = vmatprep.mubr.bf16.mxu1 %v12038_v62  ;;  %v12045_v50 = vld [vmem:[#allocation34_spill] sm:$0xff]  ;;  %v12049_v38 = vld [vmem:[#allocation20_spill] sm:$0xff]  ;;  %v12050_v11 = vld [vmem:[#allocation59_spill] sm:$0xff] }
 0x4f6   : > { %12031 = vst [vmem:[#allocation37_spill] sm:$0xff] %v10814_v4  ;;  %v10826_v33 = vmul.f32 %v3577_v60, %v12039_v42  ;;  %v3579_v3 = vpop.f32.mrb[87].mxu0  ;;  %6540 = vmatprep.subr.bf16.mxu1 %v8411_v36  ;;  %v12044_v36 = vld [vmem:[#allocation35_spill] sm:$0xff]  ;;  %v12052_v4 = vld [vmem:[#allocation136_spill] sm:$0xff] }
 0x4f7   : > { %v10829_v19 = vmul.f32 %v3579_v3, %v12041_v1  ;;  %v12046_v60 = vpack.c.bf16 %v12044_v36, %v12045_v50  ;;  %v12047_v1 = vld [vmem:[#allocation134_spill] sm:$0xff]  ;;  %v8418_v36 = vld [vmem:[#allocation10 + $0x3c0] ss:$8 sps:$4 sm:$0xff]  }
 0x4f8   : > { %12040 = vst [vmem:[#allocation38_spill] sm:$0xff] %v10826_v33  ;;  %v12056_v50 = vld [vmem:[#allocation140_spill] sm:$0xff] }
 0x4f9   : > { %6541 = vmatpush1.bf16.msra.mxu1 %v8409_v49  ;;  %v12051_v49 = vpack.c.bf16 %v12049_v38, %v12050_v11  ;;  %v8423_v38 = vld [vmem:[#allocation10 + $0x3d4] ss:$8 sps:$4 sm:$0xff]  }
 0x4fa   : > { %6542 = vmatprep.subr.bf16.mxu1 %v8414_v6  ;;  %v8415_v6 = vld [vmem:[#allocation10 + $0x3b0] ss:$8 sps:$4 sm:$0xff]  }
 0x4fb   : > { %v3583_v9 = vpop.f32.mrb[88].mxu0 }
 0x4fc   : > { %v10836_v42 = vmul.f32 %v3583_v9, %v12042_v53  ;;  %v3585_v57 = vpop.f32.mrb[89].mxu0  ;;  %6492 = vmatmul.mubr.bf16.gmra.mrb[148].mxu1 %v12046_v60  ;;  %v8420_v53 = vld [vmem:[#allocation10 + $0x3c4] ss:$8 sps:$4 sm:$0xff]  }
 0x4fd   : > { %v10842_v62 = vmul.f32 %v3585_v57, %v12047_v1  ;;  %6543 = vmatpush1.bf16.msra.mxu1 %v8412_v15  ;;  %v3587_v3 = vpop.f32.mrb[90].mxu0  ;;  %6501 = vmatprep.mubr.bf16.mxu1 %v12051_v49  ;;  %v12058_v1 = vld [vmem:[#allocation30_spill] sm:$0xff]  ;;  %v12061_v57 = vld [vmem:[#allocation91_spill] sm:$0xff]  ;;  %v12062_v15 = vld [vmem:[#allocation89_spill] sm:$0xff] }
 0x4fe   : > { %12043 = vst [vmem:[#allocation39_spill] sm:$0xff] %v10836_v42  ;;  %v10848_v33 = vmul.f32 %v3587_v3, %v12052_v4  ;;  %v3589_v9 = vpop.f32.mrb[91].mxu0  ;;  %6544 = vmatprep.subr.bf16.mxu1 %v8417_v12  ;;  %v12057_v12 = vld [vmem:[#allocation61_spill] sm:$0xff]  ;;  %v12064_v42 = vld [vmem:[#allocation144_spill] sm:$0xff] }
 0x4ff   : > { %12048 = vst [vmem:[#allocation40_spill] sm:$0xff] %v10842_v62  ;;  %v10851_v51 = vmul.f32 %v3589_v9, %v12054_v22  ;;  %v12059_v3 = vpack.c.bf16 %v12057_v12, %v12058_v1  ;;  %v12060_v22 = vld [vmem:[#allocation142_spill] sm:$0xff]  ;;  %v12065_v62 = vld [vmem:[#allocation145_spill] sm:$0xff]  ;;  %v8424_v12 = vld [vmem:[#allocation10 + $0x3e0] ss:$8 sps:$4 sm:$0xff]  }
 0x500   : > { %12053 = vst [vmem:[#allocation41_spill] sm:$0xff] %v10848_v33 }
 0x501   : > { %12055 = vst [vmem:[#allocation42_spill] sm:$0xff] %v10851_v51  ;;  %6545 = vmatpush1.bf16.msra.mxu1 %v8415_v6  ;;  %v12063_v6 = vpack.c.bf16 %v12061_v57, %v12062_v15  ;;  %v8429_v57 = vld [vmem:[#allocation10 + $0x3f4] ss:$8 sps:$4 sm:$0xff]  }
 0x502   : > { %6546 = vmatprep.subr.bf16.mxu1 %v8420_v53  ;;  %v8421_v53 = vld [vmem:[#allocation10 + $0x3d0] ss:$8 sps:$4 sm:$0xff]  }
 0x503   : > { %v3593_v11 = vpop.f32.mrb[92].mxu0 }
 0x504   : > { %v10858_v4 = vmul.f32 %v3593_v11, %v12056_v50  ;;  %v3595_v60 = vpop.f32.mrb[93].mxu0  ;;  %6502 = vmatmul.mubr.bf16.gmra.mrb[152].mxu1 %v12059_v3  ;;  %v8426_v50 = vld [vmem:[#allocation10 + $0x3e4] ss:$8 sps:$4 sm:$0xff]  }
 0x505   : > { %v10864_v49 = vmul.f32 %v3595_v60, %v12060_v22  ;;  %6547 = vmatpush1.bf16.msra.mxu1 %v8418_v36  ;;  %v3597_v9 = vpop.f32.mrb[94].mxu0  ;;  %6511 = vmatprep.mubr.bf16.mxu1 %v12063_v6  ;;  %v12067_v3 = vld [vmem:[#allocation88_spill] sm:$0xff]  ;;  %v12069_v6 = vpack.c.bf16 %v10719_v14, %v10710_v21  ;;  %v8435_v21 = vld [vmem:[#allocation10 + $0x414] ss:$8 sps:$4 sm:$0xff]  }
 0x506   : > { %v10870_v33 = vmul.f32 %v3597_v9, %v12064_v42  ;;  %v3599_v11 = vpop.f32.mrb[95].mxu0  ;;  %6548 = vmatprep.subr.bf16.mxu1 %v8423_v38  ;;  %v12066_v38 = vld [vmem:[#allocation90_spill] sm:$0xff] }
 0x507   : > { %v10873_v51 = vmul.f32 %v3599_v11, %v12065_v62  ;;  %v12068_v22 = vpack.c.bf16 %v12066_v38, %v12067_v3 }
 0x508   : > { %v4428_v60 = vpack.c.bf16 %v10870_v33, %v10858_v4  ;;  %v12111_v33 = vld [vmem:[#allocation153_spill] sm:$0xff]  ;;  %v12112_v4 = vld [vmem:[#allocation151_spill] sm:$0xff] }
 0x509   : > { %v4429_v36 = vpack.c.bf16 %v10873_v51, %v10864_v49  ;;  %6549 = vmatpush1.bf16.msra.mxu1 %v8421_v53  ;;  %v8427_v53 = vld [vmem:[#allocation10 + $0x3f0] ss:$8 sps:$4 sm:$0xff]   ;;  %v8477_v51 = vld [vmem:[#allocation10 + $0x4f4] ss:$8 sps:$4 sm:$0xff]  }
 0x50a   : > { %6550 = vmatprep.subr.bf16.mxu1 %v8426_v50  ;;  %v8432_v50 = vld [vmem:[#allocation10 + $0x404] ss:$8 sps:$4 sm:$0xff]  }
 0x50b   : > { %v3749_v15 = vpop.f32.mrb[96].mxu0 }
 0x50c   : > { %v10880_v42 = vmul.f32 %v3749_v15, %v10345_v54  ;;  %v3751_v1 = vpop.f32.mrb[97].mxu0  ;;  %6512 = vmatmul.mubr.bf16.gmra.mrb[156].mxu1 %v12068_v22  ;;  %v12071_v22 = vpack.c.bf16 %v10741_v48, %v10732_v32  ;;  %v8441_v48 = vld [vmem:[#allocation10 + $0x434] ss:$8 sps:$4 sm:$0xff]  }
 0x50d   : > { %v10886_v62 = vmul.f32 %v3751_v1, %v10347_v37  ;;  %6551 = vmatpush1.bf16.msra.mxu1 %v8424_v12  ;;  %v3753_v9 = vpop.f32.mrb[98].mxu0  ;;  %6554 = vmatprep.mubr.bf16.mxu1 %v12069_v6  ;;  %v8430_v1 = vld [vmem:[#allocation10 + $0x400] ss:$8 sps:$4 sm:$0xff]  }
 0x50e   : > { %v10892_v11 = vmul.f32 %v3753_v9, %v10349_v61  ;;  %v3755_v54 = vpop.f32.mrb[99].mxu0  ;;  %6552 = vmatprep.subr.bf16.mxu1 %v8429_v57  ;;  %v12070_v57 = vpack.c.bf16 %v10716_v24, %v10707_v25  ;;  %v8433_v9 = vld [vmem:[#allocation10 + $0x410] ss:$8 sps:$4 sm:$0xff]   ;;  %v8436_v24 = vld [vmem:[#allocation10 + $0x420] ss:$8 sps:$4 sm:$0xff]  }
 0x50f   : > { %v10895_v15 = vmul.f32 %v3755_v54, %v10351_v16  ;;  %v12138_v37 = vld [vmem:[#allocation204_spill] sm:$0xff] }
 0x511   : > { %6553 = vmatpush1.bf16.msra.mxu1 %v8427_v53  ;;  %v8438_v53 = vld [vmem:[#allocation10 + $0x424] ss:$8 sps:$4 sm:$0xff]  }
 0x512   : > { %6635 = vmatprep.subr.bf16.mxu1 %v8432_v50 }
 0x513   : > { %v3759_v14 = vpop.f32.mrb[100].mxu0 }
 0x514   : > { %v10902_v61 = vmul.f32 %v3759_v14, %v10361_v28  ;;  %v3761_v38 = vpop.f32.mrb[101].mxu0  ;;  %6555 = vmatmul.mubr.bf16.vlgmr.msra.gmra.mrb[128].mxu1 %v12070_v57  ;;  %v12073_v14 = vpack.c.bf16 %v10763_v30, %v10754_v31  ;;  %v8447_v30 = vld [vmem:[#allocation10 + $0x454] ss:$8 sps:$4 sm:$0xff]  }
 0x515   : > { %v10908_v16 = vmul.f32 %v3761_v38, %v10363_v35  ;;  %6636 = vmatpush1.bf16.msra.mxu1 %v8430_v1  ;;  %v3763_v3 = vpop.f32.mrb[102].mxu0  ;;  %6564 = vmatprep.mubr.bf16.mxu1 %v12071_v22  ;;  %v12072_v1 = vpack.c.bf16 %v10738_v41, %v10726_v17  ;;  %v8439_v38 = vld [vmem:[#allocation10 + $0x430] ss:$8 sps:$4 sm:$0xff]   ;;  %v8442_v41 = vld [vmem:[#allocation10 + $0x440] ss:$8 sps:$4 sm:$0xff]  }
 0x516   : > { %v10914_v6 = vmul.f32 %v3763_v3, %v10365_v27  ;;  %v3765_v28 = vpop.f32.mrb[103].mxu0  ;;  %6637 = vmatprep.subr.bf16.mxu1 %v8435_v21  ;;  %v8444_v3 = vld [vmem:[#allocation10 + $0x444] ss:$8 sps:$4 sm:$0xff]  }
 0x517   : > { %v10917_v54 = vmul.f32 %v3765_v28, %v10367_v43  ;;  %v12074_v28 = vpack.c.bf16 %v10760_v40, %v10748_v18  ;;  %v8448_v18 = vld [vmem:[#allocation10 + $0x460] ss:$8 sps:$4 sm:$0xff]  }
 0x518   : > { %v12136_v35 = vld [vmem:[#allocation203_spill] sm:$0xff] }
 0x519   : > { %6638 = vmatpush1.bf16.msra.mxu1 %v8433_v9 }
 0x51a   : > { %6639 = vmatprep.subr.bf16.mxu1 %v8438_v53 }
 0x51b   : > { %v3769_v32 = vpop.f32.mrb[104].mxu0 }
 0x51c   : > { %v10924_v27 = vmul.f32 %v3769_v32, %v10371_v58  ;;  %v3771_v50 = vpop.f32.mrb[105].mxu0  ;;  %6565 = vmatmul.mubr.bf16.gmra.mrb[132].mxu1 %v12072_v1 }
 0x51d   : > { %v10930_v43 = vmul.f32 %v3771_v50, %v10373_v47  ;;  %6640 = vmatpush1.bf16.msra.mxu1 %v8436_v24  ;;  %v3773_v21 = vpop.f32.mrb[106].mxu0  ;;  %6574 = vmatprep.mubr.bf16.mxu1 %v12073_v14  ;;  %v12075_v24 = vpack.c.bf16 %v10785_v44, %v10776_v56  ;;  %v8450_v50 = vld [vmem:[#allocation10 + $0x464] ss:$8 sps:$4 sm:$0xff]   ;;  %v8453_v44 = vld [vmem:[#allocation10 + $0x474] ss:$8 sps:$4 sm:$0xff]   ;;  %v12076_v14 = vpack.c.bf16 %v10782_v8, %v10770_v52 }
 0x51e   : > { %v10936_v57 = vmul.f32 %v3773_v21, %v10375_v2  ;;  %v3775_v58 = vpop.f32.mrb[107].mxu0  ;;  %6641 = vmatprep.subr.bf16.mxu1 %v8441_v48  ;;  %v8445_v48 = vld [vmem:[#allocation10 + $0x450] ss:$8 sps:$4 sm:$0xff]   ;;  %v8454_v52 = vld [vmem:[#allocation10 + $0x480] ss:$8 sps:$4 sm:$0xff]  }
 0x51f   : > { %v10939_v22 = vmul.f32 %v3775_v58, %v10377_v34  ;;  %v12077_v58 = vpack.c.bf16 %v10807_v63, %v10798_v13  ;;  %v8459_v63 = vld [vmem:[#allocation10 + $0x494] ss:$8 sps:$4 sm:$0xff]   ;;  %v12125_v47 = vld [vmem:[#allocation200_spill] sm:$0xff] }
 0x521   : > { %6642 = vmatpush1.bf16.msra.mxu1 %v8439_v38 }
 0x522   : > { %6643 = vmatprep.subr.bf16.mxu1 %v8444_v3  ;;  %v8451_v3 = vld [vmem:[#allocation10 + $0x470] ss:$8 sps:$4 sm:$0xff]  }
 0x523   : > { %v3779_v31 = vpop.f32.mrb[108].mxu0 }
 0x524   : > { %v10946_v2 = vmul.f32 %v3779_v31, %v10381_v23  ;;  %v3781_v9 = vpop.f32.mrb[109].mxu0  ;;  %6575 = vmatmul.mubr.bf16.gmra.mrb[136].mxu1 %v12074_v28  ;;  %v12078_v28 = vpack.c.bf16 %v10804_v39, %v10792_v29  ;;  %v8460_v29 = vld [vmem:[#allocation10 + $0x4a0] ss:$8 sps:$4 sm:$0xff]  }
 0x525   : > { %v10952_v34 = vmul.f32 %v3781_v9, %v10383_v26  ;;  %6644 = vmatpush1.bf16.msra.mxu1 %v8442_v41  ;;  %v3783_v53 = vpop.f32.mrb[110].mxu0  ;;  %6584 = vmatprep.mubr.bf16.mxu1 %v12075_v24  ;;  %v12079_v24 = vpack.c.bf16 %v10829_v19, %v10820_v10  ;;  %v8465_v19 = vld [vmem:[#allocation10 + $0x4b4] ss:$8 sps:$4 sm:$0xff]   ;;  %v12124_v26 = vld [vmem:[#allocation199_spill] sm:$0xff] }
 0x526   : > { %v10958_v32 = vmul.f32 %v3783_v53, %v10385_v7  ;;  %v3785_v23 = vpop.f32.mrb[111].mxu0  ;;  %6645 = vmatprep.subr.bf16.mxu1 %v8447_v30  ;;  %v8456_v30 = vld [vmem:[#allocation10 + $0x484] ss:$8 sps:$4 sm:$0xff]  }
 0x527   : > { %v10961_v1 = vmul.f32 %v3785_v23, %v10387_v5  ;;  %v12080_v23 = vld [vmem:[#allocation22_spill] sm:$0xff] }
 0x529   : > { %6646 = vmatpush1.bf16.msra.mxu1 %v8445_v48  ;;  %v8457_v48 = vld [vmem:[#allocation10 + $0x490] ss:$8 sps:$4 sm:$0xff]  }
 0x52a   : > { %6647 = vmatprep.subr.bf16.mxu1 %v8450_v50 }
 0x52b   : > { %v3789_v56 = vpop.f32.mrb[112].mxu0 }
 0x52c   : > { %v10968_v7 = vmul.f32 %v3789_v56, %v10391_v59  ;;  %v3791_v21 = vpop.f32.mrb[113].mxu0  ;;  %6585 = vmatmul.mubr.bf16.gmra.mrb[140].mxu1 %v12076_v14 }
 0x52d   : > { %v10974_v5 = vmul.f32 %v3791_v21, %v10393_v45  ;;  %6648 = vmatpush1.bf16.msra.mxu1 %v8448_v18  ;;  %v3793_v38 = vpop.f32.mrb[114].mxu0  ;;  %6594 = vmatprep.mubr.bf16.mxu1 %v12077_v58  ;;  %v8462_v18 = vld [vmem:[#allocation10 + $0x4a4] ss:$8 sps:$4 sm:$0xff]   ;;  %v12082_v21 = vld [vmem:[#allocation25_spill] sm:$0xff]  ;;  %v12083_v58 = vld [vmem:[#allocation38_spill] sm:$0xff] }
 0x52e   : > { %v10980_v41 = vmul.f32 %v3793_v38, %v10395_v55  ;;  %v3795_v59 = vpop.f32.mrb[115].mxu0  ;;  %6649 = vmatprep.subr.bf16.mxu1 %v8453_v44  ;;  %v12081_v44 = vld [vmem:[#allocation24_spill] sm:$0xff] }
 0x52f   : > { %v10983_v31 = vmul.f32 %v3795_v59, %v10397_v20  ;;  %v12115_v45 = vld [vmem:[#allocation196_spill] sm:$0xff] }
 0x531   : > { %6650 = vmatpush1.bf16.msra.mxu1 %v8451_v3  ;;  %v12084_v3 = vld [vmem:[#allocation37_spill] sm:$0xff] }
 0x532   : > { %6651 = vmatprep.subr.bf16.mxu1 %v8456_v30  ;;  %v12085_v59 = vpack.c.bf16 %v12083_v58, %v12084_v3  ;;  %v12086_v30 = vld [vmem:[#allocation26_spill] sm:$0xff]  ;;  %v12092_v3 = vld [vmem:[#allocation176_spill] sm:$0xff] }
 0x533   : > { %v3799_v13 = vpop.f32.mrb[116].mxu0 }
 0x534   : > { %v10990_v55 = vmul.f32 %v3799_v13, %v10401_v0  ;;  %v3801_v9 = vpop.f32.mrb[117].mxu0  ;;  %6595 = vmatmul.mubr.bf16.gmra.mrb[144].mxu1 %v12078_v28  ;;  %v12087_v13 = vld [vmem:[#allocation42_spill] sm:$0xff] }
 0x535   : > { %v10996_v20 = vmul.f32 %v3801_v9, %v10403_v46  ;;  %6652 = vmatpush1.bf16.msra.mxu1 %v8454_v52  ;;  %v3803_v53 = vpop.f32.mrb[118].mxu0  ;;  %6604 = vmatprep.mubr.bf16.mxu1 %v12079_v24  ;;  %v12088_v9 = vld [vmem:[#allocation40_spill] sm:$0xff]  ;;  %v12090_v24 = vld [vmem:[#allocation27_spill] sm:$0xff] }
 0x536   : > { %v11002_v50 = vmul.f32 %v3803_v53, %v12080_v23  ;;  %v3805_v0 = vpop.f32.mrb[119].mxu0  ;;  %6653 = vmatprep.subr.bf16.mxu1 %v8459_v63  ;;  %v12089_v28 = vpack.c.bf16 %v12087_v13, %v12088_v9  ;;  %v8463_v53 = vld [vmem:[#allocation10 + $0x4b0] ss:$8 sps:$4 sm:$0xff]   ;;  %v12114_v46 = vld [vmem:[#allocation195_spill] sm:$0xff] }
 0x537   : > { %v11005_v56 = vmul.f32 %v3805_v0, %v12081_v44  ;;  %v8468_v0 = vld [vmem:[#allocation10 + $0x4c4] ss:$8 sps:$4 sm:$0xff]   ;;  %v12096_v9 = vld [vmem:[#allocation177_spill] sm:$0xff] }
 0x539   : > { %6654 = vmatpush1.bf16.msra.mxu1 %v8457_v48 }
 0x53a   : > { %6655 = vmatprep.subr.bf16.mxu1 %v8462_v18  ;;  %v12091_v18 = vld [vmem:[#allocation29_spill] sm:$0xff] }
 0x53b   : > { %v3809_v10 = vpop.f32.mrb[120].mxu0 }
 0x53c   : > { %v11012_v14 = vmul.f32 %v3809_v10, %v12082_v21  ;;  %v3811_v38 = vpop.f32.mrb[121].mxu0  ;;  %6605 = vmatmul.mubr.bf16.gmra.mrb[148].mxu1 %v12085_v59  ;;  %v8466_v21 = vld [vmem:[#allocation10 + $0x4c0] ss:$8 sps:$4 sm:$0xff]  }
 0x53d   : > { %v11018_v52 = vmul.f32 %v3811_v38, %v12086_v30  ;;  %6656 = vmatpush1.bf16.msra.mxu1 %v8460_v29  ;;  %v3813_v63 = vpop.f32.mrb[122].mxu0  ;;  %6614 = vmatprep.mubr.bf16.mxu1 %v12089_v28  ;;  %v8471_v38 = vld [vmem:[#allocation10 + $0x4d4] ss:$8 sps:$4 sm:$0xff]  }
 0x53e   : > { %v11024_v48 = vmul.f32 %v3813_v63, %v12090_v24  ;;  %v3815_v23 = vpop.f32.mrb[123].mxu0  ;;  %6657 = vmatprep.subr.bf16.mxu1 %v8465_v19  ;;  %v12093_v19 = vld [vmem:[#allocation41_spill] sm:$0xff]  ;;  %v12094_v63 = vld [vmem:[#allocation39_spill] sm:$0xff] }
 0x53f   : > { %v11027_v44 = vmul.f32 %v3815_v23, %v12091_v18  ;;  %v12095_v13 = vpack.c.bf16 %v12093_v19, %v12094_v63  ;;  %v12097_v23 = vld [vmem:[#allocation178_spill] sm:$0xff]  ;;  %v8472_v19 = vld [vmem:[#allocation10 + $0x4e0] ss:$8 sps:$4 sm:$0xff]  }
 0x541   : > { %6658 = vmatpush1.bf16.msra.mxu1 %v8463_v53  ;;  %v8469_v53 = vld [vmem:[#allocation10 + $0x4d0] ss:$8 sps:$4 sm:$0xff]  }
 0x542   : > { %6659 = vmatprep.subr.bf16.mxu1 %v8468_v0 }
 0x543   : > { %v3819_v58 = vpop.f32.mrb[124].mxu0 }
 0x544   : > { %v11034_v59 = vmul.f32 %v3819_v58, %v12092_v3  ;;  %v3821_v30 = vpop.f32.mrb[125].mxu0  ;;  %6615 = vmatmul.mubr.bf16.gmra.mrb[152].mxu1 %v12095_v13  ;;  %v8474_v58 = vld [vmem:[#allocation10 + $0x4e4] ss:$8 sps:$4 sm:$0xff]  }
 0x545   : > { %v11040_v28 = vmul.f32 %v3821_v30, %v12096_v9  ;;  %6660 = vmatpush1.bf16.msra.mxu1 %v8466_v21  ;;  %v3823_v24 = vpop.f32.mrb[126].mxu0  ;;  %6624 = vmatprep.mubr.bf16.mxu1 %v4429_v36  ;;  %v12098_v3 = vld [vmem:[#allocation179_spill] sm:$0xff]  ;;  %v12099_v36 = vld [vmem:[#allocation189_spill] sm:$0xff]  ;;  %v12105_v21 = vld [vmem:[#allocation192_spill] sm:$0xff] }
 0x546   : > { %v11046_v0 = vmul.f32 %v3823_v24, %v12097_v23  ;;  %v3825_v18 = vpop.f32.mrb[127].mxu0  ;;  %6661 = vmatprep.subr.bf16.mxu1 %v8471_v38  ;;  %v12100_v38 = vld [vmem:[#allocation190_spill] sm:$0xff]  ;;  %v12101_v23 = vld [vmem:[#allocation149_spill] sm:$0xff] }
 0x547   : > { %v11049_v10 = vmul.f32 %v3825_v18, %v12098_v3  ;;  %v12102_v18 = vld [vmem:[#allocation147_spill] sm:$0xff] }
 0x548   : > { %v12104_v3 = vld [vmem:[#allocation191_spill] sm:$0xff] }
 0x549   : > { %6662 = vmatpush1.bf16.msra.mxu1 %v8469_v53  ;;  %v12103_v53 = vpack.c.bf16 %v12101_v23, %v12102_v18  ;;  %v12108_v18 = vld [vmem:[#allocation146_spill] sm:$0xff] }
 0x54a   : > { %6663 = vmatprep.subr.bf16.mxu1 %v8474_v58  ;;  %v8475_v58 = vld [vmem:[#allocation10 + $0x4f0] ss:$8 sps:$4 sm:$0xff]  }
 0x54b   : > { %v3975_v49 = vpop.f32.mrb[128].mxu0 }
 0x54c   : > { %v11056_v63 = vmul.f32 %v3975_v49, %v12099_v36  ;;  %v3977_v13 = vpop.f32.mrb[129].mxu0  ;;  %6625 = vmatmul.mubr.bf16.gmra.mrb[156].mxu1 %v4428_v60  ;;  %v8480_v36 = vld [vmem:[#allocation10 + $0x504] ss:$8 sps:$4 sm:$0xff]   ;;  %v8478_v60 = vld [vmem:[#allocation10 + $0x500] ss:$8 sps:$4 sm:$0xff]  }
 0x54d   : > { %v11062_v9 = vmul.f32 %v3977_v13, %v12100_v38  ;;  %6664 = vmatpush1.bf16.msra.mxu1 %v8472_v19  ;;  %v3979_v24 = vpop.f32.mrb[130].mxu0  ;;  %6667 = vmatprep.mubr.bf16.mxu1 %v12103_v53  ;;  %v8483_v19 = vld [vmem:[#allocation10 + $0x514] ss:$8 sps:$4 sm:$0xff]  }
 0x54e   : > { %v11068_v30 = vmul.f32 %v3979_v24, %v12104_v3  ;;  %v3981_v49 = vpop.f32.mrb[131].mxu0  ;;  %6665 = vmatprep.subr.bf16.mxu1 %v8477_v51  ;;  %v12106_v38 = vld [vmem:[#allocation193_spill] sm:$0xff]  ;;  %v12107_v51 = vld [vmem:[#allocation148_spill] sm:$0xff] }
 0x54f   : > { %v11071_v29 = vmul.f32 %v3981_v49, %v12105_v21  ;;  %v12109_v53 = vpack.c.bf16 %v12107_v51, %v12108_v18  ;;  %v12110_v21 = vld [vmem:[#allocation194_spill] sm:$0xff]  ;;  %v8484_v51 = vld [vmem:[#allocation10 + $0x520] ss:$8 sps:$4 sm:$0xff]   ;;  %v12116_v18 = vld [vmem:[#allocation197_spill] sm:$0xff] }
 0x551   : > { %6666 = vmatpush1.bf16.msra.mxu1 %v8475_v58  ;;  %v12113_v58 = vpack.c.bf16 %v12111_v33, %v12112_v4  ;;  %v8489_v33 = vld [vmem:[#allocation10 + $0x534] ss:$8 sps:$4 sm:$0xff]  }
 0x552   : > { %6748 = vmatprep.subr.bf16.mxu1 %v8480_v36  ;;  %v8481_v36 = vld [vmem:[#allocation10 + $0x510] ss:$8 sps:$4 sm:$0xff]  }
 0x553   : > { %v3985_v13 = vpop.f32.mrb[132].mxu0 }
 0x554   : > { %v11078_v24 = vmul.f32 %v3985_v13, %v12106_v38  ;;  %v3987_v23 = vpop.f32.mrb[133].mxu0  ;;  %6668 = vmatmul.mubr.bf16.vlgmr.msra.gmra.mrb[128].mxu1 %v12109_v53  ;;  %v8486_v38 = vld [vmem:[#allocation10 + $0x524] ss:$8 sps:$4 sm:$0xff]  }
 0x555   : > { %v11084_v3 = vmul.f32 %v3987_v23, %v12110_v21  ;;  %6749 = vmatpush1.bf16.msra.mxu1 %v8478_v60  ;;  %v3989_v49 = vpop.f32.mrb[134].mxu0  ;;  %6677 = vmatprep.mubr.bf16.mxu1 %v12113_v58  ;;  %v12118_v21 = vld [vmem:[#allocation150_spill] sm:$0xff]  ;;  %v12121_v23 = vld [vmem:[#allocation157_spill] sm:$0xff]  ;;  %v12122_v60 = vld [vmem:[#allocation155_spill] sm:$0xff] }
 0x556   : > { %v11090_v39 = vmul.f32 %v3989_v49, %v12114_v46  ;;  %v3991_v13 = vpop.f32.mrb[135].mxu0  ;;  %6750 = vmatprep.subr.bf16.mxu1 %v8483_v19  ;;  %v12117_v19 = vld [vmem:[#allocation152_spill] sm:$0xff] }
 0x557   : > { %v11093_v8 = vmul.f32 %v3991_v13, %v12115_v45  ;;  %v12119_v49 = vpack.c.bf16 %v12117_v19, %v12118_v21  ;;  %v12120_v45 = vld [vmem:[#allocation198_spill] sm:$0xff]  ;;  %v8490_v19 = vld [vmem:[#allocation10 + $0x540] ss:$8 sps:$4 sm:$0xff]   ;;  %v12126_v21 = vld [vmem:[#allocation201_spill] sm:$0xff] }
 0x559   : > { %6751 = vmatpush1.bf16.msra.mxu1 %v8481_v36  ;;  %v12123_v36 = vpack.c.bf16 %v12121_v23, %v12122_v60  ;;  %v8495_v23 = vld [vmem:[#allocation10 + $0x554] ss:$8 sps:$4 sm:$0xff]  }
 0x55a   : > { %6752 = vmatprep.subr.bf16.mxu1 %v8486_v38  ;;  %v8487_v38 = vld [vmem:[#allocation10 + $0x530] ss:$8 sps:$4 sm:$0xff]  }
 0x55b   : > { %v3995_v4 = vpop.f32.mrb[136].mxu0 }
 0x55c   : > { %v11100_v46 = vmul.f32 %v3995_v4, %v12116_v18  ;;  %v3997_v53 = vpop.f32.mrb[137].mxu0  ;;  %6678 = vmatmul.mubr.bf16.gmra.mrb[132].mxu1 %v12119_v49  ;;  %v8492_v18 = vld [vmem:[#allocation10 + $0x544] ss:$8 sps:$4 sm:$0xff]  }
 0x55d   : > { %v11106_v58 = vmul.f32 %v3997_v53, %v12120_v45  ;;  %6753 = vmatpush1.bf16.msra.mxu1 %v8484_v51  ;;  %v3999_v13 = vpop.f32.mrb[138].mxu0  ;;  %6687 = vmatprep.mubr.bf16.mxu1 %v12123_v36  ;;  %v12129_v45 = vld [vmem:[#allocation154_spill] sm:$0xff]  ;;  %v12133_v53 = vld [vmem:[#allocation161_spill] sm:$0xff]  ;;  %v12134_v51 = vld [vmem:[#allocation159_spill] sm:$0xff] }
 0x55e   : > { %v11112_v40 = vmul.f32 %v3999_v13, %v12124_v26  ;;  %v4001_v4 = vpop.f32.mrb[139].mxu0  ;;  %6754 = vmatprep.subr.bf16.mxu1 %v8489_v33  ;;  %v12128_v33 = vld [vmem:[#allocation156_spill] sm:$0xff] }
 0x55f   : > { %v11115_v17 = vmul.f32 %v4001_v4, %v12125_v47  ;;  %v12130_v13 = vpack.c.bf16 %v12128_v33, %v12129_v45  ;;  %v12131_v47 = vld [vmem:[#allocation202_spill] sm:$0xff]  ;;  %v8496_v33 = vld [vmem:[#allocation10 + $0x560] ss:$8 sps:$4 sm:$0xff]   ;;  %v12140_v45 = vld [vmem:[#allocation205_spill] sm:$0xff] }
 0x561   : > { %6755 = vmatpush1.bf16.msra.mxu1 %v8487_v38  ;;  %v12135_v38 = vpack.c.bf16 %v12133_v53, %v12134_v51  ;;  %v8501_v53 = vld [vmem:[#allocation10 + $0x574] ss:$8 sps:$4 sm:$0xff]  }
 0x562   : > { %6756 = vmatprep.subr.bf16.mxu1 %v8492_v18  ;;  %v8493_v18 = vld [vmem:[#allocation10 + $0x550] ss:$8 sps:$4 sm:$0xff]  }
 0x563   : > { %v4005_v60 = vpop.f32.mrb[140].mxu0 }
 0x564   : > { %v11122_v26 = vmul.f32 %v4005_v60, %v12126_v21  ;;  %v4007_v49 = vpop.f32.mrb[141].mxu0  ;;  %6688 = vmatmul.mubr.bf16.gmra.mrb[136].mxu1 %v12130_v13  ;;  %v8498_v21 = vld [vmem:[#allocation10 + $0x564] ss:$8 sps:$4 sm:$0xff]  }
 0x565   : > { %v11128_v36 = vmul.f32 %v4007_v49, %v12131_v47  ;;  %6757 = vmatpush1.bf16.msra.mxu1 %v8490_v19  ;;  %v4009_v4 = vpop.f32.mrb[142].mxu0  ;;  %6697 = vmatprep.mubr.bf16.mxu1 %v12135_v38  ;;  %v12143_v47 = vld [vmem:[#allocation158_spill] sm:$0xff]  ;;  %v12147_v49 = vld [vmem:[#allocation165_spill] sm:$0xff]  ;;  %v12148_v19 = vld [vmem:[#allocation163_spill] sm:$0xff] }
 0x566   : > { %12127 = vst [vmem:[#allocation43_spill] sm:$0xff] %v11122_v26  ;;  %v11134_v25 = vmul.f32 %v4009_v4, %v12136_v35  ;;  %v4011_v60 = vpop.f32.mrb[143].mxu0  ;;  %6758 = vmatprep.subr.bf16.mxu1 %v8495_v23  ;;  %v12142_v23 = vld [vmem:[#allocation160_spill] sm:$0xff]  ;;  %v12150_v26 = vld [vmem:[#allocation207_spill] sm:$0xff] }
 0x567   : > { %12132 = vst [vmem:[#allocation44_spill] sm:$0xff] %v11128_v36  ;;  %v11137_v12 = vmul.f32 %v4011_v60, %v12138_v37  ;;  %v12144_v4 = vpack.c.bf16 %v12142_v23, %v12143_v47  ;;  %v12145_v37 = vld [vmem:[#allocation206_spill] sm:$0xff]  ;;  %v12152_v36 = vld [vmem:[#allocation208_spill] sm:$0xff]  ;;  %v12154_v47 = vld [vmem:[#allocation209_spill] sm:$0xff] }
 0x568   : > { %12137 = vst [vmem:[#allocation45_spill] sm:$0xff] %v11134_v25  ;;  %v8502_v23 = vld [vmem:[#allocation10 + $0x580] ss:$8 sps:$4 sm:$0xff]  }
 0x569   : > { %12139 = vst [vmem:[#allocation46_spill] sm:$0xff] %v11137_v12  ;;  %6759 = vmatpush1.bf16.msra.mxu1 %v8493_v18  ;;  %v12149_v18 = vpack.c.bf16 %v12147_v49, %v12148_v19  ;;  %v8507_v49 = vld [vmem:[#allocation10 + $0x594] ss:$8 sps:$4 sm:$0xff]  }
 0x56a   : > { %6760 = vmatprep.subr.bf16.mxu1 %v8498_v21  ;;  %v8499_v21 = vld [vmem:[#allocation10 + $0x570] ss:$8 sps:$4 sm:$0xff]  }
 0x56b   : > { %v4015_v51 = vpop.f32.mrb[144].mxu0 }
 0x56c   : > { %v11144_v35 = vmul.f32 %v4015_v51, %v12140_v45  ;;  %v4017_v13 = vpop.f32.mrb[145].mxu0  ;;  %6698 = vmatmul.mubr.bf16.gmra.mrb[140].mxu1 %v12144_v4  ;;  %v8504_v45 = vld [vmem:[#allocation10 + $0x584] ss:$8 sps:$4 sm:$0xff]  }
 0x56d   : > { %v11150_v38 = vmul.f32 %v4017_v13, %v12145_v37  ;;  %6761 = vmatpush1.bf16.msra.mxu1 %v8496_v33  ;;  %v4019_v60 = vpop.f32.mrb[146].mxu0  ;;  %6707 = vmatprep.mubr.bf16.mxu1 %v12149_v18  ;;  %v12157_v37 = vld [vmem:[#allocation162_spill] sm:$0xff]  ;;  %v12161_v13 = vld [vmem:[#allocation169_spill] sm:$0xff]  ;;  %v12162_v33 = vld [vmem:[#allocation167_spill] sm:$0xff] }
 0x56e   : > { %12141 = vst [vmem:[#allocation47_spill] sm:$0xff] %v11144_v35  ;;  %v11156_v25 = vmul.f32 %v4019_v60, %v12150_v26  ;;  %v4021_v51 = vpop.f32.mrb[147].mxu0  ;;  %6762 = vmatprep.subr.bf16.mxu1 %v8501_v53  ;;  %v12156_v53 = vld [vmem:[#allocation164_spill] sm:$0xff]  ;;  %v12164_v35 = vld [vmem:[#allocation211_spill] sm:$0xff] }
 0x56f   : > { %12146 = vst [vmem:[#allocation48_spill] sm:$0xff] %v11150_v38  ;;  %v11159_v12 = vmul.f32 %v4021_v51, %v12152_v36  ;;  %v12158_v60 = vpack.c.bf16 %v12156_v53, %v12157_v37  ;;  %v12159_v36 = vld [vmem:[#allocation210_spill] sm:$0xff]  ;;  %v12166_v38 = vld [vmem:[#allocation212_spill] sm:$0xff]  ;;  %v12168_v37 = vld [vmem:[#allocation213_spill] sm:$0xff] }
 0x570   : > { %12151 = vst [vmem:[#allocation49_spill] sm:$0xff] %v11156_v25  ;;  %v8508_v53 = vld [vmem:[#allocation10 + $0x5a0] ss:$8 sps:$4 sm:$0xff]  }
 0x571   : > { %12153 = vst [vmem:[#allocation50_spill] sm:$0xff] %v11159_v12  ;;  %6763 = vmatpush1.bf16.msra.mxu1 %v8499_v21  ;;  %v12163_v21 = vpack.c.bf16 %v12161_v13, %v12162_v33  ;;  %v8513_v13 = vld [vmem:[#allocation10 + $0x5b4] ss:$8 sps:$4 sm:$0xff]  }
 0x572   : > { %6764 = vmatprep.subr.bf16.mxu1 %v8504_v45  ;;  %v8505_v45 = vld [vmem:[#allocation10 + $0x590] ss:$8 sps:$4 sm:$0xff]  }
 0x573   : > { %v4025_v19 = vpop.f32.mrb[148].mxu0 }
 0x574   : > { %v11166_v26 = vmul.f32 %v4025_v19, %v12154_v47  ;;  %v4027_v4 = vpop.f32.mrb[149].mxu0  ;;  %6708 = vmatmul.mubr.bf16.gmra.mrb[144].mxu1 %v12158_v60  ;;  %v8510_v47 = vld [vmem:[#allocation10 + $0x5a4] ss:$8 sps:$4 sm:$0xff]  }
 0x575   : > { %v11172_v18 = vmul.f32 %v4027_v4, %v12159_v36  ;;  %6765 = vmatpush1.bf16.msra.mxu1 %v8502_v23  ;;  %v4029_v51 = vpop.f32.mrb[150].mxu0  ;;  %6717 = vmatprep.mubr.bf16.mxu1 %v12163_v21  ;;  %v12171_v36 = vld [vmem:[#allocation166_spill] sm:$0xff]  ;;  %v12175_v4 = vld [vmem:[#allocation172_spill] sm:$0xff] }
 0x576   : > { %12155 = vst [vmem:[#allocation51_spill] sm:$0xff] %v11166_v26  ;;  %v11178_v25 = vmul.f32 %v4029_v51, %v12164_v35  ;;  %v4031_v19 = vpop.f32.mrb[151].mxu0  ;;  %6766 = vmatprep.subr.bf16.mxu1 %v8507_v49  ;;  %v12170_v49 = vld [vmem:[#allocation168_spill] sm:$0xff]  ;;  %v12176_v23 = vld [vmem:[#allocation170_spill] sm:$0xff]  ;;  %v12178_v26 = vld [vmem:[#allocation215_spill] sm:$0xff] }
 0x577   : > { %12160 = vst [vmem:[#allocation53_spill] sm:$0xff] %v11172_v18  ;;  %v11181_v12 = vmul.f32 %v4031_v19, %v12166_v38  ;;  %v12172_v51 = vpack.c.bf16 %v12170_v49, %v12171_v36  ;;  %v12173_v38 = vld [vmem:[#allocation214_spill] sm:$0xff]  ;;  %v12180_v18 = vld [vmem:[#allocation216_spill] sm:$0xff]  ;;  %v12182_v36 = vld [vmem:[#allocation217_spill] sm:$0xff] }
 0x578   : > { %12165 = vst [vmem:[#allocation54_spill] sm:$0xff] %v11178_v25  ;;  %v8514_v49 = vld [vmem:[#allocation10 + $0x5c0] ss:$8 sps:$4 sm:$0xff]  }
 0x579   : > { %12167 = vst [vmem:[#allocation55_spill] sm:$0xff] %v11181_v12  ;;  %6767 = vmatpush1.bf16.msra.mxu1 %v8505_v45  ;;  %v12177_v45 = vpack.c.bf16 %v12175_v4, %v12176_v23  ;;  %v8519_v4 = vld [vmem:[#allocation10 + $0x5d4] ss:$8 sps:$4 sm:$0xff]  }
 0x57a   : > { %6768 = vmatprep.subr.bf16.mxu1 %v8510_v47  ;;  %v8511_v47 = vld [vmem:[#allocation10 + $0x5b0] ss:$8 sps:$4 sm:$0xff]  }
 0x57b   : > { %v4035_v33 = vpop.f32.mrb[152].mxu0 }
 0x57c   : > { %v11188_v35 = vmul.f32 %v4035_v33, %v12168_v37  ;;  %v4037_v60 = vpop.f32.mrb[153].mxu0  ;;  %6718 = vmatmul.mubr.bf16.gmra.mrb[148].mxu1 %v12172_v51  ;;  %v8516_v37 = vld [vmem:[#allocation10 + $0x5c4] ss:$8 sps:$4 sm:$0xff]  }
 0x57d   : > { %v11194_v21 = vmul.f32 %v4037_v60, %v12173_v38  ;;  %6769 = vmatpush1.bf16.msra.mxu1 %v8508_v53  ;;  %v4039_v19 = vpop.f32.mrb[154].mxu0  ;;  %6727 = vmatprep.mubr.bf16.mxu1 %v12177_v45  ;;  %v12184_v38 = vld [vmem:[#allocation19_spill] sm:$0xff]  ;;  %v12188_v53 = vld [vmem:[#allocation173_spill] sm:$0xff] }
 0x57e   : > { %12169 = vst [vmem:[#allocation56_spill] sm:$0xff] %v11188_v35  ;;  %v11200_v25 = vmul.f32 %v4039_v19, %v12178_v26  ;;  %v4041_v33 = vpop.f32.mrb[155].mxu0  ;;  %6770 = vmatprep.subr.bf16.mxu1 %v8513_v13  ;;  %v12183_v13 = vld [vmem:[#allocation171_spill] sm:$0xff] }
 0x57f   : > { %12174 = vst [vmem:[#allocation58_spill] sm:$0xff] %v11194_v21  ;;  %v11203_v12 = vmul.f32 %v4041_v33, %v12180_v18  ;;  %v12185_v19 = vpack.c.bf16 %v12183_v13, %v12184_v38  ;;  %v12186_v18 = vld [vmem:[#allocation218_spill] sm:$0xff]  ;;  %v12187_v60 = vld [vmem:[#allocation175_spill] sm:$0xff]  ;;  %v12191_v21 = vld [vmem:[#allocation220_spill] sm:$0xff] }
 0x580   : > { %12179 = vst [vmem:[#allocation60_spill] sm:$0xff] %v11200_v25  ;;  %v12190_v35 = vld [vmem:[#allocation219_spill] sm:$0xff]  ;;  %v12193_v38 = vld [vmem:[#allocation21_spill] sm:$0xff] }
 0x581   : > { %12181 = vst [vmem:[#allocation62_spill] sm:$0xff] %v11203_v12  ;;  %6771 = vmatpush1.bf16.msra.mxu1 %v8511_v47  ;;  %v12189_v47 = vpack.c.bf16 %v12187_v60, %v12188_v53  ;;  %v8520_v13 = vld [vmem:[#allocation10 + $0x5e0] ss:$8 sps:$4 sm:$0xff]   ;;  %v8525_v60 = vld [vmem:[#allocation10 + $0x5f4] ss:$8 sps:$4 sm:$0xff]  }
 0x582   : > { %6772 = vmatprep.subr.bf16.mxu1 %v8516_v37  ;;  %v8517_v37 = vld [vmem:[#allocation10 + $0x5d0] ss:$8 sps:$4 sm:$0xff]  }
 0x583   : > { %v4045_v23 = vpop.f32.mrb[156].mxu0  ;;  %v12192_v53 = vld [vmem:[#allocation174_spill] sm:$0xff] }
 0x584   : > { %v11210_v26 = vmul.f32 %v4045_v23, %v12182_v36  ;;  %v4047_v51 = vpop.f32.mrb[157].mxu0  ;;  %6728 = vmatmul.mubr.bf16.gmra.mrb[152].mxu1 %v12185_v19  ;;  %v8522_v36 = vld [vmem:[#allocation10 + $0x5e4] ss:$8 sps:$4 sm:$0xff]  }
 0x585   : > { %v11216_v45 = vmul.f32 %v4047_v51, %v12186_v18  ;;  %6773 = vmatpush1.bf16.msra.mxu1 %v8514_v49  ;;  %v4049_v33 = vpop.f32.mrb[158].mxu0  ;;  %6737 = vmatprep.mubr.bf16.mxu1 %v12189_v47  ;;  %v8528_v19 = vld [vmem:[#allocation10 + $0x604] ss:$8 sps:$4 sm:$0xff]   ;;  %v8526_v18 = vld [vmem:[#allocation10 + $0x600] ss:$8 sps:$4 sm:$0xff]   ;;  %v12196_v47 = vpack.c.bf16 %v10892_v11, %v10880_v42  ;;  %v12199_v42 = vpack.c.bf16 %v10939_v22, %v10930_v43 }
 0x586   : > { %v11222_v25 = vmul.f32 %v4049_v33, %v12190_v35  ;;  %v4051_v23 = vpop.f32.mrb[159].mxu0  ;;  %6774 = vmatprep.subr.bf16.mxu1 %v8519_v4  ;;  %v12194_v35 = vpack.c.bf16 %v12192_v53, %v12193_v38  ;;  %v12195_v4 = vpack.c.bf16 %v10895_v15, %v10886_v62  ;;  %v8531_v33 = vld [vmem:[#allocation10 + $0x614] ss:$8 sps:$4 sm:$0xff]   ;;  %v8534_v62 = vld [vmem:[#allocation10 + $0x624] ss:$8 sps:$4 sm:$0xff]   ;;  %v12200_v53 = vpack.c.bf16 %v10936_v57, %v10924_v27 }
 0x587   : > { %v11225_v12 = vmul.f32 %v4051_v23, %v12191_v21  ;;  %v8523_v21 = vld [vmem:[#allocation10 + $0x5f0] ss:$8 sps:$4 sm:$0xff]   ;;  %v8532_v15 = vld [vmem:[#allocation10 + $0x620] ss:$8 sps:$4 sm:$0xff]   ;;  %v8546_v43 = vld [vmem:[#allocation10 + $0x664] ss:$8 sps:$4 sm:$0xff]   ;;  %v12203_v27 = vpack.c.bf16 %v10983_v31, %v10974_v5 }
 0x588   : > { %v4436_v51 = vpack.c.bf16 %v11222_v25, %v11210_v26  ;;  %v8529_v23 = vld [vmem:[#allocation10 + $0x610] ss:$8 sps:$4 sm:$0xff]   ;;  %v8544_v22 = vld [vmem:[#allocation10 + $0x660] ss:$8 sps:$4 sm:$0xff]   ;;  %v8549_v38 = vld [vmem:[#allocation10 + $0x674] ss:$8 sps:$4 sm:$0xff]  }
 0x589   : > { %v4437_v49 = vpack.c.bf16 %v11225_v12, %v11216_v45  ;;  %6775 = vmatpush1.bf16.msra.mxu1 %v8517_v37  ;;  %v12197_v37 = vpack.c.bf16 %v10917_v54, %v10908_v16  ;;  %v8535_v11 = vld [vmem:[#allocation10 + $0x630] ss:$8 sps:$4 sm:$0xff]   ;;  %v8540_v16 = vld [vmem:[#allocation10 + $0x644] ss:$8 sps:$4 sm:$0xff]   ;;  %v8538_v54 = vld [vmem:[#allocation10 + $0x640] ss:$8 sps:$4 sm:$0xff]  }
 0x58a   : > { %6776 = vmatprep.subr.bf16.mxu1 %v8522_v36  ;;  %v8537_v36 = vld [vmem:[#allocation10 + $0x634] ss:$8 sps:$4 sm:$0xff]   ;;  %v8547_v57 = vld [vmem:[#allocation10 + $0x670] ss:$8 sps:$4 sm:$0xff]   ;;  %v8558_v5 = vld [vmem:[#allocation10 + $0x6a4] ss:$8 sps:$4 sm:$0xff]  }
 0x58b   : > { %v8556_v31 = vld [vmem:[#allocation10 + $0x6a0] ss:$8 sps:$4 sm:$0xff]  }
 0x58c   : > { %6738 = vmatmul.mubr.bf16.gmra.mrb[156].mxu1 %v12194_v35  ;;  %v12202_v35 = vpack.c.bf16 %v10958_v32, %v10946_v2  ;;  %v12205_v2 = vpack.c.bf16 %v11005_v56, %v10996_v20  ;;  %v8553_v32 = vld [vmem:[#allocation10 + $0x690] ss:$8 sps:$4 sm:$0xff]   ;;  %v8564_v20 = vld [vmem:[#allocation10 + $0x6c4] ss:$8 sps:$4 sm:$0xff]   ;;  %v8562_v56 = vld [vmem:[#allocation10 + $0x6c0] ss:$8 sps:$4 sm:$0xff]  }
 0x58d   : > { %6777 = vmatpush1.bf16.msra.mxu1 %v8520_v13  ;;  %6780 = vmatprep.mubr.bf16.mxu1 %v12195_v4  ;;  %v12198_v13 = vpack.c.bf16 %v10914_v6, %v10902_v61  ;;  %v12201_v61 = vpack.c.bf16 %v10961_v1, %v10952_v34  ;;  %v8541_v6 = vld [vmem:[#allocation10 + $0x650] ss:$8 sps:$4 sm:$0xff]   ;;  %v8552_v34 = vld [vmem:[#allocation10 + $0x684] ss:$8 sps:$4 sm:$0xff]   ;;  %v8550_v1 = vld [vmem:[#allocation10 + $0x680] ss:$8 sps:$4 sm:$0xff]  }
 0x58e   : > { %6778 = vmatprep.subr.bf16.mxu1 %v8525_v60  ;;  %v8543_v60 = vld [vmem:[#allocation10 + $0x654] ss:$8 sps:$4 sm:$0xff]  }
 0x58f   : > { %v8555_v4 = vld [vmem:[#allocation10 + $0x694] ss:$8 sps:$4 sm:$0xff]  }
 0x591   : > { %6779 = vmatpush1.bf16.msra.mxu1 %v8523_v21  ;;  %v12204_v21 = vpack.c.bf16 %v10980_v41, %v10968_v7  ;;  %v12207_v7 = vpack.c.bf16 %v11027_v44, %v11018_v52  ;;  %v8559_v41 = vld [vmem:[#allocation10 + $0x6b0] ss:$8 sps:$4 sm:$0xff]   ;;  %v8570_v52 = vld [vmem:[#allocation10 + $0x6e4] ss:$8 sps:$4 sm:$0xff]   ;;  %v8568_v44 = vld [vmem:[#allocation10 + $0x6e0] ss:$8 sps:$4 sm:$0xff]  }
 0x592   : > { %6861 = vmatprep.subr.bf16.mxu1 %v8528_v19  ;;  %v8561_v19 = vld [vmem:[#allocation10 + $0x6b4] ss:$8 sps:$4 sm:$0xff]  }
 0x594   : > { %6781 = vmatmul.mubr.bf16.vlgmr.msra.gmra.mrb[128].mxu1 %v12196_v47  ;;  %v12208_v47 = vpack.c.bf16 %v11024_v48, %v11012_v14  ;;  %v12212_v14 = vld [vmem:[#allocation181_spill] sm:$0xff] }
 0x595   : > { %6862 = vmatpush1.bf16.msra.mxu1 %v8526_v18  ;;  %6790 = vmatprep.mubr.bf16.mxu1 %v12197_v37  ;;  %v12206_v18 = vpack.c.bf16 %v11002_v50, %v10990_v55  ;;  %v12209_v55 = vpack.c.bf16 %v11049_v10, %v11040_v28  ;;  %v8565_v50 = vld [vmem:[#allocation10 + $0x6d0] ss:$8 sps:$4 sm:$0xff]   ;;  %v8573_v37 = vld [vmem:[#allocation10 + $0x6f4] ss:$8 sps:$4 sm:$0xff]   ;;  %v8576_v10 = vld [vmem:[#allocation10 + $0x704] ss:$8 sps:$4 sm:$0xff]  }
 0x596   : > { %6863 = vmatprep.subr.bf16.mxu1 %v8531_v33  ;;  %v8567_v33 = vld [vmem:[#allocation10 + $0x6d4] ss:$8 sps:$4 sm:$0xff]   ;;  %v8574_v28 = vld [vmem:[#allocation10 + $0x700] ss:$8 sps:$4 sm:$0xff]  }
 0x599   : > { %6864 = vmatpush1.bf16.msra.mxu1 %v8529_v23  ;;  %v12210_v23 = vpack.c.bf16 %v11046_v0, %v11034_v59  ;;  %v12218_v59 = vld [vmem:[#allocation185_spill] sm:$0xff] }
 0x59a   : > { %6865 = vmatprep.subr.bf16.mxu1 %v8534_v62  ;;  %v12211_v62 = vld [vmem:[#allocation183_spill] sm:$0xff] }
 0x59b   : > { %v12213_v48 = vpack.c.bf16 %v12211_v62, %v12212_v14  ;;  %v8603_v62 = vld [vmem:[#allocation10 + $0x794] ss:$8 sps:$4 sm:$0xff]   ;;  %v12238_v14 = vld [vmem:[#allocation120_spill] sm:$0xff] }
 0x59c   : > { %6791 = vmatmul.mubr.bf16.gmra.mrb[132].mxu1 %v12198_v13  ;;  %v12214_v13 = vld [vmem:[#allocation182_spill] sm:$0xff] }
 0x59d   : > { %6866 = vmatpush1.bf16.msra.mxu1 %v8532_v15  ;;  %6800 = vmatprep.mubr.bf16.mxu1 %v12199_v42  ;;  %v8571_v15 = vld [vmem:[#allocation10 + $0x6f0] ss:$8 sps:$4 sm:$0xff]   ;;  %v12215_v42 = vld [vmem:[#allocation180_spill] sm:$0xff] }
 0x59e   : > { %6867 = vmatprep.subr.bf16.mxu1 %v8537_v36  ;;  %v8579_v36 = vld [vmem:[#allocation10 + $0x714] ss:$8 sps:$4 sm:$0xff]  }
 0x5a1   : > { %6868 = vmatpush1.bf16.msra.mxu1 %v8535_v11  ;;  %v12216_v11 = vpack.c.bf16 %v12214_v13, %v12215_v42  ;;  %v8601_v13 = vld [vmem:[#allocation10 + $0x790] ss:$8 sps:$4 sm:$0xff]   ;;  %v8606_v42 = vld [vmem:[#allocation10 + $0x7a4] ss:$8 sps:$4 sm:$0xff]  }
 0x5a2   : > { %6869 = vmatprep.subr.bf16.mxu1 %v8540_v16  ;;  %v12217_v16 = vld [vmem:[#allocation98_spill] sm:$0xff] }
 0x5a3   : > { %v12219_v0 = vpack.c.bf16 %v12217_v16, %v12218_v59  ;;  %v8609_v16 = vld [vmem:[#allocation10 + $0x7b4] ss:$8 sps:$4 sm:$0xff]   ;;  %v12244_v59 = vld [vmem:[#allocation128_spill] sm:$0xff] }
 0x5a4   : > { %6801 = vmatmul.mubr.bf16.gmra.mrb[136].mxu1 %v12200_v53  ;;  %v8580_v53 = vld [vmem:[#allocation10 + $0x720] ss:$8 sps:$4 sm:$0xff]  }
 0x5a5   : > { %6870 = vmatpush1.bf16.msra.mxu1 %v8538_v54  ;;  %6810 = vmatprep.mubr.bf16.mxu1 %v12201_v61  ;;  %v8577_v54 = vld [vmem:[#allocation10 + $0x710] ss:$8 sps:$4 sm:$0xff]   ;;  %v8585_v61 = vld [vmem:[#allocation10 + $0x734] ss:$8 sps:$4 sm:$0xff]  }
 0x5a6   : > { %6871 = vmatprep.subr.bf16.mxu1 %v8543_v60  ;;  %v8582_v60 = vld [vmem:[#allocation10 + $0x724] ss:$8 sps:$4 sm:$0xff]  }
 0x5a9   : > { %6872 = vmatpush1.bf16.msra.mxu1 %v8541_v6  ;;  %v12220_v6 = vld [vmem:[#allocation186_spill] sm:$0xff] }
 0x5aa   : > { %6873 = vmatprep.subr.bf16.mxu1 %v8546_v43  ;;  %v12221_v43 = vld [vmem:[#allocation184_spill] sm:$0xff] }
 0x5ac   : > { %6811 = vmatmul.mubr.bf16.gmra.mrb[140].mxu1 %v12202_v35  ;;  %v12224_v35 = vld [vmem:[#allocation102_spill] sm:$0xff] }
 0x5ad   : > { %6874 = vmatpush1.bf16.msra.mxu1 %v8544_v22  ;;  %6820 = vmatprep.mubr.bf16.mxu1 %v12203_v27  ;;  %v12222_v22 = vpack.c.bf16 %v12220_v6, %v12221_v43  ;;  %v8607_v6 = vld [vmem:[#allocation10 + $0x7b0] ss:$8 sps:$4 sm:$0xff]   ;;  %v8612_v43 = vld [vmem:[#allocation10 + $0x7c4] ss:$8 sps:$4 sm:$0xff]  }
 0x5ae   : > { %6875 = vmatprep.subr.bf16.mxu1 %v8549_v38  ;;  %v12223_v38 = vld [vmem:[#allocation106_spill] sm:$0xff] }
 0x5af   : > { %v12225_v27 = vpack.c.bf16 %v12223_v38, %v12224_v35  ;;  %v8615_v38 = vld [vmem:[#allocation10 + $0x7d4] ss:$8 sps:$4 sm:$0xff]   ;;  %v12250_v35 = vld [vmem:[#allocation135_spill] sm:$0xff] }
 0x5b1   : > { %6876 = vmatpush1.bf16.msra.mxu1 %v8547_v57  ;;  %v8583_v57 = vld [vmem:[#allocation10 + $0x730] ss:$8 sps:$4 sm:$0xff]  }
 0x5b2   : > { %6877 = vmatprep.subr.bf16.mxu1 %v8552_v34  ;;  %v8588_v34 = vld [vmem:[#allocation10 + $0x744] ss:$8 sps:$4 sm:$0xff]  }
 0x5b4   : > { %6821 = vmatmul.mubr.bf16.gmra.mrb[144].mxu1 %v12204_v21  ;;  %v12226_v21 = vld [vmem:[#allocation104_spill] sm:$0xff] }
 0x5b5   : > { %6878 = vmatpush1.bf16.msra.mxu1 %v8550_v1  ;;  %6830 = vmatprep.mubr.bf16.mxu1 %v12205_v2  ;;  %v8586_v1 = vld [vmem:[#allocation10 + $0x740] ss:$8 sps:$4 sm:$0xff]  }
 0x5b6   : > { %6879 = vmatprep.subr.bf16.mxu1 %v8555_v4  ;;  %v8591_v4 = vld [vmem:[#allocation10 + $0x754] ss:$8 sps:$4 sm:$0xff]   ;;  %v12227_v2 = vld [vmem:[#allocation100_spill] sm:$0xff] }
 0x5b9   : > { %6880 = vmatpush1.bf16.msra.mxu1 %v8553_v32  ;;  %v12228_v32 = vpack.c.bf16 %v12226_v21, %v12227_v2  ;;  %v8613_v21 = vld [vmem:[#allocation10 + $0x7d0] ss:$8 sps:$4 sm:$0xff]   ;;  %v8618_v2 = vld [vmem:[#allocation10 + $0x7e4] ss:$8 sps:$4 sm:$0xff]  }
 0x5ba   : > { %6881 = vmatprep.subr.bf16.mxu1 %v8558_v5  ;;  %v12229_v5 = vld [vmem:[#allocation114_spill] sm:$0xff] }
 0x5bc   : > { %6831 = vmatmul.mubr.bf16.gmra.mrb[148].mxu1 %v12206_v18  ;;  %v8589_v18 = vld [vmem:[#allocation10 + $0x750] ss:$8 sps:$4 sm:$0xff]  }
 0x5bd   : > { %6882 = vmatpush1.bf16.msra.mxu1 %v8556_v31  ;;  %6840 = vmatprep.mubr.bf16.mxu1 %v12207_v7  ;;  %v12230_v31 = vld [vmem:[#allocation110_spill] sm:$0xff]  ;;  %v8594_v7 = vld [vmem:[#allocation10 + $0x764] ss:$8 sps:$4 sm:$0xff]  }
 0x5be   : > { %6883 = vmatprep.subr.bf16.mxu1 %v8561_v19  ;;  %v12231_v19 = vpack.c.bf16 %v12229_v5, %v12230_v31  ;;  %v8621_v5 = vld [vmem:[#allocation10 + $0x7f4] ss:$8 sps:$4 sm:$0xff]   ;;  %v12256_v31 = vld [vmem:[#allocation143_spill] sm:$0xff] }
 0x5c1   : > { %6884 = vmatpush1.bf16.msra.mxu1 %v8559_v41  ;;  %v8592_v41 = vld [vmem:[#allocation10 + $0x760] ss:$8 sps:$4 sm:$0xff]  }
 0x5c2   : > { %6885 = vmatprep.subr.bf16.mxu1 %v8564_v20  ;;  %v8597_v20 = vld [vmem:[#allocation10 + $0x774] ss:$8 sps:$4 sm:$0xff]  }
 0x5c4   : > { %6841 = vmatmul.mubr.bf16.gmra.mrb[152].mxu1 %v12208_v47 }
 0x5c5   : > { %6886 = vmatpush1.bf16.msra.mxu1 %v8562_v56  ;;  %6850 = vmatprep.mubr.bf16.mxu1 %v12209_v55  ;;  %v12232_v56 = vld [vmem:[#allocation112_spill] sm:$0xff]  ;;  %v12235_v55 = vld [vmem:[#allocation122_spill] sm:$0xff] }
 0x5c6   : > { %6887 = vmatprep.subr.bf16.mxu1 %v8567_v33  ;;  %v12233_v33 = vld [vmem:[#allocation108_spill] sm:$0xff] }
 0x5c7   : > { %v12234_v47 = vpack.c.bf16 %v12232_v56, %v12233_v33  ;;  %v12261_v56 = vpack.c.bf16 %v11093_v8, %v11084_v3  ;;  %v12262_v33 = vpack.c.bf16 %v11090_v39, %v11078_v24  ;;  %v12271_v3 = vld [vmem:[#allocation50_spill] sm:$0xff]  ;;  %v12274_v24 = vld [vmem:[#allocation49_spill] sm:$0xff] }
 0x5c9   : > { %6888 = vmatpush1.bf16.msra.mxu1 %v8565_v50  ;;  %v12236_v50 = vld [vmem:[#allocation118_spill] sm:$0xff] }
 0x5ca   : > { %6889 = vmatprep.subr.bf16.mxu1 %v8570_v52  ;;  %v12237_v52 = vpack.c.bf16 %v12235_v55, %v12236_v50  ;;  %v12268_v55 = vld [vmem:[#allocation45_spill] sm:$0xff]  ;;  %v12269_v50 = vld [vmem:[#allocation43_spill] sm:$0xff] }
 0x5cb   : > { %v12270_v8 = vpack.c.bf16 %v12268_v55, %v12269_v50 }
 0x5cc   : > { %6851 = vmatmul.mubr.bf16.gmra.mrb[156].mxu1 %v12210_v23  ;;  %v8598_v23 = vld [vmem:[#allocation10 + $0x780] ss:$8 sps:$4 sm:$0xff]  }
 0x5cd   : > { %6890 = vmatpush1.bf16.msra.mxu1 %v8568_v44  ;;  %6893 = vmatprep.mubr.bf16.mxu1 %v12213_v48  ;;  %v8595_v44 = vld [vmem:[#allocation10 + $0x770] ss:$8 sps:$4 sm:$0xff]   ;;  %v12239_v48 = vld [vmem:[#allocation116_spill] sm:$0xff] }
 0x5ce   : > { %6891 = vmatprep.subr.bf16.mxu1 %v8573_v37  ;;  %v8600_v37 = vld [vmem:[#allocation10 + $0x784] ss:$8 sps:$4 sm:$0xff]  }
 0x5d1   : > { %6892 = vmatpush1.bf16.msra.mxu1 %v8571_v15  ;;  %v12240_v15 = vpack.c.bf16 %v12238_v14, %v12239_v48  ;;  %v12283_v14 = vld [vmem:[#allocation62_spill] sm:$0xff] }
 0x5d2   : > { %6974 = vmatprep.subr.bf16.mxu1 %v8576_v10  ;;  %v12241_v10 = vld [vmem:[#allocation130_spill] sm:$0xff] }
 0x5d3   : > { %v12284_v48 = vld [vmem:[#allocation58_spill] sm:$0xff] }
 0x5d4   : > { %6894 = vmatmul.mubr.bf16.vlgmr.msra.gmra.mrb[128].mxu1 %v12216_v11  ;;  %v8604_v11 = vld [vmem:[#allocation10 + $0x7a0] ss:$8 sps:$4 sm:$0xff]  }
 0x5d5   : > { %6975 = vmatpush1.bf16.msra.mxu1 %v8574_v28  ;;  %6903 = vmatprep.mubr.bf16.mxu1 %v12219_v0  ;;  %v12242_v28 = vld [vmem:[#allocation126_spill] sm:$0xff]  ;;  %v12245_v0 = vld [vmem:[#allocation124_spill] sm:$0xff] }
 0x5d6   : > { %6976 = vmatprep.subr.bf16.mxu1 %v8579_v36  ;;  %v12243_v36 = vpack.c.bf16 %v12241_v10, %v12242_v28  ;;  %v12286_v10 = vld [vmem:[#allocation60_spill] sm:$0xff] }
 0x5d7   : > { %v12287_v28 = vld [vmem:[#allocation56_spill] sm:$0xff] }
 0x5d9   : > { %6977 = vmatpush1.bf16.msra.mxu1 %v8577_v54  ;;  %v12246_v54 = vpack.c.bf16 %v12244_v59, %v12245_v0 }
 0x5da   : > { %6978 = vmatprep.subr.bf16.mxu1 %v8582_v60  ;;  %v12247_v60 = vld [vmem:[#allocation137_spill] sm:$0xff] }
 0x5dc   : > { %6904 = vmatmul.mubr.bf16.gmra.mrb[132].mxu1 %v12222_v22  ;;  %v8610_v22 = vld [vmem:[#allocation10 + $0x7c0] ss:$8 sps:$4 sm:$0xff]  }
 0x5dd   : > { %6979 = vmatpush1.bf16.msra.mxu1 %v8580_v53  ;;  %6913 = vmatprep.mubr.bf16.mxu1 %v12225_v27  ;;  %v12248_v53 = vld [vmem:[#allocation133_spill] sm:$0xff]  ;;  %v12251_v27 = vld [vmem:[#allocation187_spill] sm:$0xff] }
 0x5de   : > { %6980 = vmatprep.subr.bf16.mxu1 %v8585_v61  ;;  %v12249_v61 = vpack.c.bf16 %v12247_v60, %v12248_v53 }
 0x5e1   : > { %6981 = vmatpush1.bf16.msra.mxu1 %v8583_v57  ;;  %v12252_v57 = vpack.c.bf16 %v12250_v35, %v12251_v27 }
 0x5e2   : > { %6982 = vmatprep.subr.bf16.mxu1 %v8588_v34  ;;  %v12253_v34 = vld [vmem:[#allocation188_spill] sm:$0xff] }
 0x5e4   : > { %6914 = vmatmul.mubr.bf16.gmra.mrb[136].mxu1 %v12228_v32  ;;  %v8616_v32 = vld [vmem:[#allocation10 + $0x7e0] ss:$8 sps:$4 sm:$0xff]  }
 0x5e5   : > { %6983 = vmatpush1.bf16.msra.mxu1 %v8586_v1  ;;  %6923 = vmatprep.mubr.bf16.mxu1 %v12231_v19  ;;  %v12254_v1 = vld [vmem:[#allocation141_spill] sm:$0xff]  ;;  %v12257_v19 = vld [vmem:[#allocation139_spill] sm:$0xff] }
 0x5e6   : > { %6984 = vmatprep.subr.bf16.mxu1 %v8591_v4  ;;  %v12255_v4 = vpack.c.bf16 %v12253_v34, %v12254_v1 }
 0x5e9   : > { %6985 = vmatpush1.bf16.msra.mxu1 %v8589_v18  ;;  %v12258_v18 = vpack.c.bf16 %v12256_v31, %v12257_v19 }
 0x5ea   : > { %6986 = vmatprep.subr.bf16.mxu1 %v8594_v7  ;;  %v12259_v7 = vpack.c.bf16 %v11071_v29, %v11062_v9  ;;  %v12263_v29 = vpack.c.bf16 %v11115_v17, %v11106_v58  ;;  %v12264_v9 = vpack.c.bf16 %v11112_v40, %v11100_v46  ;;  %v12277_v58 = vld [vmem:[#allocation55_spill] sm:$0xff]  ;;  %v12280_v46 = vld [vmem:[#allocation54_spill] sm:$0xff] }
 0x5ec   : > { %6924 = vmatmul.mubr.bf16.gmra.mrb[140].mxu1 %v12234_v47  ;;  %v12265_v47 = vld [vmem:[#allocation46_spill] sm:$0xff] }
 0x5ed   : > { %6987 = vmatpush1.bf16.msra.mxu1 %v8592_v41  ;;  %6933 = vmatprep.mubr.bf16.mxu1 %v12237_v52  ;;  %v8619_v41 = vld [vmem:[#allocation10 + $0x7f0] ss:$8 sps:$4 sm:$0xff]   ;;  %v12272_v52 = vld [vmem:[#allocation48_spill] sm:$0xff] }
 0x5ee   : > { %6988 = vmatprep.subr.bf16.mxu1 %v8597_v20  ;;  %v12260_v20 = vpack.c.bf16 %v11068_v30, %v11056_v63  ;;  %v12266_v30 = vld [vmem:[#allocation44_spill] sm:$0xff]  ;;  %v12273_v39 = vpack.c.bf16 %v12271_v3, %v12272_v52 }
 0x5ef   : > { %v12267_v63 = vpack.c.bf16 %v12265_v47, %v12266_v30 }
 0x5f1   : > { %6989 = vmatpush1.bf16.msra.mxu1 %v8595_v44  ;;  %v12275_v44 = vld [vmem:[#allocation47_spill] sm:$0xff] }
 0x5f2   : > { %6990 = vmatprep.subr.bf16.mxu1 %v8600_v37  ;;  %v12276_v17 = vpack.c.bf16 %v12274_v24, %v12275_v44  ;;  %v12278_v37 = vld [vmem:[#allocation53_spill] sm:$0xff] }
 0x5f3   : > { %v12279_v40 = vpack.c.bf16 %v12277_v58, %v12278_v37 }
 0x5f4   : > { %6934 = vmatmul.mubr.bf16.gmra.mrb[144].mxu1 %v12240_v15  ;;  %v12285_v15 = vpack.c.bf16 %v12283_v14, %v12284_v48 }
 0x5f5   : > { %6991 = vmatpush1.bf16.msra.mxu1 %v8598_v23  ;;  %6943 = vmatprep.mubr.bf16.mxu1 %v12243_v36  ;;  %v12281_v23 = vld [vmem:[#allocation51_spill] sm:$0xff]  ;;  %v12288_v36 = vpack.c.bf16 %v12286_v10, %v12287_v28 }
 0x5f6   : > { %6992 = vmatprep.subr.bf16.mxu1 %v8603_v62  ;;  %v12282_v62 = vpack.c.bf16 %v12280_v46, %v12281_v23 }
 0x5f9   : > { %6993 = vmatpush1.bf16.msra.mxu1 %v8601_v13 }
 0x5fa   : > { %6994 = vmatprep.subr.bf16.mxu1 %v8606_v42 }
 0x5fc   : > { %6944 = vmatmul.mubr.bf16.gmra.mrb[148].mxu1 %v12246_v54 }
 0x5fd   : > { %6995 = vmatpush1.bf16.msra.mxu1 %v8604_v11  ;;  %6953 = vmatprep.mubr.bf16.mxu1 %v12249_v61 }
 0x5fe   : > { %6996 = vmatprep.subr.bf16.mxu1 %v8609_v16 }
 0x601   : > { %6997 = vmatpush1.bf16.msra.mxu1 %v8607_v6 }
 0x602   : > { %6998 = vmatprep.subr.bf16.mxu1 %v8612_v43 }
 0x604   : > { %6954 = vmatmul.mubr.bf16.gmra.mrb[152].mxu1 %v12252_v57 }
 0x605   : > { %6999 = vmatpush1.bf16.msra.mxu1 %v8610_v22  ;;  %6963 = vmatprep.mubr.bf16.mxu1 %v12255_v4 }
 0x606   : > { %7000 = vmatprep.subr.bf16.mxu1 %v8615_v38 }
 0x609   : > { %7001 = vmatpush1.bf16.msra.mxu1 %v8613_v21 }
 0x60a   : > { %7002 = vmatprep.subr.bf16.mxu1 %v8618_v2 }
 0x60c   : > { %6964 = vmatmul.mubr.bf16.gmra.mrb[156].mxu1 %v12258_v18 }
 0x60d   : > { %7003 = vmatpush1.bf16.msra.mxu1 %v8616_v32  ;;  %7006 = vmatprep.mubr.bf16.mxu1 %v12259_v7 }
 0x60e   : > { %7004 = vmatprep.subr.bf16.mxu1 %v8621_v5 }
 0x611   : > { %7005 = vmatpush1.bf16.msra.mxu1 %v8619_v41 }
 0x614   : > { %7007 = vmatmul.mubr.bf16.vlgmr.msra.gmra.mrb[128].mxu1 %v12260_v20 }
 0x615   : > { %7016 = vmatprep.mubr.bf16.mxu1 %v12261_v56 }
 0x61c   : > { %7017 = vmatmul.mubr.bf16.gmra.mrb[132].mxu1 %v12262_v33 }
 0x61d   : > { %7026 = vmatprep.mubr.bf16.mxu1 %v12263_v29 }
 0x624   : > { %7027 = vmatmul.mubr.bf16.gmra.mrb[136].mxu1 %v12264_v9 }
 0x625   : > { %7036 = vmatprep.mubr.bf16.mxu1 %v12267_v63 }
 0x62c   : > { %7037 = vmatmul.mubr.bf16.gmra.mrb[140].mxu1 %v12270_v8 }
 0x62d   : > { %7046 = vmatprep.mubr.bf16.mxu1 %v12273_v39 }
 0x634   : > { %7047 = vmatmul.mubr.bf16.gmra.mrb[144].mxu1 %v12276_v17 }
 0x635   : > { %7056 = vmatprep.mubr.bf16.mxu1 %v12279_v40 }
 0x63c   : > { %7057 = vmatmul.mubr.bf16.gmra.mrb[148].mxu1 %v12282_v62 }
 0x63d   : > { %7066 = vmatprep.mubr.bf16.mxu1 %v12285_v15 }
 0x644   : > { %7067 = vmatmul.mubr.bf16.gmra.mrb[152].mxu1 %v12288_v36 }
 0x645   : > { %7076 = vmatprep.mubr.bf16.mxu1 %v4437_v49 }
 0x64c   : > { %7077 = vmatmul.mubr.bf16.gmra.mrb[156].mxu1 %v4436_v51 }
 0x6e7   : > { %v7008_v13 = vpop.f32.mrb[128].mxu1 }
 0x6e8   : > { %7087 = vst [vmem:[%s11379_s20] sm:$0xff] %v7008_v13  ;;  %v7010_v12 = vpop.f32.mrb[129].mxu1 }
 0x6e9   : > { %7088 = vst [vmem:[%s11379_s20 + $0x8] sm:$0xff] %v7010_v12  ;;  %v7012_v45 = vpop.f32.mrb[130].mxu1 }
 0x6ea   : > { %7089 = vst [vmem:[%s11379_s20 + $0x10] sm:$0xff] %v7012_v45  ;;  %v7014_v25 = vpop.f32.mrb[131].mxu1 }
 0x6eb   : > { %7090 = vst [vmem:[%s11379_s20 + $0x18] sm:$0xff] %v7014_v25 }
 0x6ef   : > { %v7018_v26 = vpop.f32.mrb[132].mxu1 }
 0x6f0   : > { %7091 = vst [vmem:[%s11379_s20 + $0x20] sm:$0xff] %v7018_v26  ;;  %v7020_v51 = vpop.f32.mrb[133].mxu1 }
 0x6f1   : > { %7092 = vst [vmem:[%s11379_s20 + $0x28] sm:$0xff] %v7020_v51  ;;  %v7022_v49 = vpop.f32.mrb[134].mxu1 }
 0x6f2   : > { %7093 = vst [vmem:[%s11379_s20 + $0x30] sm:$0xff] %v7022_v49  ;;  %v7024_v42 = vpop.f32.mrb[135].mxu1 }
 0x6f3   : > { %7094 = vst [vmem:[%s11379_s20 + $0x38] sm:$0xff] %v7024_v42 }
 0x6f7   : > { %v7028_v11 = vpop.f32.mrb[136].mxu1 }
 0x6f8   : > { %7095 = vst [vmem:[%s11379_s20 + $0x40] sm:$0xff] %v7028_v11  ;;  %v7030_v16 = vpop.f32.mrb[137].mxu1 }
 0x6f9   : > { %7096 = vst [vmem:[%s11379_s20 + $0x48] sm:$0xff] %v7030_v16  ;;  %v7032_v59 = vpop.f32.mrb[138].mxu1 }
 0x6fa   : > { %7097 = vst [vmem:[%s11379_s20 + $0x50] sm:$0xff] %v7032_v59  ;;  %v7034_v0 = vpop.f32.mrb[139].mxu1 }
 0x6fb   : > { %7098 = vst [vmem:[%s11379_s20 + $0x58] sm:$0xff] %v7034_v0 }
 0x6ff   : > { %v7038_v54 = vpop.f32.mrb[140].mxu1 }
 0x700   : > { %7099 = vst [vmem:[%s11379_s20 + $0x60] sm:$0xff] %v7038_v54  ;;  %v7040_v60 = vpop.f32.mrb[141].mxu1 }
 0x701   : > { %7100 = vst [vmem:[%s11379_s20 + $0x68] sm:$0xff] %v7040_v60  ;;  %v7042_v53 = vpop.f32.mrb[142].mxu1 }
 0x702   : > { %7101 = vst [vmem:[%s11379_s20 + $0x70] sm:$0xff] %v7042_v53  ;;  %v7044_v61 = vpop.f32.mrb[143].mxu1 }
 0x703   : > { %7102 = vst [vmem:[%s11379_s20 + $0x78] sm:$0xff] %v7044_v61 }
 0x707   : > { %v7048_v6 = vpop.f32.mrb[144].mxu1 }
 0x708   : > { %7103 = vst [vmem:[%s11379_s20 + $0x80] sm:$0xff] %v7048_v6  ;;  %v7050_v43 = vpop.f32.mrb[145].mxu1 }
 0x709   : > { %7104 = vst [vmem:[%s11379_s20 + $0x88] sm:$0xff] %v7050_v43  ;;  %v7052_v22 = vpop.f32.mrb[146].mxu1 }
 0x70a   : > { %7105 = vst [vmem:[%s11379_s20 + $0x90] sm:$0xff] %v7052_v22  ;;  %v7054_v38 = vpop.f32.mrb[147].mxu1 }
 0x70b   : > { %7106 = vst [vmem:[%s11379_s20 + $0x98] sm:$0xff] %v7054_v38 }
 0x70f   : > { %v7058_v35 = vpop.f32.mrb[148].mxu1 }
 0x710   : > { %7107 = vst [vmem:[%s11379_s20 + $0xa0] sm:$0xff] %v7058_v35  ;;  %v7060_v27 = vpop.f32.mrb[149].mxu1 }
 0x711   : > { %7108 = vst [vmem:[%s11379_s20 + $0xa8] sm:$0xff] %v7060_v27  ;;  %v7062_v57 = vpop.f32.mrb[150].mxu1 }
 0x712   : > { %7109 = vst [vmem:[%s11379_s20 + $0xb0] sm:$0xff] %v7062_v57  ;;  %v7064_v34 = vpop.f32.mrb[151].mxu1 }
 0x713   : > { %7110 = vst [vmem:[%s11379_s20 + $0xb8] sm:$0xff] %v7064_v34 }
 0x717   : > { %v7068_v1 = vpop.f32.mrb[152].mxu1 }
 0x718   : > { %7111 = vst [vmem:[%s11379_s20 + $0xc0] sm:$0xff] %v7068_v1  ;;  %v7070_v4 = vpop.f32.mrb[153].mxu1 }
 0x719   : > { %7112 = vst [vmem:[%s11379_s20 + $0xc8] sm:$0xff] %v7070_v4  ;;  %v7072_v21 = vpop.f32.mrb[154].mxu1 }
 0x71a   : > { %7113 = vst [vmem:[%s11379_s20 + $0xd0] sm:$0xff] %v7072_v21  ;;  %v7074_v2 = vpop.f32.mrb[155].mxu1 }
 0x71b   : > { %7114 = vst [vmem:[%s11379_s20 + $0xd8] sm:$0xff] %v7074_v2 }
 0x71f   : > { %v7078_v32 = vpop.f32.mrb[156].mxu1 }
 0x720   : > { %7115 = vst [vmem:[%s11379_s20 + $0xe0] sm:$0xff] %v7078_v32  ;;  %v7080_v5 = vpop.f32.mrb[157].mxu1 }
 0x721   : > { %7116 = vst [vmem:[%s11379_s20 + $0xe8] sm:$0xff] %v7080_v5  ;;  %v7082_v31 = vpop.f32.mrb[158].mxu1 }
 0x722   : > { %7117 = vst [vmem:[%s11379_s20 + $0xf0] sm:$0xff] %v7082_v31  ;;  %v7084_v19 = vpop.f32.mrb[159].mxu1 }
 0x723   : > { %7118 = vst [vmem:[%s11379_s20 + $0xf8] sm:$0xff] %v7084_v19 }
 0x724   : > { %8805 = shalt.err (!%p8802_p8)
}
 0x725   : > { %s8806_s14 = scalar_lea.hbm %s11415_s29, 4096  ;;  %s8810_s28 = scalar_lea.hbm %s11470_s6, 8192 }
 0x726   : > { %p8807_p6 = scmp.ne.s32.totalorder %s11415_s29, %s8806_s14  ;;  %p8811_p3 = scmp.lt.u32.totalorder %s11415_s29, %s11470_s6 }
 0x727   : > { %p8812_p0 = scmp.lt.u32.totalorder %s8810_s28, %s8806_s14  ;;  %p8814_p2 = scmp.lt.u32.totalorder %s8806_s14, %s11415_s29 }
 0x728   : > { %p8808_p9 = pnand %p8807_p6, %p12289_p7 }
 0x729   : > { %p8813_p5 = por %p8812_p0, %p8811_p3 }
 0x72a   : > { %p8809_p4 = pneg %p8808_p9 }
 0x72b   : > { %p8815_p10 = por %p8814_p2, %p8813_p5 }
 0x72d   : > { %p8816_p1 = pnand %p8815_p10, %p8809_p4 }
 0x72f   : > { %8819 = shalt.err (!%p8816_p1)
}
 0x730   : > { %s8885_s26 = smov 256   ;;  %s8886_s7 = smov 16  }
 0x731   : > { %8105 = dma.vmem_to_hbm [thread:$0]  (%p12289_p7), %s11417_s25, 4096, %s11415_s29, %s7120_s27, %s8885_s26, %s8885_s26, %s8886_s7  }
 0x732 PF: > { %s7149_s9 = sand.u32 1, %s8858_s21   ;;  %p12290_p11 = scmp.ne.s32.totalorder %s11633_s10, 0 }
 0x733   : > { %p12291_p12 = scmp.ge.s32.totalorder %s8870_s24, 2  ;;  %s7150_s12 = scalar_lea.sflag [#allocation4], %s7149_s9 }
 0x735   : > { %p8128_p13 = pnand %p12291_p12, %p12290_p11 }
 0x737   : > { %8853 = dma.done.wait (!%p8128_p13), %s7150_s12, 4096  }
 0x738   : > { %8855 = vsyncadd (!%p8128_p13), %s7150_s12, 4294963200  ;;  %p22_p8 = scmp.ge.s32.totalorder %s9085_s15, 4   ;;  %s12292_s21 = smov %s8862_s22 }
 0x739   : > { %s12293_s22 = smov %s8866_s23  ;;  %s12294_s23 = smov %s9097_s18 }
 0x73a   : > { %s12295_s24 = smov %s9085_s15  ;;  %24 = sbr.rel (!%p22_p8) target bundleno = 8 (0x8), region = 109 }
 0x741   :  { %7155 = vsyncpa [#allocation3], 1 }
 0x742   :  { %7157 = vsyncpa [#allocation3 + $0x1], 1 }
 0x743   :  { %7158 = vsyncpa [#allocation6], 1 }
 0x744   :  { %7159 = vsyncpa [#allocation9], 1 }
 0x745   :  { %7160 = vsyncpa [#allocation12], 1 }
 0x746   :  { %7161 = vsyncpa [#allocation4], 1 }
 0x747   :  { %7163 = vsyncpa [#allocation4 + $0x1], 1 }

</bundles_post_ra>
